<compile_context>
chip_gen: v6e
topology: v6e:2x2x1
jax: 0.10.0
libtpu: 0.0.40
codegen_flags: <defaults>
</compile_context>

<pallas_src>
import math
import functools

import jax
import jax.numpy as jnp
from jax.experimental import pallas as pl
from jax.experimental.pallas import tpu as pltpu


_VMEM = pl.BlockSpec(memory_space=pltpu.MemorySpace.VMEM)


# ------------------------------ Pallas kernel -------------------------------

def _dqn_kernel(p1_ref, w1_ref, b1_ref, w2_ref, b2_ref,
                whr_ref, bh_ref, whd_ref, bhd_ref,
                out_ref, y2_ref, *, B, S2, KK):
    """Fully fused mean_var_DQN2 forward.

    p1_ref : (KK, S2*B, Cin*KK) bf16  conv1 patches grouped by conv2 offset ij;
                                      rows ordered (spatial s, batch b)
    w1_ref : (Cin*KK, C1)       bf16  conv1 weight, transposed
    b1_ref : (1, C1)            f32
    w2_ref : (KK, C1, C2)       bf16  conv2 weight per kernel offset, transposed
    b2_ref : (1, C2)            f32
    whr_ref: (S2, C2, 2H)       bf16  [fc_h_v | fc_h_a] with the torch feat
                                      (c2*9+s) row order folded into the layout
    bh_ref : (1, 2H)            f32
    whd_ref: (2H, P)            bf16  all four heads + dueling mean folded in
    bhd_ref: (1, P)             f32
    out_ref: (B, P)             f32   [:, :A]=q, [:, A:2A]=var_q, rest 0
    y2_ref : (S2*B, C2)         f32   scratch (conv2 output, rows = (s, b))
    """
    M = S2 * B
    C1 = w1_ref.shape[1]
    C2 = w2_ref.shape[2]

    # ---- conv1 + conv2 fused over the 25 conv2 kernel offsets ----
    b1v = jnp.broadcast_to(b1_ref[...], (M, C1))          # hoisted broadcast
    acc2 = jnp.zeros((M, C2), jnp.float32)
    for ij in range(KK):
        y1 = jnp.dot(p1_ref[ij], w1_ref[...],
                     preferred_element_type=jnp.float32)  # (M, C1)
        y1 = jnp.maximum(y1 + b1v, 0.0).astype(jnp.bfloat16)
        acc2 = acc2 + jnp.dot(y1, w2_ref[ij],
                              preferred_element_type=jnp.float32)  # (M, C2)
    y2_ref[...] = jnp.maximum(acc2 + b2_ref[...], 0.0)    # (S2*B, C2)

    # ---- fused hidden layers: h = relu(feat @ [Whv|Wha] + bh) ----
    # feat permutation is pre-folded into whr, so we just sum per spatial pos.
    nH = whr_ref.shape[2]
    hacc = jnp.zeros((B, nH), jnp.float32)
    for s in range(S2):
        ys = y2_ref[pl.ds(s * B, B), :].astype(jnp.bfloat16)      # (B, C2)
        hacc = hacc + jnp.dot(ys, whr_ref[s],
                              preferred_element_type=jnp.float32)  # (B, 2H)
    h = jnp.maximum(hacc + bh_ref[...], 0.0).astype(jnp.bfloat16)

    # ---- dueling heads: mean subtraction pre-folded into whd/bhd ----
    out_ref[...] = (jnp.dot(h, whd_ref[...],
                            preferred_element_type=jnp.float32)
                    + bhd_ref[...])                        # (B, P), unmasked


def _dqn_pallas(p1g, w, *, B, S2, KK):
    C2 = w['w2t'].shape[2]
    P = w['whd'].shape[1]
    kernel = functools.partial(_dqn_kernel, B=B, S2=S2, KK=KK)
    return pl.pallas_call(
        kernel,
        out_shape=jax.ShapeDtypeStruct((B, P), jnp.float32),
        in_specs=[_VMEM] * 9,
        out_specs=_VMEM,
        scratch_shapes=[pltpu.VMEM((S2 * B, C2), jnp.float32)],
    )(p1g, w['w1t'], w['b1'], w['w2t'], w['b2'],
      w['whr'], w['bh'], w['whd'], w['bhd'])


# --------------------------- parameter preparation --------------------------

def scale_noise(key, n):
    x = jax.random.normal(key, (n,), jnp.float32)
    return jnp.sign(x) * jnp.sqrt(jnp.abs(x))


def init_conv(key, cout, cin, k):
    fan_in = cin * k * k
    bound = 1.0 / math.sqrt(fan_in)
    kw, kb = jax.random.split(key)
    w = jax.random.uniform(kw, (cout, cin, k, k), jnp.float32, -bound, bound)
    b = jax.random.uniform(kb, (cout,), jnp.float32, -bound, bound)
    return w, b


def init_noisy(key, in_f, out_f, std_init=0.5):
    """NoisyLinear training mode: effective w = w_mu + w_sigma * (eps_out x eps_in)."""
    k1, k2, k3, k4 = jax.random.split(key, 4)
    mu_range = 1.0 / math.sqrt(in_f)
    w_mu = jax.random.uniform(k1, (out_f, in_f), jnp.float32, -mu_range, mu_range)
    b_mu = jax.random.uniform(k2, (out_f,), jnp.float32, -mu_range, mu_range)
    w_sigma = jnp.full((out_f, in_f), std_init / math.sqrt(in_f), jnp.float32)
    b_sigma = jnp.full((out_f,), std_init / math.sqrt(out_f), jnp.float32)
    eps_in = scale_noise(k3, in_f)
    eps_out = scale_noise(k4, out_f)
    w = w_mu + w_sigma * jnp.outer(eps_out, eps_in)
    b = b_mu + b_sigma * eps_out
    return w, b


def init_params(key, history_length, hidden_size, action_space, noisy_std):
    keys = jax.random.split(key, 8)
    conv1_w, conv1_b = init_conv(keys[0], 32, history_length, 5)
    conv2_w, conv2_b = init_conv(keys[1], 64, 32, 5)
    conv_output_size = 576
    return dict(conv1_w=conv1_w, conv1_b=conv1_b,
                conv2_w=conv2_w, conv2_b=conv2_b,
                fc_h_v=init_noisy(keys[2], conv_output_size, hidden_size, noisy_std),
                fc_h_a=init_noisy(keys[3], conv_output_size, hidden_size, noisy_std),
                fc_z_v=init_noisy(keys[4], hidden_size, 1, noisy_std),
                fc_z_a=init_noisy(keys[5], hidden_size, action_space, noisy_std),
                fc_z_var_v=init_noisy(keys[6], hidden_size, 1, noisy_std),
                fc_z_var_a=init_noisy(keys[7], hidden_size, action_space, noisy_std))


def prep_weights(params, hidden_size, action_space):
    """One-time layout: transposes, ij-grouping, feat-permutation + dueling folding."""
    A, H = action_space, hidden_size
    KK = 25  # 5x5 conv kernel offsets

    # conv1: (32, Cin, 5, 5) -> (Cin*25, 32) bf16; bias row.
    c1w = params['conv1_w']
    C1 = c1w.shape[0]
    w1t = c1w.reshape(C1, -1).T.astype(jnp.bfloat16)
    b1 = params['conv1_b'].reshape(1, -1).astype(jnp.float32)

    # conv2: (64, 32, 5, 5) -> (25, 32, 64) grouped by kernel offset ij.
    c2w = params['conv2_w']
    C2 = c2w.shape[0]
    w2t = c2w.transpose(2, 3, 1, 0).reshape(KK, C1, C2).astype(jnp.bfloat16)
    b2 = params['conv2_b'].reshape(1, -1).astype(jnp.float32)

    # Hidden: WH = [w_hv.T | w_ha.T] (576, 2H).  Fold the torch feat index
    # f = c2*9 + s into a per-spatial-position layout (9, 64, 2H) so the kernel
    # consumes the conv2 output row blocks directly (no transpose anywhere).
    w_hv, b_hv = params['fc_h_v']
    w_ha, b_ha = params['fc_h_a']
    S2 = w_hv.shape[1] // C2                                    # 9 spatial positions
    wh = jnp.concatenate([w_hv.T, w_ha.T], axis=1)              # (C2*S2, 2H)
    whr = wh.reshape(C2, S2, 2 * H).transpose(1, 0, 2).astype(jnp.bfloat16)
    bh = jnp.concatenate([b_hv, b_ha]).reshape(1, -1).astype(jnp.float32)

    # Heads: fold value broadcast + dueling mean subtraction into one (2H, P)
    # block weight producing [q | var_q | 0...] directly.
    w_zv, b_zv = params['fc_z_v']
    w_za, b_za = params['fc_z_a']
    w_vv, b_vv = params['fc_z_var_v']
    w_va, b_va = params['fc_z_var_a']
    P = 128 * pl.cdiv(max(2 * A, 128), 128)
    CA = jnp.eye(A, dtype=jnp.float32) - 1.0 / A                # centering matrix
    whd = jnp.zeros((2 * H, P), jnp.float32)
    whd = whd.at[0:H, 0:A].set(jnp.broadcast_to(w_zv.T, (H, A)))
    whd = whd.at[H:2 * H, 0:A].set(w_za.T @ CA)
    whd = whd.at[0:H, A:2 * A].set(jnp.broadcast_to(w_vv.T, (H, A)))
    whd = whd.at[H:2 * H, A:2 * A].set(w_va.T @ CA)
    whd = whd.astype(jnp.bfloat16)
    bhd = jnp.zeros((1, P), jnp.float32)
    bhd = bhd.at[0, 0:A].set(b_zv[0] + b_za - jnp.mean(b_za))
    bhd = bhd.at[0, A:2 * A].set(b_vv[0] + b_va - jnp.mean(b_va))

    return dict(w1t=w1t, b1=b1, w2t=w2t, b2=b2, whr=whr, bh=bh, whd=whd, bhd=bhd)


# ------------------------------ jitted forward -------------------------------

def make_forward(action_space):
    A = action_space

    @jax.jit
    def forward(x, w):
        """x: (B, history_length, 84, 84) f32 NCHW -> (q (B,A), var_q (B,A))."""
        B, C0, Hin, Win = x.shape
        K = 5                                  # kernel == stride, both convs
        Ho1 = (Hin - K) // K + 1               # 16
        Wo1 = (Win - K) // K + 1
        Ho2 = (Ho1 - K) // K + 1               # 3
        Wo2 = (Wo1 - K) // K + 1
        S2 = Ho2 * Wo2                         # 9
        KK = K * K                             # 25

        # One im2col for BOTH convs (stride == kernel => non-overlapping):
        # crop -> reshape -> single transpose -> reshape, then bf16 cast.
        hc, wc = K * K * Ho2, K * K * Wo2      # 75x75 of the 84x84 actually used
        p = x[:, :, :hc, :wc].reshape(B, C0, Ho2, K, K, Wo2, K, K)
        # dims: (b, c0, ho, i, u, wo, j, v) -> (i, j, ho, wo, b, c0, u, v)
        p = p.transpose(3, 6, 2, 5, 0, 1, 4, 7)
        p1g = p.reshape(KK, S2 * B, C0 * KK).astype(jnp.bfloat16)

        out = _dqn_pallas(p1g, w, B=B, S2=S2, KK=KK)       # (B, 128) slab
        return out[:, :A], out[:, A:2 * A]

    return forward


if __name__ == "__main__":
    # data-efficient architecture: history_length=4, hidden_size=64,
    # noisy_std=0.5, action_space=6; 84x84 input so conv_output_size == 576.
    batch, history_length, hidden_size, action_space, noisy_std = 2, 4, 64, 6, 0.5

    key = jax.random.PRNGKey(0)
    k_params, k_x = jax.random.split(key)
    params = init_params(k_params, history_length, hidden_size, action_space, noisy_std)
    weights = prep_weights(params, hidden_size, action_space)
    x = jax.random.normal(k_x, (batch, history_length, 84, 84), jnp.float32)

    forward = make_forward(action_space)
    q, var_q = forward(x, weights)
    q = jax.block_until_ready(q)
    var_q = jax.block_until_ready(var_q)
    assert q.shape == (batch, action_space) and var_q.shape == (batch, action_space)
    assert bool(jnp.all(jnp.isfinite(q))) and bool(jnp.all(jnp.isfinite(var_q)))
    print("KERNEL_OK")
</pallas_src>

<mosaic_0001>
module attributes {stable_mosaic.version = 11 : i64} {
  func.func @_dqn_kernel(%arg0: memref<25x18x100xbf16, #tpu.memory_space<vmem>>, %arg1: memref<100x32xbf16, #tpu.memory_space<vmem>>, %arg2: memref<1x32xf32, #tpu.memory_space<vmem>>, %arg3: memref<25x32x64xbf16, #tpu.memory_space<vmem>>, %arg4: memref<1x64xf32, #tpu.memory_space<vmem>>, %arg5: memref<9x64x128xbf16, #tpu.memory_space<vmem>>, %arg6: memref<1x128xf32, #tpu.memory_space<vmem>>, %arg7: memref<128x128xbf16, #tpu.memory_space<vmem>>, %arg8: memref<1x128xf32, #tpu.memory_space<vmem>>, %arg9: memref<2x128xf32, #tpu.memory_space<vmem>>, %arg10: memref<18x64xf32, #tpu.memory_space<vmem>>) attributes {dimension_semantics = [], scalar_prefetch = 0 : i64, scratch_operands = 1 : i64, tpu.core_type = #tpu.core_type<tc>} {
    %c0 = arith.constant 0 : index
    %c0_0 = arith.constant 0 : index
    %0 = vector.load %arg2[%c0, %c0_0] : memref<1x32xf32, #tpu.memory_space<vmem>>, vector<1x32xf32>
    %1 = vector.shape_cast %0 : vector<1x32xf32> to vector<1x32xf32>
    %2 = vector.broadcast %1 : vector<1x32xf32> to vector<18x32xf32>
    %cst = arith.constant 0.000000e+00 : f32
    %3 = vector.broadcast %cst : f32 to vector<18x64xf32>
    %c0_1 = arith.constant 0 : index
    %c0_2 = arith.constant 0 : index
    %c0_3 = arith.constant 0 : index
    %4 = vector.load %arg0[%c0_1, %c0_2, %c0_3] : memref<25x18x100xbf16, #tpu.memory_space<vmem>>, vector<1x18x100xbf16>
    %5 = vector.shape_cast %4 : vector<1x18x100xbf16> to vector<18x100xbf16>
    %c0_4 = arith.constant 0 : index
    %c0_5 = arith.constant 0 : index
    %6 = vector.load %arg1[%c0_4, %c0_5] : memref<100x32xbf16, #tpu.memory_space<vmem>>, vector<100x32xbf16>
    %cst_6 = arith.constant dense<0.000000e+00> : vector<18x32xf32>
    %7 = tpu.matmul %5, %6, %cst_6 {dimension_numbers = #tpu.dot_dimension_numbers<[1], [0], [0], [1], [0, 0, 1, 1], [], []>} : vector<18x100xbf16>, vector<100x32xbf16>, vector<18x32xf32> -> vector<18x32xf32>
    %8 = arith.addf %7, %2 : vector<18x32xf32>
    %cst_7 = arith.constant 0.000000e+00 : f32
    %9 = vector.broadcast %cst_7 : f32 to vector<18x32xf32>
    %10 = arith.maximumf %8, %9 : vector<18x32xf32>
    %11 = arith.truncf %10 : vector<18x32xf32> to vector<18x32xbf16>
    %c0_8 = arith.constant 0 : index
    %c0_9 = arith.constant 0 : index
    %c0_10 = arith.constant 0 : index
    %12 = vector.load %arg3[%c0_8, %c0_9, %c0_10] : memref<25x32x64xbf16, #tpu.memory_space<vmem>>, vector<1x32x64xbf16>
    %13 = vector.shape_cast %12 : vector<1x32x64xbf16> to vector<32x64xbf16>
    %cst_11 = arith.constant dense<0.000000e+00> : vector<18x64xf32>
    %14 = tpu.matmul %11, %13, %cst_11 {dimension_numbers = #tpu.dot_dimension_numbers<[1], [0], [0], [1], [0, 0, 1, 1], [], []>} : vector<18x32xbf16>, vector<32x64xbf16>, vector<18x64xf32> -> vector<18x64xf32>
    %15 = arith.addf %3, %14 : vector<18x64xf32>
    %c1 = arith.constant 1 : index
    %c0_12 = arith.constant 0 : index
    %c0_13 = arith.constant 0 : index
    %16 = vector.load %arg0[%c1, %c0_12, %c0_13] : memref<25x18x100xbf16, #tpu.memory_space<vmem>>, vector<1x18x100xbf16>
    %17 = vector.shape_cast %16 : vector<1x18x100xbf16> to vector<18x100xbf16>
    %c0_14 = arith.constant 0 : index
    %c0_15 = arith.constant 0 : index
    %18 = vector.load %arg1[%c0_14, %c0_15] : memref<100x32xbf16, #tpu.memory_space<vmem>>, vector<100x32xbf16>
    %cst_16 = arith.constant dense<0.000000e+00> : vector<18x32xf32>
    %19 = tpu.matmul %17, %18, %cst_16 {dimension_numbers = #tpu.dot_dimension_numbers<[1], [0], [0], [1], [0, 0, 1, 1], [], []>} : vector<18x100xbf16>, vector<100x32xbf16>, vector<18x32xf32> -> vector<18x32xf32>
    %20 = arith.addf %19, %2 : vector<18x32xf32>
    %cst_17 = arith.constant 0.000000e+00 : f32
    %21 = vector.broadcast %cst_17 : f32 to vector<18x32xf32>
    %22 = arith.maximumf %20, %21 : vector<18x32xf32>
    %23 = arith.truncf %22 : vector<18x32xf32> to vector<18x32xbf16>
    %c1_18 = arith.constant 1 : index
    %c0_19 = arith.constant 0 : index
    %c0_20 = arith.constant 0 : index
    %24 = vector.load %arg3[%c1_18, %c0_19, %c0_20] : memref<25x32x64xbf16, #tpu.memory_space<vmem>>, vector<1x32x64xbf16>
    %25 = vector.shape_cast %24 : vector<1x32x64xbf16> to vector<32x64xbf16>
    %cst_21 = arith.constant dense<0.000000e+00> : vector<18x64xf32>
    %26 = tpu.matmul %23, %25, %cst_21 {dimension_numbers = #tpu.dot_dimension_numbers<[1], [0], [0], [1], [0, 0, 1, 1], [], []>} : vector<18x32xbf16>, vector<32x64xbf16>, vector<18x64xf32> -> vector<18x64xf32>
    %27 = arith.addf %15, %26 : vector<18x64xf32>
    %c2 = arith.constant 2 : index
    %c0_22 = arith.constant 0 : index
    %c0_23 = arith.constant 0 : index
    %28 = vector.load %arg0[%c2, %c0_22, %c0_23] : memref<25x18x100xbf16, #tpu.memory_space<vmem>>, vector<1x18x100xbf16>
    %29 = vector.shape_cast %28 : vector<1x18x100xbf16> to vector<18x100xbf16>
    %c0_24 = arith.constant 0 : index
    %c0_25 = arith.constant 0 : index
    %30 = vector.load %arg1[%c0_24, %c0_25] : memref<100x32xbf16, #tpu.memory_space<vmem>>, vector<100x32xbf16>
    %cst_26 = arith.constant dense<0.000000e+00> : vector<18x32xf32>
    %31 = tpu.matmul %29, %30, %cst_26 {dimension_numbers = #tpu.dot_dimension_numbers<[1], [0], [0], [1], [0, 0, 1, 1], [], []>} : vector<18x100xbf16>, vector<100x32xbf16>, vector<18x32xf32> -> vector<18x32xf32>
    %32 = arith.addf %31, %2 : vector<18x32xf32>
    %cst_27 = arith.constant 0.000000e+00 : f32
    %33 = vector.broadcast %cst_27 : f32 to vector<18x32xf32>
    %34 = arith.maximumf %32, %33 : vector<18x32xf32>
    %35 = arith.truncf %34 : vector<18x32xf32> to vector<18x32xbf16>
    %c2_28 = arith.constant 2 : index
    %c0_29 = arith.constant 0 : index
    %c0_30 = arith.constant 0 : index
    %36 = vector.load %arg3[%c2_28, %c0_29, %c0_30] : memref<25x32x64xbf16, #tpu.memory_space<vmem>>, vector<1x32x64xbf16>
    %37 = vector.shape_cast %36 : vector<1x32x64xbf16> to vector<32x64xbf16>
    %cst_31 = arith.constant dense<0.000000e+00> : vector<18x64xf32>
    %38 = tpu.matmul %35, %37, %cst_31 {dimension_numbers = #tpu.dot_dimension_numbers<[1], [0], [0], [1], [0, 0, 1, 1], [], []>} : vector<18x32xbf16>, vector<32x64xbf16>, vector<18x64xf32> -> vector<18x64xf32>
    %39 = arith.addf %27, %38 : vector<18x64xf32>
    %c3 = arith.constant 3 : index
    %c0_32 = arith.constant 0 : index
    %c0_33 = arith.constant 0 : index
    %40 = vector.load %arg0[%c3, %c0_32, %c0_33] : memref<25x18x100xbf16, #tpu.memory_space<vmem>>, vector<1x18x100xbf16>
    %41 = vector.shape_cast %40 : vector<1x18x100xbf16> to vector<18x100xbf16>
    %c0_34 = arith.constant 0 : index
    %c0_35 = arith.constant 0 : index
    %42 = vector.load %arg1[%c0_34, %c0_35] : memref<100x32xbf16, #tpu.memory_space<vmem>>, vector<100x32xbf16>
    %cst_36 = arith.constant dense<0.000000e+00> : vector<18x32xf32>
    %43 = tpu.matmul %41, %42, %cst_36 {dimension_numbers = #tpu.dot_dimension_numbers<[1], [0], [0], [1], [0, 0, 1, 1], [], []>} : vector<18x100xbf16>, vector<100x32xbf16>, vector<18x32xf32> -> vector<18x32xf32>
    %44 = arith.addf %43, %2 : vector<18x32xf32>
    %cst_37 = arith.constant 0.000000e+00 : f32
    %45 = vector.broadcast %cst_37 : f32 to vector<18x32xf32>
    %46 = arith.maximumf %44, %45 : vector<18x32xf32>
    %47 = arith.truncf %46 : vector<18x32xf32> to vector<18x32xbf16>
    %c3_38 = arith.constant 3 : index
    %c0_39 = arith.constant 0 : index
    %c0_40 = arith.constant 0 : index
    %48 = vector.load %arg3[%c3_38, %c0_39, %c0_40] : memref<25x32x64xbf16, #tpu.memory_space<vmem>>, vector<1x32x64xbf16>
    %49 = vector.shape_cast %48 : vector<1x32x64xbf16> to vector<32x64xbf16>
    %cst_41 = arith.constant dense<0.000000e+00> : vector<18x64xf32>
    %50 = tpu.matmul %47, %49, %cst_41 {dimension_numbers = #tpu.dot_dimension_numbers<[1], [0], [0], [1], [0, 0, 1, 1], [], []>} : vector<18x32xbf16>, vector<32x64xbf16>, vector<18x64xf32> -> vector<18x64xf32>
    %51 = arith.addf %39, %50 : vector<18x64xf32>
    %c4 = arith.constant 4 : index
    %c0_42 = arith.constant 0 : index
    %c0_43 = arith.constant 0 : index
    %52 = vector.load %arg0[%c4, %c0_42, %c0_43] : memref<25x18x100xbf16, #tpu.memory_space<vmem>>, vector<1x18x100xbf16>
    %53 = vector.shape_cast %52 : vector<1x18x100xbf16> to vector<18x100xbf16>
    %c0_44 = arith.constant 0 : index
    %c0_45 = arith.constant 0 : index
    %54 = vector.load %arg1[%c0_44, %c0_45] : memref<100x32xbf16, #tpu.memory_space<vmem>>, vector<100x32xbf16>
    %cst_46 = arith.constant dense<0.000000e+00> : vector<18x32xf32>
    %55 = tpu.matmul %53, %54, %cst_46 {dimension_numbers = #tpu.dot_dimension_numbers<[1], [0], [0], [1], [0, 0, 1, 1], [], []>} : vector<18x100xbf16>, vector<100x32xbf16>, vector<18x32xf32> -> vector<18x32xf32>
    %56 = arith.addf %55, %2 : vector<18x32xf32>
    %cst_47 = arith.constant 0.000000e+00 : f32
    %57 = vector.broadcast %cst_47 : f32 to vector<18x32xf32>
    %58 = arith.maximumf %56, %57 : vector<18x32xf32>
    %59 = arith.truncf %58 : vector<18x32xf32> to vector<18x32xbf16>
    %c4_48 = arith.constant 4 : index
    %c0_49 = arith.constant 0 : index
    %c0_50 = arith.constant 0 : index
    %60 = vector.load %arg3[%c4_48, %c0_49, %c0_50] : memref<25x32x64xbf16, #tpu.memory_space<vmem>>, vector<1x32x64xbf16>
    %61 = vector.shape_cast %60 : vector<1x32x64xbf16> to vector<32x64xbf16>
    %cst_51 = arith.constant dense<0.000000e+00> : vector<18x64xf32>
    %62 = tpu.matmul %59, %61, %cst_51 {dimension_numbers = #tpu.dot_dimension_numbers<[1], [0], [0], [1], [0, 0, 1, 1], [], []>} : vector<18x32xbf16>, vector<32x64xbf16>, vector<18x64xf32> -> vector<18x64xf32>
    %63 = arith.addf %51, %62 : vector<18x64xf32>
    %c5 = arith.constant 5 : index
    %c0_52 = arith.constant 0 : index
    %c0_53 = arith.constant 0 : index
    %64 = vector.load %arg0[%c5, %c0_52, %c0_53] : memref<25x18x100xbf16, #tpu.memory_space<vmem>>, vector<1x18x100xbf16>
    %65 = vector.shape_cast %64 : vector<1x18x100xbf16> to vector<18x100xbf16>
    %c0_54 = arith.constant 0 : index
    %c0_55 = arith.constant 0 : index
    %66 = vector.load %arg1[%c0_54, %c0_55] : memref<100x32xbf16, #tpu.memory_space<vmem>>, vector<100x32xbf16>
    %cst_56 = arith.constant dense<0.000000e+00> : vector<18x32xf32>
    %67 = tpu.matmul %65, %66, %cst_56 {dimension_numbers = #tpu.dot_dimension_numbers<[1], [0], [0], [1], [0, 0, 1, 1], [], []>} : vector<18x100xbf16>, vector<100x32xbf16>, vector<18x32xf32> -> vector<18x32xf32>
    %68 = arith.addf %67, %2 : vector<18x32xf32>
    %cst_57 = arith.constant 0.000000e+00 : f32
    %69 = vector.broadcast %cst_57 : f32 to vector<18x32xf32>
    %70 = arith.maximumf %68, %69 : vector<18x32xf32>
    %71 = arith.truncf %70 : vector<18x32xf32> to vector<18x32xbf16>
    %c5_58 = arith.constant 5 : index
    %c0_59 = arith.constant 0 : index
    %c0_60 = arith.constant 0 : index
    %72 = vector.load %arg3[%c5_58, %c0_59, %c0_60] : memref<25x32x64xbf16, #tpu.memory_space<vmem>>, vector<1x32x64xbf16>
    %73 = vector.shape_cast %72 : vector<1x32x64xbf16> to vector<32x64xbf16>
    %cst_61 = arith.constant dense<0.000000e+00> : vector<18x64xf32>
    %74 = tpu.matmul %71, %73, %cst_61 {dimension_numbers = #tpu.dot_dimension_numbers<[1], [0], [0], [1], [0, 0, 1, 1], [], []>} : vector<18x32xbf16>, vector<32x64xbf16>, vector<18x64xf32> -> vector<18x64xf32>
    %75 = arith.addf %63, %74 : vector<18x64xf32>
    %c6 = arith.constant 6 : index
    %c0_62 = arith.constant 0 : index
    %c0_63 = arith.constant 0 : index
    %76 = vector.load %arg0[%c6, %c0_62, %c0_63] : memref<25x18x100xbf16, #tpu.memory_space<vmem>>, vector<1x18x100xbf16>
    %77 = vector.shape_cast %76 : vector<1x18x100xbf16> to vector<18x100xbf16>
    %c0_64 = arith.constant 0 : index
    %c0_65 = arith.constant 0 : index
    %78 = vector.load %arg1[%c0_64, %c0_65] : memref<100x32xbf16, #tpu.memory_space<vmem>>, vector<100x32xbf16>
    %cst_66 = arith.constant dense<0.000000e+00> : vector<18x32xf32>
    %79 = tpu.matmul %77, %78, %cst_66 {dimension_numbers = #tpu.dot_dimension_numbers<[1], [0], [0], [1], [0, 0, 1, 1], [], []>} : vector<18x100xbf16>, vector<100x32xbf16>, vector<18x32xf32> -> vector<18x32xf32>
    %80 = arith.addf %79, %2 : vector<18x32xf32>
    %cst_67 = arith.constant 0.000000e+00 : f32
    %81 = vector.broadcast %cst_67 : f32 to vector<18x32xf32>
    %82 = arith.maximumf %80, %81 : vector<18x32xf32>
    %83 = arith.truncf %82 : vector<18x32xf32> to vector<18x32xbf16>
    %c6_68 = arith.constant 6 : index
    %c0_69 = arith.constant 0 : index
    %c0_70 = arith.constant 0 : index
    %84 = vector.load %arg3[%c6_68, %c0_69, %c0_70] : memref<25x32x64xbf16, #tpu.memory_space<vmem>>, vector<1x32x64xbf16>
    %85 = vector.shape_cast %84 : vector<1x32x64xbf16> to vector<32x64xbf16>
    %cst_71 = arith.constant dense<0.000000e+00> : vector<18x64xf32>
    %86 = tpu.matmul %83, %85, %cst_71 {dimension_numbers = #tpu.dot_dimension_numbers<[1], [0], [0], [1], [0, 0, 1, 1], [], []>} : vector<18x32xbf16>, vector<32x64xbf16>, vector<18x64xf32> -> vector<18x64xf32>
    %87 = arith.addf %75, %86 : vector<18x64xf32>
    %c7 = arith.constant 7 : index
    %c0_72 = arith.constant 0 : index
    %c0_73 = arith.constant 0 : index
    %88 = vector.load %arg0[%c7, %c0_72, %c0_73] : memref<25x18x100xbf16, #tpu.memory_space<vmem>>, vector<1x18x100xbf16>
    %89 = vector.shape_cast %88 : vector<1x18x100xbf16> to vector<18x100xbf16>
    %c0_74 = arith.constant 0 : index
    %c0_75 = arith.constant 0 : index
    %90 = vector.load %arg1[%c0_74, %c0_75] : memref<100x32xbf16, #tpu.memory_space<vmem>>, vector<100x32xbf16>
    %cst_76 = arith.constant dense<0.000000e+00> : vector<18x32xf32>
    %91 = tpu.matmul %89, %90, %cst_76 {dimension_numbers = #tpu.dot_dimension_numbers<[1], [0], [0], [1], [0, 0, 1, 1], [], []>} : vector<18x100xbf16>, vector<100x32xbf16>, vector<18x32xf32> -> vector<18x32xf32>
    %92 = arith.addf %91, %2 : vector<18x32xf32>
    %cst_77 = arith.constant 0.000000e+00 : f32
    %93 = vector.broadcast %cst_77 : f32 to vector<18x32xf32>
    %94 = arith.maximumf %92, %93 : vector<18x32xf32>
    %95 = arith.truncf %94 : vector<18x32xf32> to vector<18x32xbf16>
    %c7_78 = arith.constant 7 : index
    %c0_79 = arith.constant 0 : index
    %c0_80 = arith.constant 0 : index
    %96 = vector.load %arg3[%c7_78, %c0_79, %c0_80] : memref<25x32x64xbf16, #tpu.memory_space<vmem>>, vector<1x32x64xbf16>
    %97 = vector.shape_cast %96 : vector<1x32x64xbf16> to vector<32x64xbf16>
    %cst_81 = arith.constant dense<0.000000e+00> : vector<18x64xf32>
    %98 = tpu.matmul %95, %97, %cst_81 {dimension_numbers = #tpu.dot_dimension_numbers<[1], [0], [0], [1], [0, 0, 1, 1], [], []>} : vector<18x32xbf16>, vector<32x64xbf16>, vector<18x64xf32> -> vector<18x64xf32>
    %99 = arith.addf %87, %98 : vector<18x64xf32>
    %c8 = arith.constant 8 : index
    %c0_82 = arith.constant 0 : index
    %c0_83 = arith.constant 0 : index
    %100 = vector.load %arg0[%c8, %c0_82, %c0_83] : memref<25x18x100xbf16, #tpu.memory_space<vmem>>, vector<1x18x100xbf16>
    %101 = vector.shape_cast %100 : vector<1x18x100xbf16> to vector<18x100xbf16>
    %c0_84 = arith.constant 0 : index
    %c0_85 = arith.constant 0 : index
    %102 = vector.load %arg1[%c0_84, %c0_85] : memref<100x32xbf16, #tpu.memory_space<vmem>>, vector<100x32xbf16>
    %cst_86 = arith.constant dense<0.000000e+00> : vector<18x32xf32>
    %103 = tpu.matmul %101, %102, %cst_86 {dimension_numbers = #tpu.dot_dimension_numbers<[1], [0], [0], [1], [0, 0, 1, 1], [], []>} : vector<18x100xbf16>, vector<100x32xbf16>, vector<18x32xf32> -> vector<18x32xf32>
    %104 = arith.addf %103, %2 : vector<18x32xf32>
    %cst_87 = arith.constant 0.000000e+00 : f32
    %105 = vector.broadcast %cst_87 : f32 to vector<18x32xf32>
    %106 = arith.maximumf %104, %105 : vector<18x32xf32>
    %107 = arith.truncf %106 : vector<18x32xf32> to vector<18x32xbf16>
    %c8_88 = arith.constant 8 : index
    %c0_89 = arith.constant 0 : index
    %c0_90 = arith.constant 0 : index
    %108 = vector.load %arg3[%c8_88, %c0_89, %c0_90] : memref<25x32x64xbf16, #tpu.memory_space<vmem>>, vector<1x32x64xbf16>
    %109 = vector.shape_cast %108 : vector<1x32x64xbf16> to vector<32x64xbf16>
    %cst_91 = arith.constant dense<0.000000e+00> : vector<18x64xf32>
    %110 = tpu.matmul %107, %109, %cst_91 {dimension_numbers = #tpu.dot_dimension_numbers<[1], [0], [0], [1], [0, 0, 1, 1], [], []>} : vector<18x32xbf16>, vector<32x64xbf16>, vector<18x64xf32> -> vector<18x64xf32>
    %111 = arith.addf %99, %110 : vector<18x64xf32>
    %c9 = arith.constant 9 : index
    %c0_92 = arith.constant 0 : index
    %c0_93 = arith.constant 0 : index
    %112 = vector.load %arg0[%c9, %c0_92, %c0_93] : memref<25x18x100xbf16, #tpu.memory_space<vmem>>, vector<1x18x100xbf16>
    %113 = vector.shape_cast %112 : vector<1x18x100xbf16> to vector<18x100xbf16>
    %c0_94 = arith.constant 0 : index
    %c0_95 = arith.constant 0 : index
    %114 = vector.load %arg1[%c0_94, %c0_95] : memref<100x32xbf16, #tpu.memory_space<vmem>>, vector<100x32xbf16>
    %cst_96 = arith.constant dense<0.000000e+00> : vector<18x32xf32>
    %115 = tpu.matmul %113, %114, %cst_96 {dimension_numbers = #tpu.dot_dimension_numbers<[1], [0], [0], [1], [0, 0, 1, 1], [], []>} : vector<18x100xbf16>, vector<100x32xbf16>, vector<18x32xf32> -> vector<18x32xf32>
    %116 = arith.addf %115, %2 : vector<18x32xf32>
    %cst_97 = arith.constant 0.000000e+00 : f32
    %117 = vector.broadcast %cst_97 : f32 to vector<18x32xf32>
    %118 = arith.maximumf %116, %117 : vector<18x32xf32>
    %119 = arith.truncf %118 : vector<18x32xf32> to vector<18x32xbf16>
    %c9_98 = arith.constant 9 : index
    %c0_99 = arith.constant 0 : index
    %c0_100 = arith.constant 0 : index
    %120 = vector.load %arg3[%c9_98, %c0_99, %c0_100] : memref<25x32x64xbf16, #tpu.memory_space<vmem>>, vector<1x32x64xbf16>
    %121 = vector.shape_cast %120 : vector<1x32x64xbf16> to vector<32x64xbf16>
    %cst_101 = arith.constant dense<0.000000e+00> : vector<18x64xf32>
    %122 = tpu.matmul %119, %121, %cst_101 {dimension_numbers = #tpu.dot_dimension_numbers<[1], [0], [0], [1], [0, 0, 1, 1], [], []>} : vector<18x32xbf16>, vector<32x64xbf16>, vector<18x64xf32> -> vector<18x64xf32>
    %123 = arith.addf %111, %122 : vector<18x64xf32>
    %c10 = arith.constant 10 : index
    %c0_102 = arith.constant 0 : index
    %c0_103 = arith.constant 0 : index
    %124 = vector.load %arg0[%c10, %c0_102, %c0_103] : memref<25x18x100xbf16, #tpu.memory_space<vmem>>, vector<1x18x100xbf16>
    %125 = vector.shape_cast %124 : vector<1x18x100xbf16> to vector<18x100xbf16>
    %c0_104 = arith.constant 0 : index
    %c0_105 = arith.constant 0 : index
    %126 = vector.load %arg1[%c0_104, %c0_105] : memref<100x32xbf16, #tpu.memory_space<vmem>>, vector<100x32xbf16>
    %cst_106 = arith.constant dense<0.000000e+00> : vector<18x32xf32>
    %127 = tpu.matmul %125, %126, %cst_106 {dimension_numbers = #tpu.dot_dimension_numbers<[1], [0], [0], [1], [0, 0, 1, 1], [], []>} : vector<18x100xbf16>, vector<100x32xbf16>, vector<18x32xf32> -> vector<18x32xf32>
    %128 = arith.addf %127, %2 : vector<18x32xf32>
    %cst_107 = arith.constant 0.000000e+00 : f32
    %129 = vector.broadcast %cst_107 : f32 to vector<18x32xf32>
    %130 = arith.maximumf %128, %129 : vector<18x32xf32>
    %131 = arith.truncf %130 : vector<18x32xf32> to vector<18x32xbf16>
    %c10_108 = arith.constant 10 : index
    %c0_109 = arith.constant 0 : index
    %c0_110 = arith.constant 0 : index
    %132 = vector.load %arg3[%c10_108, %c0_109, %c0_110] : memref<25x32x64xbf16, #tpu.memory_space<vmem>>, vector<1x32x64xbf16>
    %133 = vector.shape_cast %132 : vector<1x32x64xbf16> to vector<32x64xbf16>
    %cst_111 = arith.constant dense<0.000000e+00> : vector<18x64xf32>
    %134 = tpu.matmul %131, %133, %cst_111 {dimension_numbers = #tpu.dot_dimension_numbers<[1], [0], [0], [1], [0, 0, 1, 1], [], []>} : vector<18x32xbf16>, vector<32x64xbf16>, vector<18x64xf32> -> vector<18x64xf32>
    %135 = arith.addf %123, %134 : vector<18x64xf32>
    %c11 = arith.constant 11 : index
    %c0_112 = arith.constant 0 : index
    %c0_113 = arith.constant 0 : index
    %136 = vector.load %arg0[%c11, %c0_112, %c0_113] : memref<25x18x100xbf16, #tpu.memory_space<vmem>>, vector<1x18x100xbf16>
    %137 = vector.shape_cast %136 : vector<1x18x100xbf16> to vector<18x100xbf16>
    %c0_114 = arith.constant 0 : index
    %c0_115 = arith.constant 0 : index
    %138 = vector.load %arg1[%c0_114, %c0_115] : memref<100x32xbf16, #tpu.memory_space<vmem>>, vector<100x32xbf16>
    %cst_116 = arith.constant dense<0.000000e+00> : vector<18x32xf32>
    %139 = tpu.matmul %137, %138, %cst_116 {dimension_numbers = #tpu.dot_dimension_numbers<[1], [0], [0], [1], [0, 0, 1, 1], [], []>} : vector<18x100xbf16>, vector<100x32xbf16>, vector<18x32xf32> -> vector<18x32xf32>
    %140 = arith.addf %139, %2 : vector<18x32xf32>
    %cst_117 = arith.constant 0.000000e+00 : f32
    %141 = vector.broadcast %cst_117 : f32 to vector<18x32xf32>
    %142 = arith.maximumf %140, %141 : vector<18x32xf32>
    %143 = arith.truncf %142 : vector<18x32xf32> to vector<18x32xbf16>
    %c11_118 = arith.constant 11 : index
    %c0_119 = arith.constant 0 : index
    %c0_120 = arith.constant 0 : index
    %144 = vector.load %arg3[%c11_118, %c0_119, %c0_120] : memref<25x32x64xbf16, #tpu.memory_space<vmem>>, vector<1x32x64xbf16>
    %145 = vector.shape_cast %144 : vector<1x32x64xbf16> to vector<32x64xbf16>
    %cst_121 = arith.constant dense<0.000000e+00> : vector<18x64xf32>
    %146 = tpu.matmul %143, %145, %cst_121 {dimension_numbers = #tpu.dot_dimension_numbers<[1], [0], [0], [1], [0, 0, 1, 1], [], []>} : vector<18x32xbf16>, vector<32x64xbf16>, vector<18x64xf32> -> vector<18x64xf32>
    %147 = arith.addf %135, %146 : vector<18x64xf32>
    %c12 = arith.constant 12 : index
    %c0_122 = arith.constant 0 : index
    %c0_123 = arith.constant 0 : index
    %148 = vector.load %arg0[%c12, %c0_122, %c0_123] : memref<25x18x100xbf16, #tpu.memory_space<vmem>>, vector<1x18x100xbf16>
    %149 = vector.shape_cast %148 : vector<1x18x100xbf16> to vector<18x100xbf16>
    %c0_124 = arith.constant 0 : index
    %c0_125 = arith.constant 0 : index
    %150 = vector.load %arg1[%c0_124, %c0_125] : memref<100x32xbf16, #tpu.memory_space<vmem>>, vector<100x32xbf16>
    %cst_126 = arith.constant dense<0.000000e+00> : vector<18x32xf32>
    %151 = tpu.matmul %149, %150, %cst_126 {dimension_numbers = #tpu.dot_dimension_numbers<[1], [0], [0], [1], [0, 0, 1, 1], [], []>} : vector<18x100xbf16>, vector<100x32xbf16>, vector<18x32xf32> -> vector<18x32xf32>
    %152 = arith.addf %151, %2 : vector<18x32xf32>
    %cst_127 = arith.constant 0.000000e+00 : f32
    %153 = vector.broadcast %cst_127 : f32 to vector<18x32xf32>
    %154 = arith.maximumf %152, %153 : vector<18x32xf32>
    %155 = arith.truncf %154 : vector<18x32xf32> to vector<18x32xbf16>
    %c12_128 = arith.constant 12 : index
    %c0_129 = arith.constant 0 : index
    %c0_130 = arith.constant 0 : index
    %156 = vector.load %arg3[%c12_128, %c0_129, %c0_130] : memref<25x32x64xbf16, #tpu.memory_space<vmem>>, vector<1x32x64xbf16>
    %157 = vector.shape_cast %156 : vector<1x32x64xbf16> to vector<32x64xbf16>
    %cst_131 = arith.constant dense<0.000000e+00> : vector<18x64xf32>
    %158 = tpu.matmul %155, %157, %cst_131 {dimension_numbers = #tpu.dot_dimension_numbers<[1], [0], [0], [1], [0, 0, 1, 1], [], []>} : vector<18x32xbf16>, vector<32x64xbf16>, vector<18x64xf32> -> vector<18x64xf32>
    %159 = arith.addf %147, %158 : vector<18x64xf32>
    %c13 = arith.constant 13 : index
    %c0_132 = arith.constant 0 : index
    %c0_133 = arith.constant 0 : index
    %160 = vector.load %arg0[%c13, %c0_132, %c0_133] : memref<25x18x100xbf16, #tpu.memory_space<vmem>>, vector<1x18x100xbf16>
    %161 = vector.shape_cast %160 : vector<1x18x100xbf16> to vector<18x100xbf16>
    %c0_134 = arith.constant 0 : index
    %c0_135 = arith.constant 0 : index
    %162 = vector.load %arg1[%c0_134, %c0_135] : memref<100x32xbf16, #tpu.memory_space<vmem>>, vector<100x32xbf16>
    %cst_136 = arith.constant dense<0.000000e+00> : vector<18x32xf32>
    %163 = tpu.matmul %161, %162, %cst_136 {dimension_numbers = #tpu.dot_dimension_numbers<[1], [0], [0], [1], [0, 0, 1, 1], [], []>} : vector<18x100xbf16>, vector<100x32xbf16>, vector<18x32xf32> -> vector<18x32xf32>
    %164 = arith.addf %163, %2 : vector<18x32xf32>
    %cst_137 = arith.constant 0.000000e+00 : f32
    %165 = vector.broadcast %cst_137 : f32 to vector<18x32xf32>
    %166 = arith.maximumf %164, %165 : vector<18x32xf32>
    %167 = arith.truncf %166 : vector<18x32xf32> to vector<18x32xbf16>
    %c13_138 = arith.constant 13 : index
    %c0_139 = arith.constant 0 : index
    %c0_140 = arith.constant 0 : index
    %168 = vector.load %arg3[%c13_138, %c0_139, %c0_140] : memref<25x32x64xbf16, #tpu.memory_space<vmem>>, vector<1x32x64xbf16>
    %169 = vector.shape_cast %168 : vector<1x32x64xbf16> to vector<32x64xbf16>
    %cst_141 = arith.constant dense<0.000000e+00> : vector<18x64xf32>
    %170 = tpu.matmul %167, %169, %cst_141 {dimension_numbers = #tpu.dot_dimension_numbers<[1], [0], [0], [1], [0, 0, 1, 1], [], []>} : vector<18x32xbf16>, vector<32x64xbf16>, vector<18x64xf32> -> vector<18x64xf32>
    %171 = arith.addf %159, %170 : vector<18x64xf32>
    %c14 = arith.constant 14 : index
    %c0_142 = arith.constant 0 : index
    %c0_143 = arith.constant 0 : index
    %172 = vector.load %arg0[%c14, %c0_142, %c0_143] : memref<25x18x100xbf16, #tpu.memory_space<vmem>>, vector<1x18x100xbf16>
    %173 = vector.shape_cast %172 : vector<1x18x100xbf16> to vector<18x100xbf16>
    %c0_144 = arith.constant 0 : index
    %c0_145 = arith.constant 0 : index
    %174 = vector.load %arg1[%c0_144, %c0_145] : memref<100x32xbf16, #tpu.memory_space<vmem>>, vector<100x32xbf16>
    %cst_146 = arith.constant dense<0.000000e+00> : vector<18x32xf32>
    %175 = tpu.matmul %173, %174, %cst_146 {dimension_numbers = #tpu.dot_dimension_numbers<[1], [0], [0], [1], [0, 0, 1, 1], [], []>} : vector<18x100xbf16>, vector<100x32xbf16>, vector<18x32xf32> -> vector<18x32xf32>
    %176 = arith.addf %175, %2 : vector<18x32xf32>
    %cst_147 = arith.constant 0.000000e+00 : f32
    %177 = vector.broadcast %cst_147 : f32 to vector<18x32xf32>
    %178 = arith.maximumf %176, %177 : vector<18x32xf32>
    %179 = arith.truncf %178 : vector<18x32xf32> to vector<18x32xbf16>
    %c14_148 = arith.constant 14 : index
    %c0_149 = arith.constant 0 : index
    %c0_150 = arith.constant 0 : index
    %180 = vector.load %arg3[%c14_148, %c0_149, %c0_150] : memref<25x32x64xbf16, #tpu.memory_space<vmem>>, vector<1x32x64xbf16>
    %181 = vector.shape_cast %180 : vector<1x32x64xbf16> to vector<32x64xbf16>
    %cst_151 = arith.constant dense<0.000000e+00> : vector<18x64xf32>
    %182 = tpu.matmul %179, %181, %cst_151 {dimension_numbers = #tpu.dot_dimension_numbers<[1], [0], [0], [1], [0, 0, 1, 1], [], []>} : vector<18x32xbf16>, vector<32x64xbf16>, vector<18x64xf32> -> vector<18x64xf32>
    %183 = arith.addf %171, %182 : vector<18x64xf32>
    %c15 = arith.constant 15 : index
    %c0_152 = arith.constant 0 : index
    %c0_153 = arith.constant 0 : index
    %184 = vector.load %arg0[%c15, %c0_152, %c0_153] : memref<25x18x100xbf16, #tpu.memory_space<vmem>>, vector<1x18x100xbf16>
    %185 = vector.shape_cast %184 : vector<1x18x100xbf16> to vector<18x100xbf16>
    %c0_154 = arith.constant 0 : index
    %c0_155 = arith.constant 0 : index
    %186 = vector.load %arg1[%c0_154, %c0_155] : memref<100x32xbf16, #tpu.memory_space<vmem>>, vector<100x32xbf16>
    %cst_156 = arith.constant dense<0.000000e+00> : vector<18x32xf32>
    %187 = tpu.matmul %185, %186, %cst_156 {dimension_numbers = #tpu.dot_dimension_numbers<[1], [0], [0], [1], [0, 0, 1, 1], [], []>} : vector<18x100xbf16>, vector<100x32xbf16>, vector<18x32xf32> -> vector<18x32xf32>
    %188 = arith.addf %187, %2 : vector<18x32xf32>
    %cst_157 = arith.constant 0.000000e+00 : f32
    %189 = vector.broadcast %cst_157 : f32 to vector<18x32xf32>
    %190 = arith.maximumf %188, %189 : vector<18x32xf32>
    %191 = arith.truncf %190 : vector<18x32xf32> to vector<18x32xbf16>
    %c15_158 = arith.constant 15 : index
    %c0_159 = arith.constant 0 : index
    %c0_160 = arith.constant 0 : index
    %192 = vector.load %arg3[%c15_158, %c0_159, %c0_160] : memref<25x32x64xbf16, #tpu.memory_space<vmem>>, vector<1x32x64xbf16>
    %193 = vector.shape_cast %192 : vector<1x32x64xbf16> to vector<32x64xbf16>
    %cst_161 = arith.constant dense<0.000000e+00> : vector<18x64xf32>
    %194 = tpu.matmul %191, %193, %cst_161 {dimension_numbers = #tpu.dot_dimension_numbers<[1], [0], [0], [1], [0, 0, 1, 1], [], []>} : vector<18x32xbf16>, vector<32x64xbf16>, vector<18x64xf32> -> vector<18x64xf32>
    %195 = arith.addf %183, %194 : vector<18x64xf32>
    %c16 = arith.constant 16 : index
    %c0_162 = arith.constant 0 : index
    %c0_163 = arith.constant 0 : index
    %196 = vector.load %arg0[%c16, %c0_162, %c0_163] : memref<25x18x100xbf16, #tpu.memory_space<vmem>>, vector<1x18x100xbf16>
    %197 = vector.shape_cast %196 : vector<1x18x100xbf16> to vector<18x100xbf16>
    %c0_164 = arith.constant 0 : index
    %c0_165 = arith.constant 0 : index
    %198 = vector.load %arg1[%c0_164, %c0_165] : memref<100x32xbf16, #tpu.memory_space<vmem>>, vector<100x32xbf16>
    %cst_166 = arith.constant dense<0.000000e+00> : vector<18x32xf32>
    %199 = tpu.matmul %197, %198, %cst_166 {dimension_numbers = #tpu.dot_dimension_numbers<[1], [0], [0], [1], [0, 0, 1, 1], [], []>} : vector<18x100xbf16>, vector<100x32xbf16>, vector<18x32xf32> -> vector<18x32xf32>
    %200 = arith.addf %199, %2 : vector<18x32xf32>
    %cst_167 = arith.constant 0.000000e+00 : f32
    %201 = vector.broadcast %cst_167 : f32 to vector<18x32xf32>
    %202 = arith.maximumf %200, %201 : vector<18x32xf32>
    %203 = arith.truncf %202 : vector<18x32xf32> to vector<18x32xbf16>
    %c16_168 = arith.constant 16 : index
    %c0_169 = arith.constant 0 : index
    %c0_170 = arith.constant 0 : index
    %204 = vector.load %arg3[%c16_168, %c0_169, %c0_170] : memref<25x32x64xbf16, #tpu.memory_space<vmem>>, vector<1x32x64xbf16>
    %205 = vector.shape_cast %204 : vector<1x32x64xbf16> to vector<32x64xbf16>
    %cst_171 = arith.constant dense<0.000000e+00> : vector<18x64xf32>
    %206 = tpu.matmul %203, %205, %cst_171 {dimension_numbers = #tpu.dot_dimension_numbers<[1], [0], [0], [1], [0, 0, 1, 1], [], []>} : vector<18x32xbf16>, vector<32x64xbf16>, vector<18x64xf32> -> vector<18x64xf32>
    %207 = arith.addf %195, %206 : vector<18x64xf32>
    %c17 = arith.constant 17 : index
    %c0_172 = arith.constant 0 : index
    %c0_173 = arith.constant 0 : index
    %208 = vector.load %arg0[%c17, %c0_172, %c0_173] : memref<25x18x100xbf16, #tpu.memory_space<vmem>>, vector<1x18x100xbf16>
    %209 = vector.shape_cast %208 : vector<1x18x100xbf16> to vector<18x100xbf16>
    %c0_174 = arith.constant 0 : index
    %c0_175 = arith.constant 0 : index
    %210 = vector.load %arg1[%c0_174, %c0_175] : memref<100x32xbf16, #tpu.memory_space<vmem>>, vector<100x32xbf16>
    %cst_176 = arith.constant dense<0.000000e+00> : vector<18x32xf32>
    %211 = tpu.matmul %209, %210, %cst_176 {dimension_numbers = #tpu.dot_dimension_numbers<[1], [0], [0], [1], [0, 0, 1, 1], [], []>} : vector<18x100xbf16>, vector<100x32xbf16>, vector<18x32xf32> -> vector<18x32xf32>
    %212 = arith.addf %211, %2 : vector<18x32xf32>
    %cst_177 = arith.constant 0.000000e+00 : f32
    %213 = vector.broadcast %cst_177 : f32 to vector<18x32xf32>
    %214 = arith.maximumf %212, %213 : vector<18x32xf32>
    %215 = arith.truncf %214 : vector<18x32xf32> to vector<18x32xbf16>
    %c17_178 = arith.constant 17 : index
    %c0_179 = arith.constant 0 : index
    %c0_180 = arith.constant 0 : index
    %216 = vector.load %arg3[%c17_178, %c0_179, %c0_180] : memref<25x32x64xbf16, #tpu.memory_space<vmem>>, vector<1x32x64xbf16>
    %217 = vector.shape_cast %216 : vector<1x32x64xbf16> to vector<32x64xbf16>
    %cst_181 = arith.constant dense<0.000000e+00> : vector<18x64xf32>
    %218 = tpu.matmul %215, %217, %cst_181 {dimension_numbers = #tpu.dot_dimension_numbers<[1], [0], [0], [1], [0, 0, 1, 1], [], []>} : vector<18x32xbf16>, vector<32x64xbf16>, vector<18x64xf32> -> vector<18x64xf32>
    %219 = arith.addf %207, %218 : vector<18x64xf32>
    %c18 = arith.constant 18 : index
    %c0_182 = arith.constant 0 : index
    %c0_183 = arith.constant 0 : index
    %220 = vector.load %arg0[%c18, %c0_182, %c0_183] : memref<25x18x100xbf16, #tpu.memory_space<vmem>>, vector<1x18x100xbf16>
    %221 = vector.shape_cast %220 : vector<1x18x100xbf16> to vector<18x100xbf16>
    %c0_184 = arith.constant 0 : index
    %c0_185 = arith.constant 0 : index
    %222 = vector.load %arg1[%c0_184, %c0_185] : memref<100x32xbf16, #tpu.memory_space<vmem>>, vector<100x32xbf16>
    %cst_186 = arith.constant dense<0.000000e+00> : vector<18x32xf32>
    %223 = tpu.matmul %221, %222, %cst_186 {dimension_numbers = #tpu.dot_dimension_numbers<[1], [0], [0], [1], [0, 0, 1, 1], [], []>} : vector<18x100xbf16>, vector<100x32xbf16>, vector<18x32xf32> -> vector<18x32xf32>
    %224 = arith.addf %223, %2 : vector<18x32xf32>
    %cst_187 = arith.constant 0.000000e+00 : f32
    %225 = vector.broadcast %cst_187 : f32 to vector<18x32xf32>
    %226 = arith.maximumf %224, %225 : vector<18x32xf32>
    %227 = arith.truncf %226 : vector<18x32xf32> to vector<18x32xbf16>
    %c18_188 = arith.constant 18 : index
    %c0_189 = arith.constant 0 : index
    %c0_190 = arith.constant 0 : index
    %228 = vector.load %arg3[%c18_188, %c0_189, %c0_190] : memref<25x32x64xbf16, #tpu.memory_space<vmem>>, vector<1x32x64xbf16>
    %229 = vector.shape_cast %228 : vector<1x32x64xbf16> to vector<32x64xbf16>
    %cst_191 = arith.constant dense<0.000000e+00> : vector<18x64xf32>
    %230 = tpu.matmul %227, %229, %cst_191 {dimension_numbers = #tpu.dot_dimension_numbers<[1], [0], [0], [1], [0, 0, 1, 1], [], []>} : vector<18x32xbf16>, vector<32x64xbf16>, vector<18x64xf32> -> vector<18x64xf32>
    %231 = arith.addf %219, %230 : vector<18x64xf32>
    %c19 = arith.constant 19 : index
    %c0_192 = arith.constant 0 : index
    %c0_193 = arith.constant 0 : index
    %232 = vector.load %arg0[%c19, %c0_192, %c0_193] : memref<25x18x100xbf16, #tpu.memory_space<vmem>>, vector<1x18x100xbf16>
    %233 = vector.shape_cast %232 : vector<1x18x100xbf16> to vector<18x100xbf16>
    %c0_194 = arith.constant 0 : index
    %c0_195 = arith.constant 0 : index
    %234 = vector.load %arg1[%c0_194, %c0_195] : memref<100x32xbf16, #tpu.memory_space<vmem>>, vector<100x32xbf16>
    %cst_196 = arith.constant dense<0.000000e+00> : vector<18x32xf32>
    %235 = tpu.matmul %233, %234, %cst_196 {dimension_numbers = #tpu.dot_dimension_numbers<[1], [0], [0], [1], [0, 0, 1, 1], [], []>} : vector<18x100xbf16>, vector<100x32xbf16>, vector<18x32xf32> -> vector<18x32xf32>
    %236 = arith.addf %235, %2 : vector<18x32xf32>
    %cst_197 = arith.constant 0.000000e+00 : f32
    %237 = vector.broadcast %cst_197 : f32 to vector<18x32xf32>
    %238 = arith.maximumf %236, %237 : vector<18x32xf32>
    %239 = arith.truncf %238 : vector<18x32xf32> to vector<18x32xbf16>
    %c19_198 = arith.constant 19 : index
    %c0_199 = arith.constant 0 : index
    %c0_200 = arith.constant 0 : index
    %240 = vector.load %arg3[%c19_198, %c0_199, %c0_200] : memref<25x32x64xbf16, #tpu.memory_space<vmem>>, vector<1x32x64xbf16>
    %241 = vector.shape_cast %240 : vector<1x32x64xbf16> to vector<32x64xbf16>
    %cst_201 = arith.constant dense<0.000000e+00> : vector<18x64xf32>
    %242 = tpu.matmul %239, %241, %cst_201 {dimension_numbers = #tpu.dot_dimension_numbers<[1], [0], [0], [1], [0, 0, 1, 1], [], []>} : vector<18x32xbf16>, vector<32x64xbf16>, vector<18x64xf32> -> vector<18x64xf32>
    %243 = arith.addf %231, %242 : vector<18x64xf32>
    %c20 = arith.constant 20 : index
    %c0_202 = arith.constant 0 : index
    %c0_203 = arith.constant 0 : index
    %244 = vector.load %arg0[%c20, %c0_202, %c0_203] : memref<25x18x100xbf16, #tpu.memory_space<vmem>>, vector<1x18x100xbf16>
    %245 = vector.shape_cast %244 : vector<1x18x100xbf16> to vector<18x100xbf16>
    %c0_204 = arith.constant 0 : index
    %c0_205 = arith.constant 0 : index
    %246 = vector.load %arg1[%c0_204, %c0_205] : memref<100x32xbf16, #tpu.memory_space<vmem>>, vector<100x32xbf16>
    %cst_206 = arith.constant dense<0.000000e+00> : vector<18x32xf32>
    %247 = tpu.matmul %245, %246, %cst_206 {dimension_numbers = #tpu.dot_dimension_numbers<[1], [0], [0], [1], [0, 0, 1, 1], [], []>} : vector<18x100xbf16>, vector<100x32xbf16>, vector<18x32xf32> -> vector<18x32xf32>
    %248 = arith.addf %247, %2 : vector<18x32xf32>
    %cst_207 = arith.constant 0.000000e+00 : f32
    %249 = vector.broadcast %cst_207 : f32 to vector<18x32xf32>
    %250 = arith.maximumf %248, %249 : vector<18x32xf32>
    %251 = arith.truncf %250 : vector<18x32xf32> to vector<18x32xbf16>
    %c20_208 = arith.constant 20 : index
    %c0_209 = arith.constant 0 : index
    %c0_210 = arith.constant 0 : index
    %252 = vector.load %arg3[%c20_208, %c0_209, %c0_210] : memref<25x32x64xbf16, #tpu.memory_space<vmem>>, vector<1x32x64xbf16>
    %253 = vector.shape_cast %252 : vector<1x32x64xbf16> to vector<32x64xbf16>
    %cst_211 = arith.constant dense<0.000000e+00> : vector<18x64xf32>
    %254 = tpu.matmul %251, %253, %cst_211 {dimension_numbers = #tpu.dot_dimension_numbers<[1], [0], [0], [1], [0, 0, 1, 1], [], []>} : vector<18x32xbf16>, vector<32x64xbf16>, vector<18x64xf32> -> vector<18x64xf32>
    %255 = arith.addf %243, %254 : vector<18x64xf32>
    %c21 = arith.constant 21 : index
    %c0_212 = arith.constant 0 : index
    %c0_213 = arith.constant 0 : index
    %256 = vector.load %arg0[%c21, %c0_212, %c0_213] : memref<25x18x100xbf16, #tpu.memory_space<vmem>>, vector<1x18x100xbf16>
    %257 = vector.shape_cast %256 : vector<1x18x100xbf16> to vector<18x100xbf16>
    %c0_214 = arith.constant 0 : index
    %c0_215 = arith.constant 0 : index
    %258 = vector.load %arg1[%c0_214, %c0_215] : memref<100x32xbf16, #tpu.memory_space<vmem>>, vector<100x32xbf16>
    %cst_216 = arith.constant dense<0.000000e+00> : vector<18x32xf32>
    %259 = tpu.matmul %257, %258, %cst_216 {dimension_numbers = #tpu.dot_dimension_numbers<[1], [0], [0], [1], [0, 0, 1, 1], [], []>} : vector<18x100xbf16>, vector<100x32xbf16>, vector<18x32xf32> -> vector<18x32xf32>
    %260 = arith.addf %259, %2 : vector<18x32xf32>
    %cst_217 = arith.constant 0.000000e+00 : f32
    %261 = vector.broadcast %cst_217 : f32 to vector<18x32xf32>
    %262 = arith.maximumf %260, %261 : vector<18x32xf32>
    %263 = arith.truncf %262 : vector<18x32xf32> to vector<18x32xbf16>
    %c21_218 = arith.constant 21 : index
    %c0_219 = arith.constant 0 : index
    %c0_220 = arith.constant 0 : index
    %264 = vector.load %arg3[%c21_218, %c0_219, %c0_220] : memref<25x32x64xbf16, #tpu.memory_space<vmem>>, vector<1x32x64xbf16>
    %265 = vector.shape_cast %264 : vector<1x32x64xbf16> to vector<32x64xbf16>
    %cst_221 = arith.constant dense<0.000000e+00> : vector<18x64xf32>
    %266 = tpu.matmul %263, %265, %cst_221 {dimension_numbers = #tpu.dot_dimension_numbers<[1], [0], [0], [1], [0, 0, 1, 1], [], []>} : vector<18x32xbf16>, vector<32x64xbf16>, vector<18x64xf32> -> vector<18x64xf32>
    %267 = arith.addf %255, %266 : vector<18x64xf32>
    %c22 = arith.constant 22 : index
    %c0_222 = arith.constant 0 : index
    %c0_223 = arith.constant 0 : index
    %268 = vector.load %arg0[%c22, %c0_222, %c0_223] : memref<25x18x100xbf16, #tpu.memory_space<vmem>>, vector<1x18x100xbf16>
    %269 = vector.shape_cast %268 : vector<1x18x100xbf16> to vector<18x100xbf16>
    %c0_224 = arith.constant 0 : index
    %c0_225 = arith.constant 0 : index
    %270 = vector.load %arg1[%c0_224, %c0_225] : memref<100x32xbf16, #tpu.memory_space<vmem>>, vector<100x32xbf16>
    %cst_226 = arith.constant dense<0.000000e+00> : vector<18x32xf32>
    %271 = tpu.matmul %269, %270, %cst_226 {dimension_numbers = #tpu.dot_dimension_numbers<[1], [0], [0], [1], [0, 0, 1, 1], [], []>} : vector<18x100xbf16>, vector<100x32xbf16>, vector<18x32xf32> -> vector<18x32xf32>
    %272 = arith.addf %271, %2 : vector<18x32xf32>
    %cst_227 = arith.constant 0.000000e+00 : f32
    %273 = vector.broadcast %cst_227 : f32 to vector<18x32xf32>
    %274 = arith.maximumf %272, %273 : vector<18x32xf32>
    %275 = arith.truncf %274 : vector<18x32xf32> to vector<18x32xbf16>
    %c22_228 = arith.constant 22 : index
    %c0_229 = arith.constant 0 : index
    %c0_230 = arith.constant 0 : index
    %276 = vector.load %arg3[%c22_228, %c0_229, %c0_230] : memref<25x32x64xbf16, #tpu.memory_space<vmem>>, vector<1x32x64xbf16>
    %277 = vector.shape_cast %276 : vector<1x32x64xbf16> to vector<32x64xbf16>
    %cst_231 = arith.constant dense<0.000000e+00> : vector<18x64xf32>
    %278 = tpu.matmul %275, %277, %cst_231 {dimension_numbers = #tpu.dot_dimension_numbers<[1], [0], [0], [1], [0, 0, 1, 1], [], []>} : vector<18x32xbf16>, vector<32x64xbf16>, vector<18x64xf32> -> vector<18x64xf32>
    %279 = arith.addf %267, %278 : vector<18x64xf32>
    %c23 = arith.constant 23 : index
    %c0_232 = arith.constant 0 : index
    %c0_233 = arith.constant 0 : index
    %280 = vector.load %arg0[%c23, %c0_232, %c0_233] : memref<25x18x100xbf16, #tpu.memory_space<vmem>>, vector<1x18x100xbf16>
    %281 = vector.shape_cast %280 : vector<1x18x100xbf16> to vector<18x100xbf16>
    %c0_234 = arith.constant 0 : index
    %c0_235 = arith.constant 0 : index
    %282 = vector.load %arg1[%c0_234, %c0_235] : memref<100x32xbf16, #tpu.memory_space<vmem>>, vector<100x32xbf16>
    %cst_236 = arith.constant dense<0.000000e+00> : vector<18x32xf32>
    %283 = tpu.matmul %281, %282, %cst_236 {dimension_numbers = #tpu.dot_dimension_numbers<[1], [0], [0], [1], [0, 0, 1, 1], [], []>} : vector<18x100xbf16>, vector<100x32xbf16>, vector<18x32xf32> -> vector<18x32xf32>
    %284 = arith.addf %283, %2 : vector<18x32xf32>
    %cst_237 = arith.constant 0.000000e+00 : f32
    %285 = vector.broadcast %cst_237 : f32 to vector<18x32xf32>
    %286 = arith.maximumf %284, %285 : vector<18x32xf32>
    %287 = arith.truncf %286 : vector<18x32xf32> to vector<18x32xbf16>
    %c23_238 = arith.constant 23 : index
    %c0_239 = arith.constant 0 : index
    %c0_240 = arith.constant 0 : index
    %288 = vector.load %arg3[%c23_238, %c0_239, %c0_240] : memref<25x32x64xbf16, #tpu.memory_space<vmem>>, vector<1x32x64xbf16>
    %289 = vector.shape_cast %288 : vector<1x32x64xbf16> to vector<32x64xbf16>
    %cst_241 = arith.constant dense<0.000000e+00> : vector<18x64xf32>
    %290 = tpu.matmul %287, %289, %cst_241 {dimension_numbers = #tpu.dot_dimension_numbers<[1], [0], [0], [1], [0, 0, 1, 1], [], []>} : vector<18x32xbf16>, vector<32x64xbf16>, vector<18x64xf32> -> vector<18x64xf32>
    %291 = arith.addf %279, %290 : vector<18x64xf32>
    %c24 = arith.constant 24 : index
    %c0_242 = arith.constant 0 : index
    %c0_243 = arith.constant 0 : index
    %292 = vector.load %arg0[%c24, %c0_242, %c0_243] : memref<25x18x100xbf16, #tpu.memory_space<vmem>>, vector<1x18x100xbf16>
    %293 = vector.shape_cast %292 : vector<1x18x100xbf16> to vector<18x100xbf16>
    %c0_244 = arith.constant 0 : index
    %c0_245 = arith.constant 0 : index
    %294 = vector.load %arg1[%c0_244, %c0_245] : memref<100x32xbf16, #tpu.memory_space<vmem>>, vector<100x32xbf16>
    %cst_246 = arith.constant dense<0.000000e+00> : vector<18x32xf32>
    %295 = tpu.matmul %293, %294, %cst_246 {dimension_numbers = #tpu.dot_dimension_numbers<[1], [0], [0], [1], [0, 0, 1, 1], [], []>} : vector<18x100xbf16>, vector<100x32xbf16>, vector<18x32xf32> -> vector<18x32xf32>
    %296 = arith.addf %295, %2 : vector<18x32xf32>
    %cst_247 = arith.constant 0.000000e+00 : f32
    %297 = vector.broadcast %cst_247 : f32 to vector<18x32xf32>
    %298 = arith.maximumf %296, %297 : vector<18x32xf32>
    %299 = arith.truncf %298 : vector<18x32xf32> to vector<18x32xbf16>
    %c24_248 = arith.constant 24 : index
    %c0_249 = arith.constant 0 : index
    %c0_250 = arith.constant 0 : index
    %300 = vector.load %arg3[%c24_248, %c0_249, %c0_250] : memref<25x32x64xbf16, #tpu.memory_space<vmem>>, vector<1x32x64xbf16>
    %301 = vector.shape_cast %300 : vector<1x32x64xbf16> to vector<32x64xbf16>
    %cst_251 = arith.constant dense<0.000000e+00> : vector<18x64xf32>
    %302 = tpu.matmul %299, %301, %cst_251 {dimension_numbers = #tpu.dot_dimension_numbers<[1], [0], [0], [1], [0, 0, 1, 1], [], []>} : vector<18x32xbf16>, vector<32x64xbf16>, vector<18x64xf32> -> vector<18x64xf32>
    %303 = arith.addf %291, %302 : vector<18x64xf32>
    %c0_252 = arith.constant 0 : index
    %c0_253 = arith.constant 0 : index
    %304 = vector.load %arg4[%c0_252, %c0_253] : memref<1x64xf32, #tpu.memory_space<vmem>>, vector<1x64xf32>
    %305 = vector.broadcast %304 : vector<1x64xf32> to vector<18x64xf32>
    %306 = arith.addf %303, %305 : vector<18x64xf32>
    %cst_254 = arith.constant 0.000000e+00 : f32
    %307 = vector.broadcast %cst_254 : f32 to vector<18x64xf32>
    %308 = arith.maximumf %306, %307 : vector<18x64xf32>
    %c0_255 = arith.constant 0 : index
    %c0_256 = arith.constant 0 : index
    %309 = vector.load %arg10[%c0_255, %c0_256] : memref<18x64xf32, #tpu.memory_space<vmem>>, vector<18x64xf32>
    tpu.vector_store %arg10[%c0_255, %c0_256], %308 {strides = array<i32>} : memref<18x64xf32, #tpu.memory_space<vmem>>, vector<18x64xf32>,
    %cst_257 = arith.constant 0.000000e+00 : f32
    %310 = vector.broadcast %cst_257 : f32 to vector<2x128xf32>
    %c0_258 = arith.constant 0 : index
    %c0_259 = arith.constant 0 : index
    %311 = vector.load %arg10[%c0_258, %c0_259] : memref<18x64xf32, #tpu.memory_space<vmem>>, vector<2x64xf32>
    %312 = arith.truncf %311 : vector<2x64xf32> to vector<2x64xbf16>
    %c0_260 = arith.constant 0 : index
    %c0_261 = arith.constant 0 : index
    %c0_262 = arith.constant 0 : index
    %313 = vector.load %arg5[%c0_260, %c0_261, %c0_262] : memref<9x64x128xbf16, #tpu.memory_space<vmem>>, vector<1x64x128xbf16>
    %314 = vector.shape_cast %313 : vector<1x64x128xbf16> to vector<64x128xbf16>
    %cst_263 = arith.constant dense<0.000000e+00> : vector<2x128xf32>
    %315 = tpu.matmul %312, %314, %cst_263 {dimension_numbers = #tpu.dot_dimension_numbers<[1], [0], [0], [1], [0, 0, 1, 1], [], []>} : vector<2x64xbf16>, vector<64x128xbf16>, vector<2x128xf32> -> vector<2x128xf32>
    %316 = arith.addf %310, %315 : vector<2x128xf32>
    %c2_264 = arith.constant 2 : index
    %c0_265 = arith.constant 0 : index
    %317 = vector.load %arg10[%c2_264, %c0_265] : memref<18x64xf32, #tpu.memory_space<vmem>>, vector<2x64xf32>
    %318 = arith.truncf %317 : vector<2x64xf32> to vector<2x64xbf16>
    %c1_266 = arith.constant 1 : index
    %c0_267 = arith.constant 0 : index
    %c0_268 = arith.constant 0 : index
    %319 = vector.load %arg5[%c1_266, %c0_267, %c0_268] : memref<9x64x128xbf16, #tpu.memory_space<vmem>>, vector<1x64x128xbf16>
    %320 = vector.shape_cast %319 : vector<1x64x128xbf16> to vector<64x128xbf16>
    %cst_269 = arith.constant dense<0.000000e+00> : vector<2x128xf32>
    %321 = tpu.matmul %318, %320, %cst_269 {dimension_numbers = #tpu.dot_dimension_numbers<[1], [0], [0], [1], [0, 0, 1, 1], [], []>} : vector<2x64xbf16>, vector<64x128xbf16>, vector<2x128xf32> -> vector<2x128xf32>
    %322 = arith.addf %316, %321 : vector<2x128xf32>
    %c4_270 = arith.constant 4 : index
    %c0_271 = arith.constant 0 : index
    %323 = vector.load %arg10[%c4_270, %c0_271] : memref<18x64xf32, #tpu.memory_space<vmem>>, vector<2x64xf32>
    %324 = arith.truncf %323 : vector<2x64xf32> to vector<2x64xbf16>
    %c2_272 = arith.constant 2 : index
    %c0_273 = arith.constant 0 : index
    %c0_274 = arith.constant 0 : index
    %325 = vector.load %arg5[%c2_272, %c0_273, %c0_274] : memref<9x64x128xbf16, #tpu.memory_space<vmem>>, vector<1x64x128xbf16>
    %326 = vector.shape_cast %325 : vector<1x64x128xbf16> to vector<64x128xbf16>
    %cst_275 = arith.constant dense<0.000000e+00> : vector<2x128xf32>
    %327 = tpu.matmul %324, %326, %cst_275 {dimension_numbers = #tpu.dot_dimension_numbers<[1], [0], [0], [1], [0, 0, 1, 1], [], []>} : vector<2x64xbf16>, vector<64x128xbf16>, vector<2x128xf32> -> vector<2x128xf32>
    %328 = arith.addf %322, %327 : vector<2x128xf32>
    %c6_276 = arith.constant 6 : index
    %c0_277 = arith.constant 0 : index
    %329 = vector.load %arg10[%c6_276, %c0_277] : memref<18x64xf32, #tpu.memory_space<vmem>>, vector<2x64xf32>
    %330 = arith.truncf %329 : vector<2x64xf32> to vector<2x64xbf16>
    %c3_278 = arith.constant 3 : index
    %c0_279 = arith.constant 0 : index
    %c0_280 = arith.constant 0 : index
    %331 = vector.load %arg5[%c3_278, %c0_279, %c0_280] : memref<9x64x128xbf16, #tpu.memory_space<vmem>>, vector<1x64x128xbf16>
    %332 = vector.shape_cast %331 : vector<1x64x128xbf16> to vector<64x128xbf16>
    %cst_281 = arith.constant dense<0.000000e+00> : vector<2x128xf32>
    %333 = tpu.matmul %330, %332, %cst_281 {dimension_numbers = #tpu.dot_dimension_numbers<[1], [0], [0], [1], [0, 0, 1, 1], [], []>} : vector<2x64xbf16>, vector<64x128xbf16>, vector<2x128xf32> -> vector<2x128xf32>
    %334 = arith.addf %328, %333 : vector<2x128xf32>
    %c8_282 = arith.constant 8 : index
    %c0_283 = arith.constant 0 : index
    %335 = vector.load %arg10[%c8_282, %c0_283] : memref<18x64xf32, #tpu.memory_space<vmem>>, vector<2x64xf32>
    %336 = arith.truncf %335 : vector<2x64xf32> to vector<2x64xbf16>
    %c4_284 = arith.constant 4 : index
    %c0_285 = arith.constant 0 : index
    %c0_286 = arith.constant 0 : index
    %337 = vector.load %arg5[%c4_284, %c0_285, %c0_286] : memref<9x64x128xbf16, #tpu.memory_space<vmem>>, vector<1x64x128xbf16>
    %338 = vector.shape_cast %337 : vector<1x64x128xbf16> to vector<64x128xbf16>
    %cst_287 = arith.constant dense<0.000000e+00> : vector<2x128xf32>
    %339 = tpu.matmul %336, %338, %cst_287 {dimension_numbers = #tpu.dot_dimension_numbers<[1], [0], [0], [1], [0, 0, 1, 1], [], []>} : vector<2x64xbf16>, vector<64x128xbf16>, vector<2x128xf32> -> vector<2x128xf32>
    %340 = arith.addf %334, %339 : vector<2x128xf32>
    %c10_288 = arith.constant 10 : index
    %c0_289 = arith.constant 0 : index
    %341 = vector.load %arg10[%c10_288, %c0_289] : memref<18x64xf32, #tpu.memory_space<vmem>>, vector<2x64xf32>
    %342 = arith.truncf %341 : vector<2x64xf32> to vector<2x64xbf16>
    %c5_290 = arith.constant 5 : index
    %c0_291 = arith.constant 0 : index
    %c0_292 = arith.constant 0 : index
    %343 = vector.load %arg5[%c5_290, %c0_291, %c0_292] : memref<9x64x128xbf16, #tpu.memory_space<vmem>>, vector<1x64x128xbf16>
    %344 = vector.shape_cast %343 : vector<1x64x128xbf16> to vector<64x128xbf16>
    %cst_293 = arith.constant dense<0.000000e+00> : vector<2x128xf32>
    %345 = tpu.matmul %342, %344, %cst_293 {dimension_numbers = #tpu.dot_dimension_numbers<[1], [0], [0], [1], [0, 0, 1, 1], [], []>} : vector<2x64xbf16>, vector<64x128xbf16>, vector<2x128xf32> -> vector<2x128xf32>
    %346 = arith.addf %340, %345 : vector<2x128xf32>
    %c12_294 = arith.constant 12 : index
    %c0_295 = arith.constant 0 : index
    %347 = vector.load %arg10[%c12_294, %c0_295] : memref<18x64xf32, #tpu.memory_space<vmem>>, vector<2x64xf32>
    %348 = arith.truncf %347 : vector<2x64xf32> to vector<2x64xbf16>
    %c6_296 = arith.constant 6 : index
    %c0_297 = arith.constant 0 : index
    %c0_298 = arith.constant 0 : index
    %349 = vector.load %arg5[%c6_296, %c0_297, %c0_298] : memref<9x64x128xbf16, #tpu.memory_space<vmem>>, vector<1x64x128xbf16>
    %350 = vector.shape_cast %349 : vector<1x64x128xbf16> to vector<64x128xbf16>
    %cst_299 = arith.constant dense<0.000000e+00> : vector<2x128xf32>
    %351 = tpu.matmul %348, %350, %cst_299 {dimension_numbers = #tpu.dot_dimension_numbers<[1], [0], [0], [1], [0, 0, 1, 1], [], []>} : vector<2x64xbf16>, vector<64x128xbf16>, vector<2x128xf32> -> vector<2x128xf32>
    %352 = arith.addf %346, %351 : vector<2x128xf32>
    %c14_300 = arith.constant 14 : index
    %c0_301 = arith.constant 0 : index
    %353 = vector.load %arg10[%c14_300, %c0_301] : memref<18x64xf32, #tpu.memory_space<vmem>>, vector<2x64xf32>
    %354 = arith.truncf %353 : vector<2x64xf32> to vector<2x64xbf16>
    %c7_302 = arith.constant 7 : index
    %c0_303 = arith.constant 0 : index
    %c0_304 = arith.constant 0 : index
    %355 = vector.load %arg5[%c7_302, %c0_303, %c0_304] : memref<9x64x128xbf16, #tpu.memory_space<vmem>>, vector<1x64x128xbf16>
    %356 = vector.shape_cast %355 : vector<1x64x128xbf16> to vector<64x128xbf16>
    %cst_305 = arith.constant dense<0.000000e+00> : vector<2x128xf32>
    %357 = tpu.matmul %354, %356, %cst_305 {dimension_numbers = #tpu.dot_dimension_numbers<[1], [0], [0], [1], [0, 0, 1, 1], [], []>} : vector<2x64xbf16>, vector<64x128xbf16>, vector<2x128xf32> -> vector<2x128xf32>
    %358 = arith.addf %352, %357 : vector<2x128xf32>
    %c16_306 = arith.constant 16 : index
    %c0_307 = arith.constant 0 : index
    %359 = vector.load %arg10[%c16_306, %c0_307] : memref<18x64xf32, #tpu.memory_space<vmem>>, vector<2x64xf32>
    %360 = arith.truncf %359 : vector<2x64xf32> to vector<2x64xbf16>
    %c8_308 = arith.constant 8 : index
    %c0_309 = arith.constant 0 : index
    %c0_310 = arith.constant 0 : index
    %361 = vector.load %arg5[%c8_308, %c0_309, %c0_310] : memref<9x64x128xbf16, #tpu.memory_space<vmem>>, vector<1x64x128xbf16>
    %362 = vector.shape_cast %361 : vector<1x64x128xbf16> to vector<64x128xbf16>
    %cst_311 = arith.constant dense<0.000000e+00> : vector<2x128xf32>
    %363 = tpu.matmul %360, %362, %cst_311 {dimension_numbers = #tpu.dot_dimension_numbers<[1], [0], [0], [1], [0, 0, 1, 1], [], []>} : vector<2x64xbf16>, vector<64x128xbf16>, vector<2x128xf32> -> vector<2x128xf32>
    %364 = arith.addf %358, %363 : vector<2x128xf32>
    %c0_312 = arith.constant 0 : index
    %c0_313 = arith.constant 0 : index
    %365 = vector.load %arg6[%c0_312, %c0_313] : memref<1x128xf32, #tpu.memory_space<vmem>>, vector<1x128xf32>
    %366 = vector.broadcast %365 : vector<1x128xf32> to vector<2x128xf32>
    %367 = arith.addf %364, %366 : vector<2x128xf32>
    %cst_314 = arith.constant 0.000000e+00 : f32
    %368 = vector.broadcast %cst_314 : f32 to vector<2x128xf32>
    %369 = arith.maximumf %367, %368 : vector<2x128xf32>
    %370 = arith.truncf %369 : vector<2x128xf32> to vector<2x128xbf16>
    %c0_315 = arith.constant 0 : index
    %c0_316 = arith.constant 0 : index
    %371 = vector.load %arg7[%c0_315, %c0_316] : memref<128x128xbf16, #tpu.memory_space<vmem>>, vector<128x128xbf16>
    %cst_317 = arith.constant dense<0.000000e+00> : vector<2x128xf32>
    %372 = tpu.matmul %370, %371, %cst_317 {dimension_numbers = #tpu.dot_dimension_numbers<[1], [0], [0], [1], [0, 0, 1, 1], [], []>} : vector<2x128xbf16>, vector<128x128xbf16>, vector<2x128xf32> -> vector<2x128xf32>
    %c0_318 = arith.constant 0 : index
    %c0_319 = arith.constant 0 : index
    %373 = vector.load %arg8[%c0_318, %c0_319] : memref<1x128xf32, #tpu.memory_space<vmem>>, vector<1x128xf32>
    %374 = vector.broadcast %373 : vector<1x128xf32> to vector<2x128xf32>
    %375 = arith.addf %372, %374 : vector<2x128xf32>
    %c0_320 = arith.constant 0 : index
    %c0_321 = arith.constant 0 : index
    %376 = vector.load %arg9[%c0_320, %c0_321] : memref<2x128xf32, #tpu.memory_space<vmem>>, vector<2x128xf32>
    tpu.vector_store %arg9[%c0_320, %c0_321], %375 {strides = array<i32>} : memref<2x128xf32, #tpu.memory_space<vmem>>, vector<2x128xf32>,
    return
  }
}

</mosaic_0001>

<bundles_post_ra>
// kernel: forward.1
= control target key start
LH: loop header
LB: loop body
LE: loop exit
PB: predicated region body
PF: predicated region fallthrough
CT: control target
= control target key end

     0   :  { %vm110_vm0 = vcmask 1041408   ;;  %vm103_vm1 = vcmask 818176   ;;  %vm259_vm2 = vcmask 261120   ;;  %vm6415_vm3 = vmmov 0   ;;  %s7657_s1 = inlined_call_operand.vmem [shape: bf16[100,32], index: 1, kind: input, shape index: {}]   ;;  %s7658_s0 = inlined_call_operand.vmem [shape: bf16[25,18,100], index: 0, kind: input, shape index: {}]   ;;  %s7659_s3 = inlined_call_operand.vmem [shape: bf16[25,32,64], index: 3, kind: input, shape index: {}]   ;;  %s7660_s2 = inlined_call_operand.vmem [shape: f32[1,32], index: 2, kind: input, shape index: {}]   ;;  %s7661_s5 = inlined_call_operand.vmem [shape: bf16[9,64,128], index: 5, kind: input, shape index: {}]   ;;  %s7662_s4 = inlined_call_operand.vmem [shape: f32[1,64], index: 4, kind: input, shape index: {}]   ;;  %s7663_s7 = inlined_call_operand.vmem [shape: bf16[128,128], index: 7, kind: input, shape index: {}]   ;;  %s7664_s6 = inlined_call_operand.vmem [shape: f32[1,128], index: 6, kind: input, shape index: {}]   ;;  %s7665_s8 = inlined_call_operand.vmem [shape: f32[1,128], index: 8, kind: input, shape index: {}]   ;;  %s7666_s9 = inlined_call_operand.vmem [shape: f32[2,128], index: 9, kind: output, shape index: {}]  }
   0x1   :  { %v6469_v0 = vld [vmem:[%s7657_s1 + $0x28] sm:$0xff]   ;;  %v6474_v1 = vld [vmem:[%s7657_s1 + $0x30] ss:$0 sps:$4 sm:$0x33]   ;;  %v6254_v2 = vld [vmem:[%s7658_s0] sm:$0xff]   ;;  %vm3731_vm4 = vcmask 517120  }
   0x2   :  { %6220 = vmatprep.subr.msk.bf16.mxu0 %vm110_vm0, %v6474_v1  ;;  %6221 = vmatprep.subr.msk.bf16.mxu1 %vm110_vm0, %v6474_v1  ;;  %v6485_v3 = vsel %vm110_vm0, %v6474_v1, 0  ;;  %v6255_v4 = vld [vmem:[%s7658_s0 + $0xc] sm:$0xff]   ;;  %v6495_v5 = vld [vmem:[%s7657_s1 + $0x20] sm:$0xff]   ;;  %v6504_v6 = vld [vmem:[%s7657_s1 + $0x18] sm:$0xff]   ;;  %vm3728_vm5 = vcmask 523264  }
   0x3   :  { %5443 = vmatpush3.bf16.msra.mxu0 %v6485_v3  ;;  %5461 = vmatpush3.bf16.msra.mxu1 %v6485_v3  ;;  %v6513_v7 = vld [vmem:[%s7657_s1 + $0x10] sm:$0xff]   ;;  %v6522_v8 = vld [vmem:[%s7657_s1 + $0x8] sm:$0xff]   ;;  %v6531_v9 = vld [vmem:[%s7657_s1] sm:$0xff]  }
   0x4   :  { %5444 = vmatprep.subr.bf16.mxu0 %v6469_v0  ;;  %5462 = vmatprep.subr.bf16.mxu1 %v6469_v0  ;;  %v6256_v10 = vld [vmem:[%s7658_s0 + $0x8] ss:$0 sps:$4 sm:$0x11]   ;;  %v6257_v11 = vld [vmem:[%s7658_s0 + $0x14] ss:$0 sps:$4 sm:$0x11]  }
   0x5   :  { %5456 = vmatprep.mubr.msk.bf16.mxu0 %vm103_vm1, %v6254_v2  ;;  %5474 = vmatprep.mubr.msk.bf16.mxu1 %vm103_vm1, %v6255_v4  ;;  %v6258_v12 = vld [vmem:[%s7659_s3 + $0x18] sm:$0xff]   ;;  %v6259_v13 = vld [vmem:[%s7659_s3 + $0x8] sm:$0xff]   ;;  %v6260_v14 = vld [vmem:[%s7659_s3 + $0x10] sm:$0xff]  }
   0x6   :  { %v6261_v15 = vld [vmem:[%s7659_s3] sm:$0xff]   ;;  %v6262_v40 = vld [vmem:[%s7658_s0 + $0x18] sm:$0xff]   ;;  %v6264_v43 = vld [vmem:[%s7659_s3 + $0x28] sm:$0xff]  }
   0x7   :  { %5445 = vmatpush3.bf16.msra.mxu0 %v6469_v0  ;;  %5463 = vmatpush3.bf16.msra.mxu1 %v6469_v0  ;;  %v6568_v18 = vld [vmem:[%s7660_s2] ss:$0 sm:$0xff]  ;;  %v6266_v4 = vld [vmem:[%s7658_s0 + $0x24] sm:$0xff]  }
   0x8   :  { %5446 = vmatprep.subr.bf16.mxu0 %v6495_v5  ;;  %5464 = vmatprep.subr.bf16.mxu1 %v6495_v5  ;;  %v6263_v42 = vld [vmem:[%s7658_s0 + $0x20] ss:$0 sps:$4 sm:$0x11]  }
   0x9   :  { %v6265_v44 = vld [vmem:[%s7659_s3 + $0x20] sm:$0xff]  }
   0xb   :  { %5447 = vmatpush3.bf16.msra.mxu0 %v6495_v5  ;;  %5465 = vmatpush3.bf16.msra.mxu1 %v6495_v5 }
   0xc   :  { %5448 = vmatprep.subr.bf16.mxu0 %v6504_v6  ;;  %5466 = vmatprep.subr.bf16.mxu1 %v6504_v6 }
   0xf   :  { %5449 = vmatpush3.bf16.msra.mxu0 %v6504_v6  ;;  %5467 = vmatpush3.bf16.msra.mxu1 %v6504_v6 }
  0x10   :  { %5450 = vmatprep.subr.bf16.mxu0 %v6513_v7  ;;  %5468 = vmatprep.subr.bf16.mxu1 %v6513_v7 }
  0x13   :  { %5451 = vmatpush3.bf16.msra.mxu0 %v6513_v7  ;;  %5469 = vmatpush3.bf16.msra.mxu1 %v6513_v7 }
  0x14   :  { %5452 = vmatprep.subr.bf16.mxu0 %v6522_v8  ;;  %5470 = vmatprep.subr.bf16.mxu1 %v6522_v8 }
  0x17   :  { %5453 = vmatpush3.bf16.msra.mxu0 %v6522_v8  ;;  %5471 = vmatpush3.bf16.msra.mxu1 %v6522_v8 }
  0x18   :  { %5454 = vmatprep.subr.bf16.mxu0 %v6531_v9  ;;  %5472 = vmatprep.subr.bf16.mxu1 %v6531_v9 }
  0x1b   :  { %5455 = vmatpush3.bf16.msra.mxu0 %v6531_v9  ;;  %5473 = vmatpush3.bf16.msra.mxu1 %v6531_v9 }
  0x1c   :  { %5478 = vmatprep.subr.bf16.mxu0 %v6258_v12  ;;  %5486 = vmatprep.subr.bf16.mxu1 %v6259_v13 }
  0x1e   :  { %5457 = vmatmul.mubr.msk.bf16.vlgmr.msra.gmra.mxu0 %vm103_vm1, %v6256_v10  ;;  %5475 = vmatmul.mubr.msk.bf16.vlgmr.msra.gmra.mxu1 %vm103_vm1, %v6257_v11  ;;  %v6267_v11 = vld [vmem:[%s7658_s0 + $0x2c] ss:$0 sps:$4 sm:$0x11]  }
  0x1f   :  { %5479 = vmatpush3.bf16.msra.mxu0 %v6258_v12  ;;  %5487 = vmatpush3.bf16.msra.mxu1 %v6259_v13  ;;  %v6268_v12 = vld [vmem:[%s7659_s3 + $0x38] sm:$0xff]   ;;  %v6269_v13 = vld [vmem:[%s7659_s3 + $0x30] sm:$0xff]  }
  0x20   :  { %5480 = vmatprep.subr.bf16.mxu0 %v6260_v14  ;;  %5488 = vmatprep.subr.bf16.mxu1 %v6261_v15 }
  0x23   :  { %5481 = vmatpush3.bf16.msra.mxu0 %v6260_v14  ;;  %5489 = vmatpush3.bf16.msra.mxu1 %v6261_v15 }
  0x24   :  { %6222 = vmatprep.subr.msk.bf16.mxu0 %vm110_vm0, %v6474_v1  ;;  %5512 = vmatprep.subr.bf16.mxu1 %v6264_v43 }
  0xde   :  { %v5458_v16 = vpop.f32.mrf.mxu0  ;;  %v5476_v17 = vpop.f32.mrf.mxu1 }
  0xdf   :  { %v157_v19 = vadd.f32 %v5458_v16, %v6568_v18  ;;  %v232_v23 = vadd.f32 %v5476_v17, %v6568_v18 }
  0xe0   :  { %v148_v20 = vpop.f32.mrf.mxu0  ;;  %v223_v21 = vpop.f32.mrf.mxu1 }
  0xe1   :  { %v149_v22 = vadd.f32 %v6568_v18, %v148_v20  ;;  %v224_v26 = vadd.f32 %v6568_v18, %v223_v21  ;;  %v164_v27 = vmax.f32 %v157_v19, 0.0  ;;  %v239_v33 = vmax.f32 %v232_v23, 0.0 }
  0xe2   :  { %v5459_v24 = vpop.f32.mrf.mxu0  ;;  %v5477_v25 = vpop.f32.mrf.mxu1 }
  0xe3   :  { %v162_v30 = vmax.f32 %v149_v22, 0.0  ;;  %v237_v34 = vmax.f32 %v224_v26, 0.0  ;;  %v166_v37 = vpack.c.bf16 %v164_v27, %v164_v27  ;;  %v241_v41 = vpack.c.bf16 %v239_v33, %v239_v33  ;;  %v6270_v33 = vld [vmem:[%s7658_s0 + $0x30] sm:$0xff]  }
  0xe4   :  { %v151_v28 = vpop.f32.mrf.mxu0  ;;  %v226_v29 = vpop.f32.mrf.mxu1 }
  0xe5   :  { %v152_v31 = vadd.f32 %v6568_v18, %v151_v28  ;;  %v227_v32 = vadd.f32 %v6568_v18, %v226_v29 }
  0xe7   :  { %v163_v35 = vmax.f32 %v152_v31, 0.0  ;;  %v238_v36 = vmax.f32 %v227_v32, 0.0 }
  0xe9   :  { %v165_v38 = vpack.c.bf16 %v163_v35, %v162_v30  ;;  %v240_v39 = vpack.c.bf16 %v238_v36, %v237_v34  ;;  %v6271_v35 = vld [vmem:[%s7658_s0 + $0x38] ss:$0 sps:$4 sm:$0x11]   ;;  %v6272_v36 = vld [vmem:[%s7659_s3 + $0x48] sm:$0xff]  }
  0xeb   :  { %5482 = vmatprep.mubr.msk.bf16.mxu0 %vm259_vm2, %v240_v39  ;;  %5490 = vmatprep.mubr.msk.bf16.mxu1 %vm259_vm2, %v165_v38 }
  0xec   :  { %5483 = vmatmul.mubr.msk.bf16.vlgmr.msra.gmra.mxu0 %vm259_vm2, %v241_v41  ;;  %5491 = vmatmul.mubr.msk.bf16.vlgmr.msra.gmra.mxu1 %vm259_vm2, %v166_v37  ;;  %v6273_v37 = vld [vmem:[%s7659_s3 + $0x40] sm:$0xff]  }
  0xed   :  { %5495 = vmatpush3.bf16.msra.mxu0 %v6485_v3  ;;  %5508 = vmatprep.mubr.msk.bf16.mxu0 %vm103_vm1, %v6262_v40 }
  0xee   :  { %5496 = vmatprep.subr.bf16.mxu0 %v6469_v0  ;;  %5513 = vmatpush3.bf16.msra.mxu1 %v6264_v43 }
  0xef   :  { %5514 = vmatprep.subr.bf16.mxu1 %v6265_v44 }
  0xf1   :  { %5497 = vmatpush3.bf16.msra.mxu0 %v6469_v0 }
  0xf2   :  { %5498 = vmatprep.subr.bf16.mxu0 %v6495_v5  ;;  %5515 = vmatpush3.bf16.msra.mxu1 %v6265_v44 }
  0xf3   :  { %6223 = vmatprep.subr.msk.bf16.mxu1 %vm110_vm0, %v6474_v1 }
  0xf5   :  { %5499 = vmatpush3.bf16.msra.mxu0 %v6495_v5 }
  0xf6   :  { %5500 = vmatprep.subr.bf16.mxu0 %v6504_v6 }
  0xf9   :  { %5501 = vmatpush3.bf16.msra.mxu0 %v6504_v6 }
  0xfa   :  { %5502 = vmatprep.subr.bf16.mxu0 %v6513_v7 }
  0xfd   :  { %5503 = vmatpush3.bf16.msra.mxu0 %v6513_v7 }
  0xfe   :  { %5504 = vmatprep.subr.bf16.mxu0 %v6522_v8 }
 0x101   :  { %5505 = vmatpush3.bf16.msra.mxu0 %v6522_v8 }
 0x102   :  { %5506 = vmatprep.subr.bf16.mxu0 %v6531_v9 }
 0x105   :  { %5507 = vmatpush3.bf16.msra.mxu0 %v6531_v9 }
 0x106   :  { %5538 = vmatprep.subr.bf16.mxu0 %v6268_v12 }
 0x108   :  { %5509 = vmatmul.mubr.msk.bf16.vlgmr.msra.gmra.mxu0 %vm103_vm1, %v6263_v42 }
 0x109   :  { %5539 = vmatpush3.bf16.msra.mxu0 %v6268_v12 }
 0x10a   :  { %5540 = vmatprep.subr.bf16.mxu0 %v6269_v13 }
 0x10d   :  { %5541 = vmatpush3.bf16.msra.mxu0 %v6269_v13 }
 0x10e   :  { %6224 = vmatprep.subr.msk.bf16.mxu0 %vm110_vm0, %v6474_v1 }
 0x1ac   :  { %v5484_v45 = vpop.f32.mrf.mxu0  ;;  %v5492_v46 = vpop.f32.mrf.mxu1 }
 0x1ad   :  { %v375_v47 = vadd.f32 %v5492_v46, %v5484_v45 }
 0x1ae   :  { %v300_v48 = vpop.f32.mrf.mxu0  ;;  %v366_v49 = vpop.f32.mrf.mxu1 }
 0x1af   :  { %v367_v50 = vadd.f32 %v366_v49, %v300_v48 }
 0x1b0   :  { %v5485_v51 = vpop.f32.mrf.mxu0  ;;  %v5493_v52 = vpop.f32.mrf.mxu1 }
 0x1b2   :  { %v6609_v53 = vpop.f32.mrf.mxu0  ;;  %v369_v14 = vpop.f32.mrf.mxu1 }
 0x1b3   :  { %v370_v41 = vadd.f32 %v369_v14, %v6609_v53  ;;  %v6274_v53 = vld [vmem:[%s7658_s0 + $0x3c] sm:$0xff]  }
 0x1c8   :  { %v5510_v54 = vpop.f32.mrf.mxu0 }
 0x1c9   :  { %v441_v56 = vadd.f32 %v5510_v54, %v6568_v18 }
 0x1ca   :  { %v432_v55 = vpop.f32.mrf.mxu0 }
 0x1cb   :  { %v433_v58 = vadd.f32 %v6568_v18, %v432_v55  ;;  %v448_v61 = vmax.f32 %v441_v56, 0.0 }
 0x1cc   :  { %v5511_v57 = vpop.f32.mrf.mxu0 }
 0x1cd   :  { %v446_v62 = vmax.f32 %v433_v58, 0.0  ;;  %v450_v10 = vpack.c.bf16 %v448_v61, %v448_v61  ;;  %v6276_v61 = vld [vmem:[%s7659_s3 + $0x58] sm:$0xff]  }
 0x1ce   :  { %v435_v59 = vpop.f32.mrf.mxu0 }
 0x1cf   :  { %v436_v60 = vadd.f32 %v6568_v18, %v435_v59 }
 0x1d1   :  { %v447_v63 = vmax.f32 %v436_v60, 0.0  ;;  %v6275_v60 = vld [vmem:[%s7658_s0 + $0x44] ss:$0 sps:$4 sm:$0x11]  }
 0x1d3   :  { %v449_v2 = vpack.c.bf16 %v447_v63, %v446_v62  ;;  %v6277_v62 = vld [vmem:[%s7659_s3 + $0x50] sm:$0xff]  }
 0x1d5   :  { %5516 = vmatprep.mubr.msk.bf16.mxu1 %vm259_vm2, %v449_v2 }
 0x1d6   :  { %5517 = vmatmul.mubr.msk.bf16.vlgmr.msra.gmra.mxu1 %vm259_vm2, %v450_v10 }
 0x1d7   :  { %5521 = vmatpush3.bf16.msra.mxu1 %v6485_v3  ;;  %5534 = vmatprep.mubr.msk.bf16.mxu1 %vm103_vm1, %v6266_v4 }
 0x1d8   :  { %5522 = vmatprep.subr.bf16.mxu1 %v6469_v0 }
 0x1db   :  { %5523 = vmatpush3.bf16.msra.mxu1 %v6469_v0 }
 0x1dc   :  { %5524 = vmatprep.subr.bf16.mxu1 %v6495_v5 }
 0x1df   :  { %5525 = vmatpush3.bf16.msra.mxu1 %v6495_v5 }
 0x1e0   :  { %5526 = vmatprep.subr.bf16.mxu1 %v6504_v6 }
 0x1e3   :  { %5527 = vmatpush3.bf16.msra.mxu1 %v6504_v6 }
 0x1e4   :  { %5528 = vmatprep.subr.bf16.mxu1 %v6513_v7 }
 0x1e7   :  { %5529 = vmatpush3.bf16.msra.mxu1 %v6513_v7 }
 0x1e8   :  { %5530 = vmatprep.subr.bf16.mxu1 %v6522_v8 }
 0x1eb   :  { %5531 = vmatpush3.bf16.msra.mxu1 %v6522_v8 }
 0x1ec   :  { %5532 = vmatprep.subr.bf16.mxu1 %v6531_v9 }
 0x1ef   :  { %5533 = vmatpush3.bf16.msra.mxu1 %v6531_v9 }
 0x1f0   :  { %5564 = vmatprep.subr.bf16.mxu1 %v6272_v36 }
 0x1f2   :  { %5535 = vmatmul.mubr.msk.bf16.vlgmr.msra.gmra.mxu1 %vm103_vm1, %v6267_v11 }
 0x1f3   :  { %5565 = vmatpush3.bf16.msra.mxu1 %v6272_v36 }
 0x1f4   :  { %5566 = vmatprep.subr.bf16.mxu1 %v6273_v37 }
 0x1f7   :  { %5567 = vmatpush3.bf16.msra.mxu1 %v6273_v37 }
 0x1f8   :  { %6225 = vmatprep.subr.msk.bf16.mxu1 %vm110_vm0, %v6474_v1 }
 0x296   :  { %v5518_v15 = vpop.f32.mrf.mxu1 }
 0x297   :  { %v524_v16 = vadd.f32 %v5518_v15, %v375_v47 }
 0x298   :  { %v508_v17 = vpop.f32.mrf.mxu1 }
 0x299   :  { %v522_v19 = vadd.f32 %v508_v17, %v367_v50 }
 0x29a   :  { %v5519_v20 = vpop.f32.mrf.mxu1 }
 0x29c   :  { %v511_v21 = vpop.f32.mrf.mxu1 }
 0x29d   :  { %v523_v44 = vadd.f32 %v511_v21, %v370_v41 }
 0x2b2   :  { %v5536_v22 = vpop.f32.mrf.mxu1 }
 0x2b3   :  { %v586_v24 = vadd.f32 %v5536_v22, %v6568_v18 }
 0x2b4   :  { %v577_v23 = vpop.f32.mrf.mxu1 }
 0x2b5   :  { %v578_v26 = vadd.f32 %v6568_v18, %v577_v23  ;;  %v593_v29 = vmax.f32 %v586_v24, 0.0 }
 0x2b6   :  { %v5537_v25 = vpop.f32.mrf.mxu1 }
 0x2b7   :  { %v591_v30 = vmax.f32 %v578_v26, 0.0  ;;  %v595_v34 = vpack.c.bf16 %v593_v29, %v593_v29  ;;  %v6278_v26 = vld [vmem:[%s7658_s0 + $0x48] sm:$0xff]  }
 0x2b8   :  { %v580_v27 = vpop.f32.mrf.mxu1  ;;  %v6280_v29 = vld [vmem:[%s7659_s3 + $0x68] sm:$0xff]  }
 0x2b9   :  { %v581_v28 = vadd.f32 %v6568_v18, %v580_v27 }
 0x2bb   :  { %v592_v31 = vmax.f32 %v581_v28, 0.0  ;;  %v6279_v28 = vld [vmem:[%s7658_s0 + $0x50] ss:$0 sps:$4 sm:$0x11]  }
 0x2bd   :  { %v594_v32 = vpack.c.bf16 %v592_v31, %v591_v30  ;;  %v6281_v30 = vld [vmem:[%s7659_s3 + $0x60] sm:$0xff]  }
 0x2bf   :  { %5542 = vmatprep.mubr.msk.bf16.mxu0 %vm259_vm2, %v594_v32 }
 0x2c0   :  { %5543 = vmatmul.mubr.msk.bf16.vlgmr.msra.gmra.mxu0 %vm259_vm2, %v595_v34 }
 0x2c1   :  { %5547 = vmatpush3.bf16.msra.mxu0 %v6485_v3  ;;  %5560 = vmatprep.mubr.msk.bf16.mxu0 %vm103_vm1, %v6270_v33 }
 0x2c2   :  { %5548 = vmatprep.subr.bf16.mxu0 %v6469_v0 }
 0x2c5   :  { %5549 = vmatpush3.bf16.msra.mxu0 %v6469_v0 }
 0x2c6   :  { %5550 = vmatprep.subr.bf16.mxu0 %v6495_v5 }
 0x2c9   :  { %5551 = vmatpush3.bf16.msra.mxu0 %v6495_v5 }
 0x2ca   :  { %5552 = vmatprep.subr.bf16.mxu0 %v6504_v6 }
 0x2cd   :  { %5553 = vmatpush3.bf16.msra.mxu0 %v6504_v6 }
 0x2ce   :  { %5554 = vmatprep.subr.bf16.mxu0 %v6513_v7 }
 0x2d1   :  { %5555 = vmatpush3.bf16.msra.mxu0 %v6513_v7 }
 0x2d2   :  { %5556 = vmatprep.subr.bf16.mxu0 %v6522_v8 }
 0x2d5   :  { %5557 = vmatpush3.bf16.msra.mxu0 %v6522_v8 }
 0x2d6   :  { %5558 = vmatprep.subr.bf16.mxu0 %v6531_v9 }
 0x2d9   :  { %5559 = vmatpush3.bf16.msra.mxu0 %v6531_v9 }
 0x2da   :  { %5590 = vmatprep.subr.bf16.mxu0 %v6276_v61 }
 0x2dc   :  { %5561 = vmatmul.mubr.msk.bf16.vlgmr.msra.gmra.mxu0 %vm103_vm1, %v6271_v35 }
 0x2dd   :  { %5591 = vmatpush3.bf16.msra.mxu0 %v6276_v61 }
 0x2de   :  { %5592 = vmatprep.subr.bf16.mxu0 %v6277_v62 }
 0x2e1   :  { %5593 = vmatpush3.bf16.msra.mxu0 %v6277_v62 }
 0x2e2   :  { %6226 = vmatprep.subr.msk.bf16.mxu0 %vm110_vm0, %v6474_v1 }
 0x380   :  { %v5544_v38 = vpop.f32.mrf.mxu0 }
 0x381   :  { %v669_v39 = vadd.f32 %v5544_v38, %v524_v16 }
 0x382   :  { %v653_v40 = vpop.f32.mrf.mxu0 }
 0x383   :  { %v667_v42 = vadd.f32 %v653_v40, %v522_v19 }
 0x384   :  { %v5545_v43 = vpop.f32.mrf.mxu0 }
 0x386   :  { %v656_v45 = vpop.f32.mrf.mxu0 }
 0x387   :  { %v668_v46 = vadd.f32 %v656_v45, %v523_v44 }
 0x39c   :  { %v5562_v47 = vpop.f32.mrf.mxu0 }
 0x39d   :  { %v731_v49 = vadd.f32 %v5562_v47, %v6568_v18 }
 0x39e   :  { %v722_v48 = vpop.f32.mrf.mxu0 }
 0x39f   :  { %v723_v51 = vadd.f32 %v6568_v18, %v722_v48  ;;  %v738_v55 = vmax.f32 %v731_v49, 0.0  ;;  %v6282_v48 = vld [vmem:[%s7658_s0 + $0x54] sm:$0xff]  }
 0x3a0   :  { %v5563_v50 = vpop.f32.mrf.mxu0 }
 0x3a1   :  { %v736_v56 = vmax.f32 %v723_v51, 0.0  ;;  %v740_v59 = vpack.c.bf16 %v738_v55, %v738_v55  ;;  %v6783_v50 = vld [vmem:[%s7657_s1 + $0x30] ss:$0 sps:$4 sm:$0x33]  }
 0x3a2   :  { %v725_v52 = vpop.f32.mrf.mxu0 }
 0x3a3   :  { %v726_v54 = vadd.f32 %v6568_v18, %v725_v52 }
 0x3a5   :  { %v737_v57 = vmax.f32 %v726_v54, 0.0 }
 0x3a7   :  { %v739_v58 = vpack.c.bf16 %v737_v57, %v736_v56 }
 0x3a9   :  { %5568 = vmatprep.mubr.msk.bf16.mxu1 %vm259_vm2, %v739_v58 }
 0x3aa   :  { %5569 = vmatmul.mubr.msk.bf16.vlgmr.msra.gmra.mxu1 %vm259_vm2, %v740_v59 }
 0x3ab   :  { %5573 = vmatpush3.bf16.msra.mxu1 %v6485_v3  ;;  %5586 = vmatprep.mubr.msk.bf16.mxu1 %vm103_vm1, %v6274_v53 }
 0x3ac   :  { %5574 = vmatprep.subr.bf16.mxu1 %v6469_v0 }
 0x3af   :  { %5575 = vmatpush3.bf16.msra.mxu1 %v6469_v0 }
 0x3b0   :  { %5576 = vmatprep.subr.bf16.mxu1 %v6495_v5 }
 0x3b3   :  { %5577 = vmatpush3.bf16.msra.mxu1 %v6495_v5 }
 0x3b4   :  { %5578 = vmatprep.subr.bf16.mxu1 %v6504_v6 }
 0x3b7   :  { %5579 = vmatpush3.bf16.msra.mxu1 %v6504_v6 }
 0x3b8   :  { %5580 = vmatprep.subr.bf16.mxu1 %v6513_v7 }
 0x3bb   :  { %5581 = vmatpush3.bf16.msra.mxu1 %v6513_v7 }
 0x3bc   :  { %5582 = vmatprep.subr.bf16.mxu1 %v6522_v8 }
 0x3bf   :  { %5583 = vmatpush3.bf16.msra.mxu1 %v6522_v8 }
 0x3c0   :  { %5584 = vmatprep.subr.bf16.mxu1 %v6531_v9 }
 0x3c3   :  { %5585 = vmatpush3.bf16.msra.mxu1 %v6531_v9 }
 0x3c4   :  { %5616 = vmatprep.subr.bf16.mxu1 %v6280_v29 }
 0x3c6   :  { %5587 = vmatmul.mubr.msk.bf16.vlgmr.msra.gmra.mxu1 %vm103_vm1, %v6275_v60 }
 0x3c7   :  { %5617 = vmatpush3.bf16.msra.mxu1 %v6280_v29 }
 0x3c8   :  { %5618 = vmatprep.subr.bf16.mxu1 %v6281_v30 }
 0x3cb   :  { %5619 = vmatpush3.bf16.msra.mxu1 %v6281_v30 }
 0x3cc   :  { %6227 = vmatprep.subr.msk.bf16.mxu1 %vm110_vm0, %v6474_v1 }
 0x46a   :  { %v5570_v63 = vpop.f32.mrf.mxu1 }
 0x46b   :  { %v814_v2 = vadd.f32 %v5570_v63, %v669_v39 }
 0x46c   :  { %v798_v4 = vpop.f32.mrf.mxu1 }
 0x46d   :  { %v812_v10 = vadd.f32 %v798_v4, %v667_v42 }
 0x46e   :  { %v5571_v11 = vpop.f32.mrf.mxu1 }
 0x470   :  { %v801_v12 = vpop.f32.mrf.mxu1 }
 0x471   :  { %v813_v13 = vadd.f32 %v801_v12, %v668_v46 }
 0x486   :  { %v5588_v14 = vpop.f32.mrf.mxu1 }
 0x487   :  { %v876_v16 = vadd.f32 %v5588_v14, %v6568_v18 }
 0x488   :  { %v867_v15 = vpop.f32.mrf.mxu1 }
 0x489   :  { %v868_v19 = vadd.f32 %v6568_v18, %v867_v15  ;;  %v883_v22 = vmax.f32 %v876_v16, 0.0  ;;  %v6800_v15 = vld [vmem:[%s7657_s1 + $0x28] sm:$0xff]   ;;  %v6807_v16 = vld [vmem:[%s7657_s1 + $0x20] sm:$0xff]  }
 0x48a   :  { %v5589_v17 = vpop.f32.mrf.mxu1 }
 0x48b   :  { %v881_v23 = vmax.f32 %v868_v19, 0.0  ;;  %v885_v27 = vpack.c.bf16 %v883_v22, %v883_v22  ;;  %v6814_v17 = vld [vmem:[%s7657_s1 + $0x18] sm:$0xff]   ;;  %v6287_v19 = vld [vmem:[%s7658_s0 + $0x68] ss:$0 sps:$4 sm:$0x11]  }
 0x48c   :  { %v870_v20 = vpop.f32.mrf.mxu1 }
 0x48d   :  { %v871_v21 = vadd.f32 %v6568_v18, %v870_v20  ;;  %v6288_v20 = vld [vmem:[%s7659_s3 + $0x88] sm:$0xff]  }
 0x48f   :  { %v882_v24 = vmax.f32 %v871_v21, 0.0 }
 0x491   :  { %v884_v25 = vpack.c.bf16 %v882_v24, %v881_v23 }
 0x493   :  { %5594 = vmatprep.mubr.msk.bf16.mxu0 %vm259_vm2, %v884_v25 }
 0x494   :  { %5595 = vmatmul.mubr.msk.bf16.vlgmr.msra.gmra.mxu0 %vm259_vm2, %v885_v27 }
 0x495   :  { %5599 = vmatpush3.bf16.msra.mxu0 %v6485_v3  ;;  %5612 = vmatprep.mubr.msk.bf16.mxu0 %vm103_vm1, %v6278_v26 }
 0x496   :  { %5600 = vmatprep.subr.bf16.mxu0 %v6469_v0 }
 0x499   :  { %5601 = vmatpush3.bf16.msra.mxu0 %v6469_v0 }
 0x49a   :  { %5602 = vmatprep.subr.bf16.mxu0 %v6495_v5 }
 0x49d   :  { %5603 = vmatpush3.bf16.msra.mxu0 %v6495_v5 }
 0x49e   :  { %5604 = vmatprep.subr.bf16.mxu0 %v6504_v6 }
 0x4a1   :  { %5605 = vmatpush3.bf16.msra.mxu0 %v6504_v6 }
 0x4a2   :  { %5606 = vmatprep.subr.bf16.mxu0 %v6513_v7 }
 0x4a5   :  { %5607 = vmatpush3.bf16.msra.mxu0 %v6513_v7 }
 0x4a6   :  { %5608 = vmatprep.subr.bf16.mxu0 %v6522_v8 }
 0x4a9   :  { %5609 = vmatpush3.bf16.msra.mxu0 %v6522_v8 }
 0x4aa   :  { %5610 = vmatprep.subr.bf16.mxu0 %v6531_v9 }
 0x4ad   :  { %5611 = vmatpush3.bf16.msra.mxu0 %v6531_v9 }
 0x4b0   :  { %5613 = vmatmul.mubr.msk.bf16.vlgmr.msra.gmra.mxu0 %vm103_vm1, %v6279_v28 }
 0x554   :  { %v5596_v31 = vpop.f32.mrf.mxu0 }
 0x555   :  { %v959_v32 = vadd.f32 %v5596_v31, %v814_v2 }
 0x556   :  { %v943_v33 = vpop.f32.mrf.mxu0 }
 0x557   :  { %v957_v34 = vadd.f32 %v943_v33, %v812_v10 }
 0x558   :  { %v5597_v35 = vpop.f32.mrf.mxu0 }
 0x55a   :  { %v946_v36 = vpop.f32.mrf.mxu0 }
 0x55b   :  { %v958_v37 = vadd.f32 %v946_v36, %v813_v13  ;;  %v6286_v13 = vld [vmem:[%s7658_s0 + $0x60] sm:$0xff]  }
 0x570   :  { %v5614_v38 = vpop.f32.mrf.mxu0 }
 0x571   :  { %v1021_v40 = vadd.f32 %v5614_v38, %v6568_v18 }
 0x572   :  { %v1012_v39 = vpop.f32.mrf.mxu0 }
 0x573   :  { %v1013_v42 = vadd.f32 %v6568_v18, %v1012_v39  ;;  %v1028_v45 = vmax.f32 %v1021_v40, 0.0  ;;  %v6855_v39 = vld [vmem:[%s7657_s1 + $0x10] sm:$0xff]   ;;  %v6862_v40 = vld [vmem:[%s7657_s1 + $0x8] sm:$0xff]  }
 0x574   :  { %v5615_v41 = vpop.f32.mrf.mxu0 }
 0x575   :  { %v1026_v46 = vmax.f32 %v1013_v42, 0.0  ;;  %v1030_v49 = vpack.c.bf16 %v1028_v45, %v1028_v45  ;;  %v6869_v41 = vld [vmem:[%s7657_s1] sm:$0xff]   ;;  %v6291_v42 = vld [vmem:[%s7658_s0 + $0x74] ss:$0 sps:$4 sm:$0x11]  }
 0x576   :  { %v1015_v43 = vpop.f32.mrf.mxu0 }
 0x577   :  { %v1016_v44 = vadd.f32 %v6568_v18, %v1015_v43  ;;  %v6292_v43 = vld [vmem:[%s7659_s3 + $0x98] sm:$0xff]  }
 0x579   :  { %v1027_v1 = vmax.f32 %v1016_v44, 0.0  ;;  %v6293_v44 = vld [vmem:[%s7659_s3 + $0x90] sm:$0xff]  }
 0x57b   :  { %v1029_v47 = vpack.c.bf16 %v1027_v1, %v1026_v46 }
 0x57d   :  { %5620 = vmatprep.mubr.msk.bf16.mxu1 %vm259_vm2, %v1029_v47 }
 0x57e   :  { %5621 = vmatmul.mubr.msk.bf16.vlgmr.msra.gmra.mxu1 %vm259_vm2, %v1030_v49 }
 0x57f   :  { %5625 = vmatpush3.bf16.msra.mxu1 %v6485_v3  ;;  %5638 = vmatprep.mubr.msk.bf16.mxu1 %vm103_vm1, %v6282_v48 }
 0x580   :  { %5626 = vmatprep.subr.bf16.mxu1 %v6469_v0 }
 0x583   :  { %5627 = vmatpush3.bf16.msra.mxu1 %v6469_v0  ;;  %v6283_v0 = vld [vmem:[%s7658_s0 + $0x5c] ss:$0 sps:$4 sm:$0x11]  }
 0x584   :  { %5628 = vmatprep.subr.bf16.mxu1 %v6495_v5 }
 0x587   :  { %5629 = vmatpush3.bf16.msra.mxu1 %v6495_v5  ;;  %v6284_v5 = vld [vmem:[%s7659_s3 + $0x78] sm:$0xff]  }
 0x588   :  { %5630 = vmatprep.subr.bf16.mxu1 %v6504_v6  ;;  %5642 = vmatprep.subr.bf16.mxu0 %v6284_v5 }
 0x589   :  { %5643 = vmatpush3.bf16.msra.mxu0 %v6284_v5 }
 0x58b   :  { %5631 = vmatpush3.bf16.msra.mxu1 %v6504_v6  ;;  %v6285_v6 = vld [vmem:[%s7659_s3 + $0x70] sm:$0xff]  }
 0x58c   :  { %5632 = vmatprep.subr.bf16.mxu1 %v6513_v7  ;;  %5644 = vmatprep.subr.bf16.mxu0 %v6285_v6 }
 0x58d   :  { %5645 = vmatpush3.bf16.msra.mxu0 %v6285_v6 }
 0x58e   :  { %6228 = vmatprep.subr.msk.bf16.mxu0 %vm110_vm0, %v6783_v50 }
 0x58f   :  { %5633 = vmatpush3.bf16.msra.mxu1 %v6513_v7 }
 0x590   :  { %5634 = vmatprep.subr.bf16.mxu1 %v6522_v8 }
 0x593   :  { %5635 = vmatpush3.bf16.msra.mxu1 %v6522_v8 }
 0x594   :  { %5636 = vmatprep.subr.bf16.mxu1 %v6531_v9 }
 0x597   :  { %5637 = vmatpush3.bf16.msra.mxu1 %v6531_v9 }
 0x598   :  { %5668 = vmatprep.subr.bf16.mxu1 %v6288_v20 }
 0x59a   :  { %5639 = vmatmul.mubr.msk.bf16.vlgmr.msra.gmra.mxu1 %vm103_vm1, %v6283_v0 }
 0x59b   :  { %5669 = vmatpush3.bf16.msra.mxu1 %v6288_v20 }
 0x63e   :  { %v5622_v51 = vpop.f32.mrf.mxu1 }
 0x63f   :  { %v1104_v52 = vadd.f32 %v5622_v51, %v959_v32 }
 0x640   :  { %v1088_v54 = vpop.f32.mrf.mxu1 }
 0x641   :  { %v1102_v55 = vadd.f32 %v1088_v54, %v957_v34 }
 0x642   :  { %v5623_v56 = vpop.f32.mrf.mxu1 }
 0x644   :  { %v1091_v57 = vpop.f32.mrf.mxu1 }
 0x645   :  { %v1103_v58 = vadd.f32 %v1091_v57, %v958_v37  ;;  %v6290_v37 = vld [vmem:[%s7658_s0 + $0x6c] sm:$0xff]  }
 0x65a   :  { %v5640_v53 = vpop.f32.mrf.mxu1 }
 0x65b   :  { %v1166_v60 = vadd.f32 %v5640_v53, %v6568_v18 }
 0x65c   :  { %v1157_v59 = vpop.f32.mrf.mxu1 }
 0x65d   :  { %v1158_v62 = vadd.f32 %v6568_v18, %v1157_v59  ;;  %v1173_v4 = vmax.f32 %v1166_v60, 0.0  ;;  %v6294_v60 = vld [vmem:[%s7658_s0 + $0x78] sm:$0xff]  }
 0x65e   :  { %v5641_v61 = vpop.f32.mrf.mxu1 }
 0x65f   :  { %v1171_v10 = vmax.f32 %v1158_v62, 0.0  ;;  %v1175_v14 = vpack.c.bf16 %v1173_v4, %v1173_v4  ;;  %v6295_v62 = vld [vmem:[%s7658_s0 + $0x80] ss:$0 sps:$4 sm:$0x11]  }
 0x660   :  { %v1160_v63 = vpop.f32.mrf.mxu1 }
 0x661   :  { %v1161_v2 = vadd.f32 %v6568_v18, %v1160_v63  ;;  %v6296_v63 = vld [vmem:[%s7659_s3 + $0xa8] sm:$0xff]  }
 0x663   :  { %v1172_v11 = vmax.f32 %v1161_v2, 0.0  ;;  %v6297_v2 = vld [vmem:[%s7659_s3 + $0xa0] sm:$0xff]  }
 0x665   :  { %v1174_v12 = vpack.c.bf16 %v1172_v11, %v1171_v10 }
 0x667   :  { %5646 = vmatprep.mubr.msk.bf16.mxu0 %vm259_vm2, %v1174_v12 }
 0x668   :  { %5647 = vmatmul.mubr.msk.bf16.vlgmr.msra.gmra.mxu0 %vm259_vm2, %v1175_v14 }
 0x669   :  { %5651 = vmatpush3.bf16.msra.mxu0 %v6485_v3  ;;  %5664 = vmatprep.mubr.msk.bf16.mxu0 %vm103_vm1, %v6286_v13 }
 0x66a   :  { %5652 = vmatprep.subr.bf16.mxu0 %v6800_v15 }
 0x66d   :  { %5653 = vmatpush3.bf16.msra.mxu0 %v6800_v15 }
 0x66e   :  { %5654 = vmatprep.subr.bf16.mxu0 %v6807_v16 }
 0x671   :  { %5655 = vmatpush3.bf16.msra.mxu0 %v6807_v16 }
 0x672   :  { %5656 = vmatprep.subr.bf16.mxu0 %v6814_v17 }
 0x675   :  { %5657 = vmatpush3.bf16.msra.mxu0 %v6814_v17 }
 0x676   :  { %5658 = vmatprep.subr.bf16.mxu0 %v6513_v7 }
 0x679   :  { %5659 = vmatpush3.bf16.msra.mxu0 %v6513_v7  ;;  %v6289_v7 = vld [vmem:[%s7659_s3 + $0x80] sm:$0xff]  }
 0x67a   :  { %5660 = vmatprep.subr.bf16.mxu0 %v6522_v8  ;;  %5670 = vmatprep.subr.bf16.mxu1 %v6289_v7 }
 0x67b   :  { %5671 = vmatpush3.bf16.msra.mxu1 %v6289_v7 }
 0x67c   :  { %6229 = vmatprep.subr.msk.bf16.mxu1 %vm110_vm0, %v6783_v50 }
 0x67d   :  { %5661 = vmatpush3.bf16.msra.mxu0 %v6522_v8 }
 0x67e   :  { %5662 = vmatprep.subr.bf16.mxu0 %v6531_v9 }
 0x681   :  { %5663 = vmatpush3.bf16.msra.mxu0 %v6531_v9 }
 0x682   :  { %5694 = vmatprep.subr.bf16.mxu0 %v6292_v43 }
 0x684   :  { %5665 = vmatmul.mubr.msk.bf16.vlgmr.msra.gmra.mxu0 %vm103_vm1, %v6287_v19 }
 0x685   :  { %5695 = vmatpush3.bf16.msra.mxu0 %v6292_v43 }
 0x686   :  { %5696 = vmatprep.subr.bf16.mxu0 %v6293_v44 }
 0x689   :  { %5697 = vmatpush3.bf16.msra.mxu0 %v6293_v44 }
 0x68a   :  { %6230 = vmatprep.subr.msk.bf16.mxu0 %vm110_vm0, %v6783_v50 }
 0x728   :  { %v5648_v8 = vpop.f32.mrf.mxu0 }
 0x729   :  { %v1249_v21 = vadd.f32 %v5648_v8, %v1104_v52 }
 0x72a   :  { %v1233_v9 = vpop.f32.mrf.mxu0 }
 0x72b   :  { %v1247_v22 = vadd.f32 %v1233_v9, %v1102_v55 }
 0x72c   :  { %v5649_v23 = vpop.f32.mrf.mxu0 }
 0x72e   :  { %v1236_v24 = vpop.f32.mrf.mxu0 }
 0x72f   :  { %v1248_v25 = vadd.f32 %v1236_v24, %v1103_v58 }
 0x744   :  { %v5666_v26 = vpop.f32.mrf.mxu0 }
 0x745   :  { %v1311_v28 = vadd.f32 %v5666_v26, %v6568_v18 }
 0x746   :  { %v1302_v27 = vpop.f32.mrf.mxu0 }
 0x747   :  { %v1303_v30 = vadd.f32 %v6568_v18, %v1302_v27  ;;  %v1318_v33 = vmax.f32 %v1311_v28, 0.0  ;;  %v6298_v28 = vld [vmem:[%s7658_s0 + $0x84] sm:$0xff]  }
 0x748   :  { %v5667_v29 = vpop.f32.mrf.mxu0 }
 0x749   :  { %v1316_v34 = vmax.f32 %v1303_v30, 0.0  ;;  %v1320_v38 = vpack.c.bf16 %v1318_v33, %v1318_v33  ;;  %v6299_v30 = vld [vmem:[%s7658_s0 + $0x8c] ss:$0 sps:$4 sm:$0x11]  }
 0x74a   :  { %v1305_v31 = vpop.f32.mrf.mxu0 }
 0x74b   :  { %v1306_v32 = vadd.f32 %v6568_v18, %v1305_v31  ;;  %v6300_v31 = vld [vmem:[%s7659_s3 + $0xb8] sm:$0xff]  }
 0x74d   :  { %v1317_v35 = vmax.f32 %v1306_v32, 0.0  ;;  %v6301_v32 = vld [vmem:[%s7659_s3 + $0xb0] sm:$0xff]  }
 0x74f   :  { %v1319_v36 = vpack.c.bf16 %v1317_v35, %v1316_v34 }
 0x751   :  { %5672 = vmatprep.mubr.msk.bf16.mxu1 %vm259_vm2, %v1319_v36 }
 0x752   :  { %5673 = vmatmul.mubr.msk.bf16.vlgmr.msra.gmra.mxu1 %vm259_vm2, %v1320_v38 }
 0x753   :  { %5677 = vmatpush3.bf16.msra.mxu1 %v6485_v3  ;;  %5690 = vmatprep.mubr.msk.bf16.mxu1 %vm103_vm1, %v6290_v37 }
 0x754   :  { %5678 = vmatprep.subr.bf16.mxu1 %v6800_v15 }
 0x757   :  { %5679 = vmatpush3.bf16.msra.mxu1 %v6800_v15 }
 0x758   :  { %5680 = vmatprep.subr.bf16.mxu1 %v6807_v16 }
 0x75b   :  { %5681 = vmatpush3.bf16.msra.mxu1 %v6807_v16 }
 0x75c   :  { %5682 = vmatprep.subr.bf16.mxu1 %v6814_v17 }
 0x75f   :  { %5683 = vmatpush3.bf16.msra.mxu1 %v6814_v17 }
 0x760   :  { %5684 = vmatprep.subr.bf16.mxu1 %v6855_v39 }
 0x763   :  { %5685 = vmatpush3.bf16.msra.mxu1 %v6855_v39 }
 0x764   :  { %5686 = vmatprep.subr.bf16.mxu1 %v6862_v40 }
 0x767   :  { %5687 = vmatpush3.bf16.msra.mxu1 %v6862_v40 }
 0x768   :  { %5688 = vmatprep.subr.bf16.mxu1 %v6869_v41 }
 0x76b   :  { %5689 = vmatpush3.bf16.msra.mxu1 %v6869_v41 }
 0x76c   :  { %5720 = vmatprep.subr.bf16.mxu1 %v6296_v63 }
 0x76e   :  { %5691 = vmatmul.mubr.msk.bf16.vlgmr.msra.gmra.mxu1 %vm103_vm1, %v6291_v42 }
 0x76f   :  { %5721 = vmatpush3.bf16.msra.mxu1 %v6296_v63 }
 0x770   :  { %5722 = vmatprep.subr.bf16.mxu1 %v6297_v2 }
 0x773   :  { %5723 = vmatpush3.bf16.msra.mxu1 %v6297_v2  ;;  %v6990_v2 = vld [vmem:[%s7660_s2] ss:$0 sm:$0xff] }
 0x774   :  { %6231 = vmatprep.subr.msk.bf16.mxu1 %vm110_vm0, %v6783_v50 }
 0x812   :  { %v5674_v45 = vpop.f32.mrf.mxu1 }
 0x813   :  { %v1394_v46 = vadd.f32 %v5674_v45, %v1249_v21 }
 0x814   :  { %v1378_v1 = vpop.f32.mrf.mxu1 }
 0x815   :  { %v1392_v47 = vadd.f32 %v1378_v1, %v1247_v22 }
 0x816   :  { %v5675_v48 = vpop.f32.mrf.mxu1 }
 0x818   :  { %v1381_v49 = vpop.f32.mrf.mxu1 }
 0x819   :  { %v1393_v0 = vadd.f32 %v1381_v49, %v1248_v25 }
 0x82e   :  { %v5692_v5 = vpop.f32.mrf.mxu1 }
 0x82f   :  { %v1456_v51 = vadd.f32 %v5692_v5, %v6568_v18 }
 0x830   :  { %v1447_v6 = vpop.f32.mrf.mxu1 }
 0x831   :  { %v1448_v54 = vadd.f32 %v6568_v18, %v1447_v6  ;;  %v1463_v57 = vmax.f32 %v1456_v51, 0.0  ;;  %v6302_v51 = vld [vmem:[%s7658_s0 + $0x90] sm:$0xff]  }
 0x832   :  { %v5693_v52 = vpop.f32.mrf.mxu1 }
 0x833   :  { %v1461_v58 = vmax.f32 %v1448_v54, 0.0  ;;  %v1465_v61 = vpack.c.bf16 %v1463_v57, %v1463_v57  ;;  %v6304_v54 = vld [vmem:[%s7659_s3 + $0xc8] sm:$0xff]  }
 0x834   :  { %v1450_v55 = vpop.f32.mrf.mxu1 }
 0x835   :  { %v1451_v56 = vadd.f32 %v6568_v18, %v1450_v55  ;;  %v6305_v55 = vld [vmem:[%s7659_s3 + $0xc0] sm:$0xff]  }
 0x837   :  { %v1462_v53 = vmax.f32 %v1451_v56, 0.0 }
 0x839   :  { %v1464_v59 = vpack.c.bf16 %v1462_v53, %v1461_v58 }
 0x83b   :  { %5698 = vmatprep.mubr.msk.bf16.mxu0 %vm259_vm2, %v1464_v59 }
 0x83c   :  { %5699 = vmatmul.mubr.msk.bf16.vlgmr.msra.gmra.mxu0 %vm259_vm2, %v1465_v61 }
 0x83d   :  { %5703 = vmatpush3.bf16.msra.mxu0 %v6485_v3  ;;  %5716 = vmatprep.mubr.msk.bf16.mxu0 %vm103_vm1, %v6294_v60 }
 0x83e   :  { %5704 = vmatprep.subr.bf16.mxu0 %v6800_v15 }
 0x841   :  { %5705 = vmatpush3.bf16.msra.mxu0 %v6800_v15 }
 0x842   :  { %5706 = vmatprep.subr.bf16.mxu0 %v6807_v16 }
 0x845   :  { %5707 = vmatpush3.bf16.msra.mxu0 %v6807_v16 }
 0x846   :  { %5708 = vmatprep.subr.bf16.mxu0 %v6814_v17 }
 0x849   :  { %5709 = vmatpush3.bf16.msra.mxu0 %v6814_v17 }
 0x84a   :  { %5710 = vmatprep.subr.bf16.mxu0 %v6855_v39 }
 0x84d   :  { %5711 = vmatpush3.bf16.msra.mxu0 %v6855_v39 }
 0x84e   :  { %5712 = vmatprep.subr.bf16.mxu0 %v6862_v40 }
 0x851   :  { %5713 = vmatpush3.bf16.msra.mxu0 %v6862_v40 }
 0x852   :  { %5714 = vmatprep.subr.bf16.mxu0 %v6869_v41 }
 0x855   :  { %5715 = vmatpush3.bf16.msra.mxu0 %v6869_v41 }
 0x856   :  { %5746 = vmatprep.subr.bf16.mxu0 %v6300_v31 }
 0x858   :  { %5717 = vmatmul.mubr.msk.bf16.vlgmr.msra.gmra.mxu0 %vm103_vm1, %v6295_v62 }
 0x859   :  { %5747 = vmatpush3.bf16.msra.mxu0 %v6300_v31 }
 0x85a   :  { %5748 = vmatprep.subr.bf16.mxu0 %v6301_v32 }
 0x85d   :  { %5749 = vmatpush3.bf16.msra.mxu0 %v6301_v32 }
 0x85e   :  { %6232 = vmatprep.subr.msk.bf16.mxu0 %vm110_vm0, %v6783_v50 }
 0x8fc   :  { %v5700_v4 = vpop.f32.mrf.mxu0 }
 0x8fd   :  { %v1539_v10 = vadd.f32 %v5700_v4, %v1394_v46 }
 0x8fe   :  { %v1523_v11 = vpop.f32.mrf.mxu0 }
 0x8ff   :  { %v1537_v12 = vadd.f32 %v1523_v11, %v1392_v47 }
 0x900   :  { %v5701_v13 = vpop.f32.mrf.mxu0 }
 0x902   :  { %v1526_v14 = vpop.f32.mrf.mxu0 }
 0x903   :  { %v1538_v19 = vadd.f32 %v1526_v14, %v1393_v0 }
 0x918   :  { %v5718_v20 = vpop.f32.mrf.mxu0 }
 0x919   :  { %v1601_v8 = vadd.f32 %v5718_v20, %v6568_v18 }
 0x91a   :  { %v1592_v7 = vpop.f32.mrf.mxu0 }
 0x91b   :  { %v1593_v9 = vadd.f32 %v6568_v18, %v1592_v7  ;;  %v1608_v24 = vmax.f32 %v1601_v8, 0.0  ;;  %v6306_v8 = vld [vmem:[%s7658_s0 + $0x9c] sm:$0xff]  }
 0x91c   :  { %v5719_v21 = vpop.f32.mrf.mxu0 }
 0x91d   :  { %v1606_v25 = vmax.f32 %v1593_v9, 0.0  ;;  %v1610_v29 = vpack.c.bf16 %v1608_v24, %v1608_v24  ;;  %v6307_v9 = vld [vmem:[%s7658_s0 + $0xa4] ss:$0 sps:$4 sm:$0x11]  }
 0x91e   :  { %v1595_v22 = vpop.f32.mrf.mxu0 }
 0x91f   :  { %v1596_v23 = vadd.f32 %v6568_v18, %v1595_v22  ;;  %v6308_v22 = vld [vmem:[%s7659_s3 + $0xd8] sm:$0xff]  }
 0x921   :  { %v1607_v26 = vmax.f32 %v1596_v23, 0.0  ;;  %v6309_v23 = vld [vmem:[%s7659_s3 + $0xd0] sm:$0xff]  }
 0x923   :  { %v1609_v27 = vpack.c.bf16 %v1607_v26, %v1606_v25 }
 0x925   :  { %5724 = vmatprep.mubr.msk.bf16.mxu1 %vm259_vm2, %v1609_v27 }
 0x926   :  { %5725 = vmatmul.mubr.msk.bf16.vlgmr.msra.gmra.mxu1 %vm259_vm2, %v1610_v29 }
 0x927   :  { %5729 = vmatpush3.bf16.msra.mxu1 %v6485_v3  ;;  %5742 = vmatprep.mubr.msk.bf16.mxu1 %vm103_vm1, %v6298_v28 }
 0x928   :  { %5730 = vmatprep.subr.bf16.mxu1 %v6800_v15 }
 0x92b   :  { %5731 = vmatpush3.bf16.msra.mxu1 %v6800_v15 }
 0x92c   :  { %5732 = vmatprep.subr.bf16.mxu1 %v6807_v16 }
 0x92f   :  { %5733 = vmatpush3.bf16.msra.mxu1 %v6807_v16 }
 0x930   :  { %5734 = vmatprep.subr.bf16.mxu1 %v6814_v17 }
 0x933   :  { %5735 = vmatpush3.bf16.msra.mxu1 %v6814_v17 }
 0x934   :  { %5736 = vmatprep.subr.bf16.mxu1 %v6855_v39 }
 0x937   :  { %5737 = vmatpush3.bf16.msra.mxu1 %v6855_v39 }
 0x938   :  { %5738 = vmatprep.subr.bf16.mxu1 %v6862_v40 }
 0x93b   :  { %5739 = vmatpush3.bf16.msra.mxu1 %v6862_v40 }
 0x93c   :  { %5740 = vmatprep.subr.bf16.mxu1 %v6869_v41 }
 0x93f   :  { %5741 = vmatpush3.bf16.msra.mxu1 %v6869_v41 }
 0x940   :  { %5772 = vmatprep.subr.bf16.mxu1 %v6304_v54 }
 0x942   :  { %5743 = vmatmul.mubr.msk.bf16.vlgmr.msra.gmra.mxu1 %vm103_vm1, %v6299_v30 }
 0x943   :  { %5773 = vmatpush3.bf16.msra.mxu1 %v6304_v54 }
 0x944   :  { %5774 = vmatprep.subr.bf16.mxu1 %v6305_v55 }
 0x947   :  { %5775 = vmatpush3.bf16.msra.mxu1 %v6305_v55 }
 0x948   :  { %6233 = vmatprep.subr.msk.bf16.mxu1 %vm110_vm0, %v6783_v50 }
 0x9e6   :  { %v5726_v33 = vpop.f32.mrf.mxu1 }
 0x9e7   :  { %v1684_v34 = vadd.f32 %v5726_v33, %v1539_v10 }
 0x9e8   :  { %v1668_v35 = vpop.f32.mrf.mxu1 }
 0x9e9   :  { %v1682_v36 = vadd.f32 %v1668_v35, %v1537_v12 }
 0x9ea   :  { %v5727_v37 = vpop.f32.mrf.mxu1 }
 0x9ec   :  { %v1671_v38 = vpop.f32.mrf.mxu1 }
 0x9ed   :  { %v1683_v42 = vadd.f32 %v1671_v38, %v1538_v19 }
 0xa02   :  { %v5744_v43 = vpop.f32.mrf.mxu1 }
 0xa03   :  { %v1746_v45 = vadd.f32 %v5744_v43, %v6568_v18 }
 0xa04   :  { %v1737_v44 = vpop.f32.mrf.mxu1 }
 0xa05   :  { %v1738_v1 = vadd.f32 %v6568_v18, %v1737_v44  ;;  %v1753_v49 = vmax.f32 %v1746_v45, 0.0  ;;  %v6310_v45 = vld [vmem:[%s7658_s0 + $0xa8] sm:$0xff]  }
 0xa06   :  { %v5745_v46 = vpop.f32.mrf.mxu1 }
 0xa07   :  { %v1751_v0 = vmax.f32 %v1738_v1, 0.0  ;;  %v1755_v52 = vpack.c.bf16 %v1753_v49, %v1753_v49  ;;  %v6311_v1 = vld [vmem:[%s7658_s0 + $0xb0] ss:$0 sps:$4 sm:$0x11]  }
 0xa08   :  { %v1740_v47 = vpop.f32.mrf.mxu1 }
 0xa09   :  { %v1741_v48 = vadd.f32 %v6568_v18, %v1740_v47  ;;  %v6303_v18 = vld [vmem:[%s7658_s0 + $0x98] ss:$0 sps:$4 sm:$0x11]   ;;  %v6312_v47 = vld [vmem:[%s7659_s3 + $0xe8] sm:$0xff]  }
 0xa0b   :  { %v1752_v5 = vmax.f32 %v1741_v48, 0.0  ;;  %v6313_v48 = vld [vmem:[%s7659_s3 + $0xe0] sm:$0xff]  }
 0xa0d   :  { %v1754_v6 = vpack.c.bf16 %v1752_v5, %v1751_v0 }
 0xa0f   :  { %5750 = vmatprep.mubr.msk.bf16.mxu0 %vm259_vm2, %v1754_v6 }
 0xa10   :  { %5751 = vmatmul.mubr.msk.bf16.vlgmr.msra.gmra.mxu0 %vm259_vm2, %v1755_v52 }
 0xa11   :  { %5755 = vmatpush3.bf16.msra.mxu0 %v6485_v3  ;;  %5768 = vmatprep.mubr.msk.bf16.mxu0 %vm103_vm1, %v6302_v51 }
 0xa12   :  { %5756 = vmatprep.subr.bf16.mxu0 %v6800_v15 }
 0xa15   :  { %5757 = vmatpush3.bf16.msra.mxu0 %v6800_v15 }
 0xa16   :  { %5758 = vmatprep.subr.bf16.mxu0 %v6807_v16 }
 0xa19   :  { %5759 = vmatpush3.bf16.msra.mxu0 %v6807_v16 }
 0xa1a   :  { %5760 = vmatprep.subr.bf16.mxu0 %v6814_v17 }
 0xa1d   :  { %5761 = vmatpush3.bf16.msra.mxu0 %v6814_v17 }
 0xa1e   :  { %5762 = vmatprep.subr.bf16.mxu0 %v6855_v39 }
 0xa21   :  { %5763 = vmatpush3.bf16.msra.mxu0 %v6855_v39 }
 0xa22   :  { %5764 = vmatprep.subr.bf16.mxu0 %v6862_v40 }
 0xa25   :  { %5765 = vmatpush3.bf16.msra.mxu0 %v6862_v40 }
 0xa26   :  { %5766 = vmatprep.subr.bf16.mxu0 %v6869_v41 }
 0xa29   :  { %5767 = vmatpush3.bf16.msra.mxu0 %v6869_v41 }
 0xa2a   :  { %5798 = vmatprep.subr.bf16.mxu0 %v6308_v22 }
 0xa2c   :  { %5769 = vmatmul.mubr.msk.bf16.vlgmr.msra.gmra.mxu0 %vm103_vm1, %v6303_v18 }
 0xa2d   :  { %5799 = vmatpush3.bf16.msra.mxu0 %v6308_v22 }
 0xa2e   :  { %5800 = vmatprep.subr.bf16.mxu0 %v6309_v23 }
 0xa31   :  { %5801 = vmatpush3.bf16.msra.mxu0 %v6309_v23 }
 0xa32   :  { %6234 = vmatprep.subr.msk.bf16.mxu0 %vm110_vm0, %v6783_v50 }
 0xad0   :  { %v5752_v56 = vpop.f32.mrf.mxu0 }
 0xad1   :  { %v1829_v57 = vadd.f32 %v5752_v56, %v1684_v34 }
 0xad2   :  { %v1813_v58 = vpop.f32.mrf.mxu0 }
 0xad3   :  { %v1827_v53 = vadd.f32 %v1813_v58, %v1682_v36 }
 0xad4   :  { %v5753_v59 = vpop.f32.mrf.mxu0 }
 0xad6   :  { %v1816_v60 = vpop.f32.mrf.mxu0 }
 0xad7   :  { %v1828_v61 = vadd.f32 %v1816_v60, %v1683_v42 }
 0xaec   :  { %v5770_v62 = vpop.f32.mrf.mxu0 }
 0xaed   :  { %v1891_v4 = vadd.f32 %v6990_v2, %v5770_v62 }
 0xaee   :  { %v1882_v63 = vpop.f32.mrf.mxu0 }
 0xaef   :  { %v1883_v11 = vadd.f32 %v6990_v2, %v1882_v63  ;;  %v1898_v14 = vmax.f32 %v1891_v4, 0.0  ;;  %v6314_v4 = vld [vmem:[%s7658_s0 + $0xb4] sm:$0xff]  }
 0xaf0   :  { %v5771_v10 = vpop.f32.mrf.mxu0 }
 0xaf1   :  { %v1896_v19 = vmax.f32 %v1883_v11, 0.0  ;;  %v1900_v21 = vpack.c.bf16 %v1898_v14, %v1898_v14  ;;  %v6315_v11 = vld [vmem:[%s7658_s0 + $0xbc] ss:$0 sps:$4 sm:$0x11]  }
 0xaf2   :  { %v1885_v12 = vpop.f32.mrf.mxu0 }
 0xaf3   :  { %v1886_v13 = vadd.f32 %v6990_v2, %v1885_v12  ;;  %v6316_v12 = vld [vmem:[%s7659_s3 + $0xf8] sm:$0xff]  }
 0xaf5   :  { %v1897_v20 = vmax.f32 %v1886_v13, 0.0  ;;  %v6317_v13 = vld [vmem:[%s7659_s3 + $0xf0] sm:$0xff]  }
 0xaf7   :  { %v1899_v7 = vpack.c.bf16 %v1897_v20, %v1896_v19 }
 0xaf9   :  { %5776 = vmatprep.mubr.msk.bf16.mxu1 %vm259_vm2, %v1899_v7 }
 0xafa   :  { %5777 = vmatmul.mubr.msk.bf16.vlgmr.msra.gmra.mxu1 %vm259_vm2, %v1900_v21 }
 0xafb   :  { %5781 = vmatpush3.bf16.msra.mxu1 %v6485_v3  ;;  %5794 = vmatprep.mubr.msk.bf16.mxu1 %vm103_vm1, %v6306_v8 }
 0xafc   :  { %5782 = vmatprep.subr.bf16.mxu1 %v6800_v15 }
 0xaff   :  { %5783 = vmatpush3.bf16.msra.mxu1 %v6800_v15 }
 0xb00   :  { %5784 = vmatprep.subr.bf16.mxu1 %v6807_v16 }
 0xb03   :  { %5785 = vmatpush3.bf16.msra.mxu1 %v6807_v16 }
 0xb04   :  { %5786 = vmatprep.subr.bf16.mxu1 %v6814_v17 }
 0xb07   :  { %5787 = vmatpush3.bf16.msra.mxu1 %v6814_v17 }
 0xb08   :  { %5788 = vmatprep.subr.bf16.mxu1 %v6855_v39 }
 0xb0b   :  { %5789 = vmatpush3.bf16.msra.mxu1 %v6855_v39 }
 0xb0c   :  { %5790 = vmatprep.subr.bf16.mxu1 %v6862_v40 }
 0xb0f   :  { %5791 = vmatpush3.bf16.msra.mxu1 %v6862_v40 }
 0xb10   :  { %5792 = vmatprep.subr.bf16.mxu1 %v6869_v41 }
 0xb13   :  { %5793 = vmatpush3.bf16.msra.mxu1 %v6869_v41 }
 0xb14   :  { %5824 = vmatprep.subr.bf16.mxu1 %v6312_v47 }
 0xb16   :  { %5795 = vmatmul.mubr.msk.bf16.vlgmr.msra.gmra.mxu1 %vm103_vm1, %v6307_v9 }
 0xb17   :  { %5825 = vmatpush3.bf16.msra.mxu1 %v6312_v47 }
 0xb18   :  { %5826 = vmatprep.subr.bf16.mxu1 %v6313_v48 }
 0xb1b   :  { %5827 = vmatpush3.bf16.msra.mxu1 %v6313_v48 }
 0xb1c   :  { %6235 = vmatprep.subr.msk.bf16.mxu1 %vm110_vm0, %v6783_v50 }
 0xbba   :  { %v5778_v24 = vpop.f32.mrf.mxu1 }
 0xbbb   :  { %v1974_v25 = vadd.f32 %v5778_v24, %v1829_v57 }
 0xbbc   :  { %v1958_v26 = vpop.f32.mrf.mxu1 }
 0xbbd   :  { %v1972_v27 = vadd.f32 %v1958_v26, %v1827_v53 }
 0xbbe   :  { %v5779_v28 = vpop.f32.mrf.mxu1 }
 0xbc0   :  { %v1961_v29 = vpop.f32.mrf.mxu1 }
 0xbc1   :  { %v1973_v30 = vadd.f32 %v1961_v29, %v1828_v61 }
 0xbd6   :  { %v5796_v31 = vpop.f32.mrf.mxu1 }
 0xbd7   :  { %v2036_v33 = vadd.f32 %v6990_v2, %v5796_v31 }
 0xbd8   :  { %v2027_v32 = vpop.f32.mrf.mxu1 }
 0xbd9   :  { %v2028_v35 = vadd.f32 %v6990_v2, %v2027_v32  ;;  %v2043_v38 = vmax.f32 %v2036_v33, 0.0  ;;  %v6318_v33 = vld [vmem:[%s7658_s0 + $0xc0] sm:$0xff]  }
 0xbda   :  { %v5797_v34 = vpop.f32.mrf.mxu1 }
 0xbdb   :  { %v2041_v42 = vmax.f32 %v2028_v35, 0.0  ;;  %v2045_v46 = vpack.c.bf16 %v2043_v38, %v2043_v38  ;;  %v6319_v35 = vld [vmem:[%s7658_s0 + $0xc8] ss:$0 sps:$4 sm:$0x11]  }
 0xbdc   :  { %v2030_v36 = vpop.f32.mrf.mxu1 }
 0xbdd   :  { %v2031_v37 = vadd.f32 %v6990_v2, %v2030_v36  ;;  %v6320_v36 = vld [vmem:[%s7659_s3 + $0x108] sm:$0xff]  }
 0xbdf   :  { %v2042_v43 = vmax.f32 %v2031_v37, 0.0  ;;  %v6321_v37 = vld [vmem:[%s7659_s3 + $0x100] sm:$0xff]  }
 0xbe1   :  { %v2044_v44 = vpack.c.bf16 %v2042_v43, %v2041_v42 }
 0xbe3   :  { %5802 = vmatprep.mubr.msk.bf16.mxu0 %vm259_vm2, %v2044_v44 }
 0xbe4   :  { %5803 = vmatmul.mubr.msk.bf16.vlgmr.msra.gmra.mxu0 %vm259_vm2, %v2045_v46 }
 0xbe5   :  { %5807 = vmatpush3.bf16.msra.mxu0 %v6485_v3  ;;  %5820 = vmatprep.mubr.msk.bf16.mxu0 %vm103_vm1, %v6310_v45 }
 0xbe6   :  { %5808 = vmatprep.subr.bf16.mxu0 %v6800_v15 }
 0xbe9   :  { %5809 = vmatpush3.bf16.msra.mxu0 %v6800_v15 }
 0xbea   :  { %5810 = vmatprep.subr.bf16.mxu0 %v6807_v16 }
 0xbed   :  { %5811 = vmatpush3.bf16.msra.mxu0 %v6807_v16 }
 0xbee   :  { %5812 = vmatprep.subr.bf16.mxu0 %v6814_v17 }
 0xbf1   :  { %5813 = vmatpush3.bf16.msra.mxu0 %v6814_v17 }
 0xbf2   :  { %5814 = vmatprep.subr.bf16.mxu0 %v6855_v39 }
 0xbf5   :  { %5815 = vmatpush3.bf16.msra.mxu0 %v6855_v39 }
 0xbf6   :  { %5816 = vmatprep.subr.bf16.mxu0 %v6862_v40 }
 0xbf9   :  { %5817 = vmatpush3.bf16.msra.mxu0 %v6862_v40 }
 0xbfa   :  { %5818 = vmatprep.subr.bf16.mxu0 %v6869_v41 }
 0xbfd   :  { %5819 = vmatpush3.bf16.msra.mxu0 %v6869_v41 }
 0xbfe   :  { %5850 = vmatprep.subr.bf16.mxu0 %v6316_v12 }
 0xc00   :  { %5821 = vmatmul.mubr.msk.bf16.vlgmr.msra.gmra.mxu0 %vm103_vm1, %v6311_v1 }
 0xc01   :  { %5851 = vmatpush3.bf16.msra.mxu0 %v6316_v12 }
 0xc02   :  { %5852 = vmatprep.subr.bf16.mxu0 %v6317_v13 }
 0xc05   :  { %5853 = vmatpush3.bf16.msra.mxu0 %v6317_v13 }
 0xc06   :  { %6236 = vmatprep.subr.msk.bf16.mxu0 %vm110_vm0, %v6783_v50 }
 0xca4   :  { %v5804_v49 = vpop.f32.mrf.mxu0 }
 0xca5   :  { %v2119_v0 = vadd.f32 %v5804_v49, %v1974_v25 }
 0xca6   :  { %v2103_v5 = vpop.f32.mrf.mxu0 }
 0xca7   :  { %v2117_v6 = vadd.f32 %v2103_v5, %v1972_v27 }
 0xca8   :  { %v5805_v51 = vpop.f32.mrf.mxu0 }
 0xcaa   :  { %v2106_v52 = vpop.f32.mrf.mxu0 }
 0xcab   :  { %v2118_v18 = vadd.f32 %v2106_v52, %v1973_v30 }
 0xcc0   :  { %v5822_v54 = vpop.f32.mrf.mxu0 }
 0xcc1   :  { %v2181_v56 = vadd.f32 %v6990_v2, %v5822_v54 }
 0xcc2   :  { %v2172_v55 = vpop.f32.mrf.mxu0 }
 0xcc3   :  { %v2173_v58 = vadd.f32 %v6990_v2, %v2172_v55  ;;  %v2188_v60 = vmax.f32 %v2181_v56, 0.0  ;;  %v6322_v56 = vld [vmem:[%s7658_s0 + $0xcc] sm:$0xff]  }
 0xcc4   :  { %v5823_v57 = vpop.f32.mrf.mxu0 }
 0xcc5   :  { %v2186_v61 = vmax.f32 %v2173_v58, 0.0  ;;  %v2190_v10 = vpack.c.bf16 %v2188_v60, %v2188_v60  ;;  %v6323_v58 = vld [vmem:[%s7658_s0 + $0xd4] ss:$0 sps:$4 sm:$0x11]  }
 0xcc6   :  { %v2175_v53 = vpop.f32.mrf.mxu0 }
 0xcc7   :  { %v2176_v59 = vadd.f32 %v6990_v2, %v2175_v53  ;;  %v6324_v53 = vld [vmem:[%s7659_s3 + $0x118] sm:$0xff]  }
 0xcc9   :  { %v2187_v62 = vmax.f32 %v2176_v59, 0.0  ;;  %v6325_v59 = vld [vmem:[%s7659_s3 + $0x110] sm:$0xff]  }
 0xccb   :  { %v2189_v63 = vpack.c.bf16 %v2187_v62, %v2186_v61 }
 0xccd   :  { %5828 = vmatprep.mubr.msk.bf16.mxu1 %vm259_vm2, %v2189_v63 }
 0xcce   :  { %5829 = vmatmul.mubr.msk.bf16.vlgmr.msra.gmra.mxu1 %vm259_vm2, %v2190_v10 }
 0xccf   :  { %5833 = vmatpush3.bf16.msra.mxu1 %v6485_v3  ;;  %5846 = vmatprep.mubr.msk.bf16.mxu1 %vm103_vm1, %v6314_v4 }
 0xcd0   :  { %5834 = vmatprep.subr.bf16.mxu1 %v6800_v15 }
 0xcd3   :  { %5835 = vmatpush3.bf16.msra.mxu1 %v6800_v15 }
 0xcd4   :  { %5836 = vmatprep.subr.bf16.mxu1 %v6807_v16 }
 0xcd7   :  { %5837 = vmatpush3.bf16.msra.mxu1 %v6807_v16 }
 0xcd8   :  { %5838 = vmatprep.subr.bf16.mxu1 %v6814_v17 }
 0xcdb   :  { %5839 = vmatpush3.bf16.msra.mxu1 %v6814_v17 }
 0xcdc   :  { %5840 = vmatprep.subr.bf16.mxu1 %v6855_v39 }
 0xcdf   :  { %5841 = vmatpush3.bf16.msra.mxu1 %v6855_v39 }
 0xce0   :  { %5842 = vmatprep.subr.bf16.mxu1 %v6862_v40 }
 0xce3   :  { %5843 = vmatpush3.bf16.msra.mxu1 %v6862_v40 }
 0xce4   :  { %5844 = vmatprep.subr.bf16.mxu1 %v6869_v41 }
 0xce7   :  { %5845 = vmatpush3.bf16.msra.mxu1 %v6869_v41 }
 0xce8   :  { %5876 = vmatprep.subr.bf16.mxu1 %v6320_v36 }
 0xcea   :  { %5847 = vmatmul.mubr.msk.bf16.vlgmr.msra.gmra.mxu1 %vm103_vm1, %v6315_v11 }
 0xceb   :  { %5877 = vmatpush3.bf16.msra.mxu1 %v6320_v36 }
 0xcec   :  { %5878 = vmatprep.subr.bf16.mxu1 %v6321_v37 }
 0xcef   :  { %5879 = vmatpush3.bf16.msra.mxu1 %v6321_v37 }
 0xcf0   :  { %6237 = vmatprep.subr.msk.bf16.mxu1 %vm110_vm0, %v6783_v50 }
 0xd8e   :  { %v5830_v14 = vpop.f32.mrf.mxu1 }
 0xd8f   :  { %v2264_v19 = vadd.f32 %v5830_v14, %v2119_v0 }
 0xd90   :  { %v2248_v20 = vpop.f32.mrf.mxu1 }
 0xd91   :  { %v2262_v7 = vadd.f32 %v2248_v20, %v2117_v6 }
 0xd92   :  { %v5831_v8 = vpop.f32.mrf.mxu1 }
 0xd94   :  { %v2251_v21 = vpop.f32.mrf.mxu1 }
 0xd95   :  { %v2263_v9 = vadd.f32 %v2251_v21, %v2118_v18 }
 0xdaa   :  { %v5848_v22 = vpop.f32.mrf.mxu1 }
 0xdab   :  { %v2326_v24 = vadd.f32 %v6990_v2, %v5848_v22 }
 0xdac   :  { %v2317_v23 = vpop.f32.mrf.mxu1 }
 0xdad   :  { %v2318_v26 = vadd.f32 %v6990_v2, %v2317_v23  ;;  %v2333_v29 = vmax.f32 %v2326_v24, 0.0  ;;  %v6326_v24 = vld [vmem:[%s7658_s0 + $0xd8] sm:$0xff]  }
 0xdae   :  { %v5849_v25 = vpop.f32.mrf.mxu1 }
 0xdaf   :  { %v2331_v30 = vmax.f32 %v2318_v26, 0.0  ;;  %v2335_v34 = vpack.c.bf16 %v2333_v29, %v2333_v29  ;;  %v6327_v26 = vld [vmem:[%s7658_s0 + $0xe0] ss:$0 sps:$4 sm:$0x11]  }
 0xdb0   :  { %v2320_v27 = vpop.f32.mrf.mxu1 }
 0xdb1   :  { %v2321_v28 = vadd.f32 %v6990_v2, %v2320_v27  ;;  %v6328_v27 = vld [vmem:[%s7659_s3 + $0x128] sm:$0xff]  }
 0xdb3   :  { %v2332_v31 = vmax.f32 %v2321_v28, 0.0  ;;  %v6329_v28 = vld [vmem:[%s7659_s3 + $0x120] sm:$0xff]  }
 0xdb5   :  { %v2334_v32 = vpack.c.bf16 %v2332_v31, %v2331_v30 }
 0xdb7   :  { %5854 = vmatprep.mubr.msk.bf16.mxu0 %vm259_vm2, %v2334_v32 }
 0xdb8   :  { %5855 = vmatmul.mubr.msk.bf16.vlgmr.msra.gmra.mxu0 %vm259_vm2, %v2335_v34 }
 0xdb9   :  { %5859 = vmatpush3.bf16.msra.mxu0 %v6485_v3  ;;  %5872 = vmatprep.mubr.msk.bf16.mxu0 %vm103_vm1, %v6318_v33 }
 0xdba   :  { %5860 = vmatprep.subr.bf16.mxu0 %v6800_v15 }
 0xdbd   :  { %5861 = vmatpush3.bf16.msra.mxu0 %v6800_v15 }
 0xdbe   :  { %5862 = vmatprep.subr.bf16.mxu0 %v6807_v16 }
 0xdc1   :  { %5863 = vmatpush3.bf16.msra.mxu0 %v6807_v16 }
 0xdc2   :  { %5864 = vmatprep.subr.bf16.mxu0 %v6814_v17 }
 0xdc5   :  { %5865 = vmatpush3.bf16.msra.mxu0 %v6814_v17 }
 0xdc6   :  { %5866 = vmatprep.subr.bf16.mxu0 %v6855_v39 }
 0xdc9   :  { %5867 = vmatpush3.bf16.msra.mxu0 %v6855_v39 }
 0xdca   :  { %5868 = vmatprep.subr.bf16.mxu0 %v6862_v40 }
 0xdcd   :  { %5869 = vmatpush3.bf16.msra.mxu0 %v6862_v40 }
 0xdce   :  { %5870 = vmatprep.subr.bf16.mxu0 %v6869_v41 }
 0xdd1   :  { %5871 = vmatpush3.bf16.msra.mxu0 %v6869_v41 }
 0xdd2   :  { %5902 = vmatprep.subr.bf16.mxu0 %v6324_v53 }
 0xdd4   :  { %5873 = vmatmul.mubr.msk.bf16.vlgmr.msra.gmra.mxu0 %vm103_vm1, %v6319_v35 }
 0xdd5   :  { %5903 = vmatpush3.bf16.msra.mxu0 %v6324_v53 }
 0xdd6   :  { %5904 = vmatprep.subr.bf16.mxu0 %v6325_v59 }
 0xdd9   :  { %5905 = vmatpush3.bf16.msra.mxu0 %v6325_v59 }
 0xdda   :  { %6238 = vmatprep.subr.msk.bf16.mxu0 %vm110_vm0, %v6783_v50 }
 0xe78   :  { %v5856_v38 = vpop.f32.mrf.mxu0 }
 0xe79   :  { %v2409_v42 = vadd.f32 %v5856_v38, %v2264_v19 }
 0xe7a   :  { %v2393_v43 = vpop.f32.mrf.mxu0 }
 0xe7b   :  { %v2407_v44 = vadd.f32 %v2393_v43, %v2262_v7 }
 0xe7c   :  { %v5857_v45 = vpop.f32.mrf.mxu0 }
 0xe7e   :  { %v2396_v46 = vpop.f32.mrf.mxu0 }
 0xe7f   :  { %v2408_v1 = vadd.f32 %v2396_v46, %v2263_v9 }
 0xe94   :  { %v5874_v47 = vpop.f32.mrf.mxu0 }
 0xe95   :  { %v2471_v49 = vadd.f32 %v6990_v2, %v5874_v47 }
 0xe96   :  { %v2462_v48 = vpop.f32.mrf.mxu0 }
 0xe97   :  { %v2463_v5 = vadd.f32 %v6990_v2, %v2462_v48  ;;  %v2478_v52 = vmax.f32 %v2471_v49, 0.0  ;;  %v6330_v48 = vld [vmem:[%s7658_s0 + $0xe4] sm:$0xff]  }
 0xe98   :  { %v5875_v0 = vpop.f32.mrf.mxu0 }
 0xe99   :  { %v2476_v18 = vmax.f32 %v2463_v5, 0.0  ;;  %v2480_v57 = vpack.c.bf16 %v2478_v52, %v2478_v52  ;;  %v7231_v0 = vld [vmem:[%s7657_s1 + $0x30] ss:$0 sps:$4 sm:$0x33]  }
 0xe9a   :  { %v2465_v6 = vpop.f32.mrf.mxu0 }
 0xe9b   :  { %v2466_v51 = vadd.f32 %v6990_v2, %v2465_v6 }
 0xe9d   :  { %v2477_v54 = vmax.f32 %v2466_v51, 0.0 }
 0xe9f   :  { %v2479_v55 = vpack.c.bf16 %v2477_v54, %v2476_v18 }
 0xea1   :  { %5880 = vmatprep.mubr.msk.bf16.mxu1 %vm259_vm2, %v2479_v55 }
 0xea2   :  { %5881 = vmatmul.mubr.msk.bf16.vlgmr.msra.gmra.mxu1 %vm259_vm2, %v2480_v57 }
 0xea3   :  { %5885 = vmatpush3.bf16.msra.mxu1 %v6485_v3  ;;  %5898 = vmatprep.mubr.msk.bf16.mxu1 %vm103_vm1, %v6322_v56 }
 0xea4   :  { %5886 = vmatprep.subr.bf16.mxu1 %v6800_v15 }
 0xea7   :  { %5887 = vmatpush3.bf16.msra.mxu1 %v6800_v15 }
 0xea8   :  { %5888 = vmatprep.subr.bf16.mxu1 %v6807_v16 }
 0xeab   :  { %5889 = vmatpush3.bf16.msra.mxu1 %v6807_v16 }
 0xeac   :  { %5890 = vmatprep.subr.bf16.mxu1 %v6814_v17 }
 0xeaf   :  { %5891 = vmatpush3.bf16.msra.mxu1 %v6814_v17 }
 0xeb0   :  { %5892 = vmatprep.subr.bf16.mxu1 %v6855_v39 }
 0xeb3   :  { %5893 = vmatpush3.bf16.msra.mxu1 %v6855_v39 }
 0xeb4   :  { %5894 = vmatprep.subr.bf16.mxu1 %v6862_v40 }
 0xeb7   :  { %5895 = vmatpush3.bf16.msra.mxu1 %v6862_v40 }
 0xeb8   :  { %5896 = vmatprep.subr.bf16.mxu1 %v6869_v41 }
 0xebb   :  { %5897 = vmatpush3.bf16.msra.mxu1 %v6869_v41 }
 0xebc   :  { %5928 = vmatprep.subr.bf16.mxu1 %v6328_v27 }
 0xebe   :  { %5899 = vmatmul.mubr.msk.bf16.vlgmr.msra.gmra.mxu1 %vm103_vm1, %v6323_v58 }
 0xebf   :  { %5929 = vmatpush3.bf16.msra.mxu1 %v6328_v27 }
 0xec0   :  { %5930 = vmatprep.subr.bf16.mxu1 %v6329_v28 }
 0xec3   :  { %5931 = vmatpush3.bf16.msra.mxu1 %v6329_v28 }
 0xec4   :  { %6239 = vmatprep.subr.msk.bf16.mxu1 %vm110_vm0, %v6783_v50 }
 0xf62   :  { %v5882_v60 = vpop.f32.mrf.mxu1 }
 0xf63   :  { %v2554_v61 = vadd.f32 %v5882_v60, %v2409_v42 }
 0xf64   :  { %v2538_v62 = vpop.f32.mrf.mxu1 }
 0xf65   :  { %v2552_v63 = vadd.f32 %v2538_v62, %v2407_v44 }
 0xf66   :  { %v5883_v4 = vpop.f32.mrf.mxu1 }
 0xf68   :  { %v2541_v10 = vpop.f32.mrf.mxu1 }
 0xf69   :  { %v2553_v11 = vadd.f32 %v2541_v10, %v2408_v1 }
 0xf7e   :  { %v5900_v12 = vpop.f32.mrf.mxu1 }
 0xf7f   :  { %v2616_v14 = vadd.f32 %v6990_v2, %v5900_v12 }
 0xf80   :  { %v2607_v13 = vpop.f32.mrf.mxu1 }
 0xf81   :  { %v2608_v20 = vadd.f32 %v6990_v2, %v2607_v13  ;;  %v2623_v21 = vmax.f32 %v2616_v14, 0.0  ;;  %v7248_v13 = vld [vmem:[%s7657_s1 + $0x28] sm:$0xff]   ;;  %v7255_v14 = vld [vmem:[%s7657_s1 + $0x20] sm:$0xff]  }
 0xf82   :  { %v5901_v19 = vpop.f32.mrf.mxu1 }
 0xf83   :  { %v2621_v9 = vmax.f32 %v2608_v20, 0.0  ;;  %v2625_v25 = vpack.c.bf16 %v2623_v21, %v2623_v21  ;;  %v7262_v19 = vld [vmem:[%s7657_s1 + $0x18] sm:$0xff]  }
 0xf84   :  { %v2610_v7 = vpop.f32.mrf.mxu1  ;;  %v6335_v20 = vld [vmem:[%s7658_s0 + $0xf8] ss:$0 sps:$4 sm:$0x11]  }
 0xf85   :  { %v2611_v8 = vadd.f32 %v6990_v2, %v2610_v7  ;;  %v6336_v7 = vld [vmem:[%s7659_s3 + $0x148] sm:$0xff]  }
 0xf87   :  { %v2622_v22 = vmax.f32 %v2611_v8, 0.0 }
 0xf89   :  { %v2624_v23 = vpack.c.bf16 %v2622_v22, %v2621_v9 }
 0xf8b   :  { %5906 = vmatprep.mubr.msk.bf16.mxu0 %vm259_vm2, %v2624_v23 }
 0xf8c   :  { %5907 = vmatmul.mubr.msk.bf16.vlgmr.msra.gmra.mxu0 %vm259_vm2, %v2625_v25 }
 0xf8d   :  { %5911 = vmatpush3.bf16.msra.mxu0 %v6485_v3  ;;  %5924 = vmatprep.mubr.msk.bf16.mxu0 %vm103_vm1, %v6326_v24 }
 0xf8e   :  { %5912 = vmatprep.subr.bf16.mxu0 %v6800_v15 }
 0xf91   :  { %5913 = vmatpush3.bf16.msra.mxu0 %v6800_v15 }
 0xf92   :  { %5914 = vmatprep.subr.bf16.mxu0 %v6807_v16 }
 0xf95   :  { %5915 = vmatpush3.bf16.msra.mxu0 %v6807_v16 }
 0xf96   :  { %5916 = vmatprep.subr.bf16.mxu0 %v6814_v17 }
 0xf99   :  { %5917 = vmatpush3.bf16.msra.mxu0 %v6814_v17 }
 0xf9a   :  { %5918 = vmatprep.subr.bf16.mxu0 %v6855_v39 }
 0xf9d   :  { %5919 = vmatpush3.bf16.msra.mxu0 %v6855_v39 }
 0xf9e   :  { %5920 = vmatprep.subr.bf16.mxu0 %v6862_v40 }
 0xfa1   :  { %5921 = vmatpush3.bf16.msra.mxu0 %v6862_v40 }
 0xfa2   :  { %5922 = vmatprep.subr.bf16.mxu0 %v6869_v41 }
 0xfa5   :  { %5923 = vmatpush3.bf16.msra.mxu0 %v6869_v41 }
 0xfa8   :  { %5925 = vmatmul.mubr.msk.bf16.vlgmr.msra.gmra.mxu0 %vm103_vm1, %v6327_v26 }
0x104c   :  { %v5908_v29 = vpop.f32.mrf.mxu0 }
0x104d   :  { %v2699_v30 = vadd.f32 %v5908_v29, %v2554_v61 }
0x104e   :  { %v2683_v31 = vpop.f32.mrf.mxu0 }
0x104f   :  { %v2697_v32 = vadd.f32 %v2683_v31, %v2552_v63 }
0x1050   :  { %v5909_v33 = vpop.f32.mrf.mxu0 }
0x1052   :  { %v2686_v34 = vpop.f32.mrf.mxu0 }
0x1053   :  { %v2698_v35 = vadd.f32 %v2686_v34, %v2553_v11  ;;  %v6334_v11 = vld [vmem:[%s7658_s0 + $0xf0] sm:$0xff]  }
0x1068   :  { %v5926_v36 = vpop.f32.mrf.mxu0 }
0x1069   :  { %v2761_v38 = vadd.f32 %v6990_v2, %v5926_v36 }
0x106a   :  { %v2752_v37 = vpop.f32.mrf.mxu0 }
0x106b   :  { %v2753_v43 = vadd.f32 %v6990_v2, %v2752_v37  ;;  %v2768_v46 = vmax.f32 %v2761_v38, 0.0  ;;  %v7303_v37 = vld [vmem:[%s7657_s1 + $0x10] sm:$0xff]   ;;  %v7310_v38 = vld [vmem:[%s7657_s1 + $0x8] sm:$0xff]  }
0x106c   :  { %v5927_v42 = vpop.f32.mrf.mxu0 }
0x106d   :  { %v2766_v1 = vmax.f32 %v2753_v43, 0.0  ;;  %v2770_v49 = vpack.c.bf16 %v2768_v46, %v2768_v46  ;;  %v7317_v42 = vld [vmem:[%s7657_s1] sm:$0xff]  }
0x106e   :  { %v2755_v44 = vpop.f32.mrf.mxu0  ;;  %v6339_v43 = vld [vmem:[%s7658_s0 + $0x104] ss:$0 sps:$4 sm:$0x11]  }
0x106f   :  { %v2756_v45 = vadd.f32 %v6990_v2, %v2755_v44  ;;  %v6340_v44 = vld [vmem:[%s7659_s3 + $0x158] sm:$0xff]  }
0x1071   :  { %v2767_v50 = vmax.f32 %v2756_v45, 0.0  ;;  %v6341_v45 = vld [vmem:[%s7659_s3 + $0x150] sm:$0xff]  }
0x1073   :  { %v2769_v47 = vpack.c.bf16 %v2767_v50, %v2766_v1 }
0x1075   :  { %5932 = vmatprep.mubr.msk.bf16.mxu1 %vm259_vm2, %v2769_v47 }
0x1076   :  { %5933 = vmatmul.mubr.msk.bf16.vlgmr.msra.gmra.mxu1 %vm259_vm2, %v2770_v49 }
0x1077   :  { %5937 = vmatpush3.bf16.msra.mxu1 %v6485_v3  ;;  %5950 = vmatprep.mubr.msk.bf16.mxu1 %vm103_vm1, %v6330_v48 }
0x1078   :  { %5938 = vmatprep.subr.bf16.mxu1 %v6800_v15 }
0x107b   :  { %5939 = vmatpush3.bf16.msra.mxu1 %v6800_v15  ;;  %v6331_v15 = vld [vmem:[%s7658_s0 + $0xec] ss:$0 sps:$4 sm:$0x11]  }
0x107c   :  { %5940 = vmatprep.subr.bf16.mxu1 %v6807_v16 }
0x107f   :  { %5941 = vmatpush3.bf16.msra.mxu1 %v6807_v16  ;;  %v6332_v16 = vld [vmem:[%s7659_s3 + $0x138] sm:$0xff]  }
0x1080   :  { %5942 = vmatprep.subr.bf16.mxu1 %v6814_v17  ;;  %5954 = vmatprep.subr.bf16.mxu0 %v6332_v16 }
0x1081   :  { %5955 = vmatpush3.bf16.msra.mxu0 %v6332_v16 }
0x1083   :  { %5943 = vmatpush3.bf16.msra.mxu1 %v6814_v17  ;;  %v6333_v17 = vld [vmem:[%s7659_s3 + $0x130] sm:$0xff]  }
0x1084   :  { %5944 = vmatprep.subr.bf16.mxu1 %v6855_v39  ;;  %5956 = vmatprep.subr.bf16.mxu0 %v6333_v17 }
0x1085   :  { %5957 = vmatpush3.bf16.msra.mxu0 %v6333_v17 }
0x1086   :  { %6240 = vmatprep.subr.msk.bf16.mxu0 %vm110_vm0, %v7231_v0 }
0x1087   :  { %5945 = vmatpush3.bf16.msra.mxu1 %v6855_v39 }
0x1088   :  { %5946 = vmatprep.subr.bf16.mxu1 %v6862_v40 }
0x108b   :  { %5947 = vmatpush3.bf16.msra.mxu1 %v6862_v40 }
0x108c   :  { %5948 = vmatprep.subr.bf16.mxu1 %v6869_v41 }
0x108f   :  { %5949 = vmatpush3.bf16.msra.mxu1 %v6869_v41 }
0x1090   :  { %5980 = vmatprep.subr.bf16.mxu1 %v6336_v7 }
0x1092   :  { %5951 = vmatmul.mubr.msk.bf16.vlgmr.msra.gmra.mxu1 %vm103_vm1, %v6331_v15 }
0x1093   :  { %5981 = vmatpush3.bf16.msra.mxu1 %v6336_v7 }
0x1136   :  { %v5934_v5 = vpop.f32.mrf.mxu1 }
0x1137   :  { %v2844_v6 = vadd.f32 %v5934_v5, %v2699_v30 }
0x1138   :  { %v2828_v51 = vpop.f32.mrf.mxu1 }
0x1139   :  { %v2842_v52 = vadd.f32 %v2828_v51, %v2697_v32 }
0x113a   :  { %v5935_v18 = vpop.f32.mrf.mxu1 }
0x113c   :  { %v2831_v54 = vpop.f32.mrf.mxu1 }
0x113d   :  { %v2843_v55 = vadd.f32 %v2831_v54, %v2698_v35  ;;  %v6338_v35 = vld [vmem:[%s7658_s0 + $0xfc] sm:$0xff]  }
0x1152   :  { %v5952_v56 = vpop.f32.mrf.mxu1 }
0x1153   :  { %v2906_v58 = vadd.f32 %v6990_v2, %v5952_v56 }
0x1154   :  { %v2897_v57 = vpop.f32.mrf.mxu1 }
0x1155   :  { %v2898_v59 = vadd.f32 %v6990_v2, %v2897_v57  ;;  %v2913_v62 = vmax.f32 %v2906_v58, 0.0  ;;  %v6342_v58 = vld [vmem:[%s7658_s0 + $0x108] sm:$0xff]  }
0x1156   :  { %v5953_v53 = vpop.f32.mrf.mxu1 }
0x1157   :  { %v2911_v63 = vmax.f32 %v2898_v59, 0.0  ;;  %v2915_v12 = vpack.c.bf16 %v2913_v62, %v2913_v62  ;;  %v6343_v59 = vld [vmem:[%s7658_s0 + $0x110] ss:$0 sps:$4 sm:$0x11]  }
0x1158   :  { %v2900_v60 = vpop.f32.mrf.mxu1 }
0x1159   :  { %v2901_v61 = vadd.f32 %v6990_v2, %v2900_v60  ;;  %v6344_v60 = vld [vmem:[%s7659_s3 + $0x168] sm:$0xff]  }
0x115b   :  { %v2912_v4 = vmax.f32 %v2901_v61, 0.0  ;;  %v6345_v61 = vld [vmem:[%s7659_s3 + $0x160] sm:$0xff]  }
0x115d   :  { %v2914_v10 = vpack.c.bf16 %v2912_v4, %v2911_v63 }
0x115f   :  { %5958 = vmatprep.mubr.msk.bf16.mxu0 %vm259_vm2, %v2914_v10 }
0x1160   :  { %5959 = vmatmul.mubr.msk.bf16.vlgmr.msra.gmra.mxu0 %vm259_vm2, %v2915_v12 }
0x1161   :  { %5963 = vmatpush3.bf16.msra.mxu0 %v6485_v3  ;;  %5976 = vmatprep.mubr.msk.bf16.mxu0 %vm103_vm1, %v6334_v11 }
0x1162   :  { %5964 = vmatprep.subr.bf16.mxu0 %v7248_v13 }
0x1165   :  { %5965 = vmatpush3.bf16.msra.mxu0 %v7248_v13 }
0x1166   :  { %5966 = vmatprep.subr.bf16.mxu0 %v7255_v14 }
0x1169   :  { %5967 = vmatpush3.bf16.msra.mxu0 %v7255_v14 }
0x116a   :  { %5968 = vmatprep.subr.bf16.mxu0 %v7262_v19 }
0x116d   :  { %5969 = vmatpush3.bf16.msra.mxu0 %v7262_v19 }
0x116e   :  { %5970 = vmatprep.subr.bf16.mxu0 %v6855_v39 }
0x1171   :  { %5971 = vmatpush3.bf16.msra.mxu0 %v6855_v39  ;;  %v6337_v39 = vld [vmem:[%s7659_s3 + $0x140] sm:$0xff]  }
0x1172   :  { %5972 = vmatprep.subr.bf16.mxu0 %v6862_v40  ;;  %5982 = vmatprep.subr.bf16.mxu1 %v6337_v39 }
0x1173   :  { %5983 = vmatpush3.bf16.msra.mxu1 %v6337_v39 }
0x1174   :  { %6241 = vmatprep.subr.msk.bf16.mxu1 %vm110_vm0, %v7231_v0 }
0x1175   :  { %5973 = vmatpush3.bf16.msra.mxu0 %v6862_v40 }
0x1176   :  { %5974 = vmatprep.subr.bf16.mxu0 %v6869_v41 }
0x1179   :  { %5975 = vmatpush3.bf16.msra.mxu0 %v6869_v41 }
0x117a   :  { %6006 = vmatprep.subr.bf16.mxu0 %v6340_v44 }
0x117c   :  { %5977 = vmatmul.mubr.msk.bf16.vlgmr.msra.gmra.mxu0 %vm103_vm1, %v6335_v20 }
0x117d   :  { %6007 = vmatpush3.bf16.msra.mxu0 %v6340_v44 }
0x117e   :  { %6008 = vmatprep.subr.bf16.mxu0 %v6341_v45 }
0x1181   :  { %6009 = vmatpush3.bf16.msra.mxu0 %v6341_v45 }
0x1182   :  { %6242 = vmatprep.subr.msk.bf16.mxu0 %vm110_vm0, %v7231_v0 }
0x1220   :  { %v5960_v40 = vpop.f32.mrf.mxu0 }
0x1221   :  { %v2989_v8 = vadd.f32 %v5960_v40, %v2844_v6 }
0x1222   :  { %v2973_v41 = vpop.f32.mrf.mxu0 }
0x1223   :  { %v2987_v21 = vadd.f32 %v2973_v41, %v2842_v52 }
0x1224   :  { %v5961_v9 = vpop.f32.mrf.mxu0 }
0x1226   :  { %v2976_v22 = vpop.f32.mrf.mxu0 }
0x1227   :  { %v2988_v23 = vadd.f32 %v2976_v22, %v2843_v55 }
0x123c   :  { %v5978_v24 = vpop.f32.mrf.mxu0 }
0x123d   :  { %v3051_v26 = vadd.f32 %v6990_v2, %v5978_v24 }
0x123e   :  { %v3042_v25 = vpop.f32.mrf.mxu0 }
0x123f   :  { %v3043_v28 = vadd.f32 %v6990_v2, %v3042_v25  ;;  %v3058_v31 = vmax.f32 %v3051_v26, 0.0  ;;  %v6346_v26 = vld [vmem:[%s7658_s0 + $0x114] sm:$0xff]  }
0x1240   :  { %v5979_v27 = vpop.f32.mrf.mxu0 }
0x1241   :  { %v3056_v32 = vmax.f32 %v3043_v28, 0.0  ;;  %v3060_v36 = vpack.c.bf16 %v3058_v31, %v3058_v31  ;;  %v6347_v28 = vld [vmem:[%s7658_s0 + $0x11c] ss:$0 sps:$4 sm:$0x11]  }
0x1242   :  { %v3045_v29 = vpop.f32.mrf.mxu0 }
0x1243   :  { %v3046_v30 = vadd.f32 %v6990_v2, %v3045_v29  ;;  %v6348_v29 = vld [vmem:[%s7659_s3 + $0x178] sm:$0xff]  }
0x1245   :  { %v3057_v33 = vmax.f32 %v3046_v30, 0.0  ;;  %v6349_v30 = vld [vmem:[%s7659_s3 + $0x170] sm:$0xff]  }
0x1247   :  { %v3059_v34 = vpack.c.bf16 %v3057_v33, %v3056_v32 }
0x1249   :  { %5984 = vmatprep.mubr.msk.bf16.mxu1 %vm259_vm2, %v3059_v34 }
0x124a   :  { %5985 = vmatmul.mubr.msk.bf16.vlgmr.msra.gmra.mxu1 %vm259_vm2, %v3060_v36 }
0x124b   :  { %5989 = vmatpush3.bf16.msra.mxu1 %v6485_v3  ;;  %6002 = vmatprep.mubr.msk.bf16.mxu1 %vm103_vm1, %v6338_v35 }
0x124c   :  { %5990 = vmatprep.subr.bf16.mxu1 %v7248_v13 }
0x124f   :  { %5991 = vmatpush3.bf16.msra.mxu1 %v7248_v13 }
0x1250   :  { %5992 = vmatprep.subr.bf16.mxu1 %v7255_v14 }
0x1253   :  { %5993 = vmatpush3.bf16.msra.mxu1 %v7255_v14 }
0x1254   :  { %5994 = vmatprep.subr.bf16.mxu1 %v7262_v19 }
0x1257   :  { %5995 = vmatpush3.bf16.msra.mxu1 %v7262_v19 }
0x1258   :  { %5996 = vmatprep.subr.bf16.mxu1 %v7303_v37 }
0x125b   :  { %5997 = vmatpush3.bf16.msra.mxu1 %v7303_v37 }
0x125c   :  { %5998 = vmatprep.subr.bf16.mxu1 %v7310_v38 }
0x125f   :  { %5999 = vmatpush3.bf16.msra.mxu1 %v7310_v38 }
0x1260   :  { %6000 = vmatprep.subr.bf16.mxu1 %v7317_v42 }
0x1263   :  { %6001 = vmatpush3.bf16.msra.mxu1 %v7317_v42 }
0x1264   :  { %6032 = vmatprep.subr.bf16.mxu1 %v6344_v60 }
0x1266   :  { %6003 = vmatmul.mubr.msk.bf16.vlgmr.msra.gmra.mxu1 %vm103_vm1, %v6339_v43 }
0x1267   :  { %6033 = vmatpush3.bf16.msra.mxu1 %v6344_v60 }
0x1268   :  { %6034 = vmatprep.subr.bf16.mxu1 %v6345_v61 }
0x126b   :  { %6035 = vmatpush3.bf16.msra.mxu1 %v6345_v61 }
0x126c   :  { %6243 = vmatprep.subr.msk.bf16.mxu1 %vm110_vm0, %v7231_v0 }
0x130a   :  { %v5986_v46 = vpop.f32.mrf.mxu1 }
0x130b   :  { %v3134_v1 = vadd.f32 %v5986_v46, %v2989_v8 }
0x130c   :  { %v3118_v50 = vpop.f32.mrf.mxu1 }
0x130d   :  { %v3132_v47 = vadd.f32 %v3118_v50, %v2987_v21 }
0x130e   :  { %v5987_v48 = vpop.f32.mrf.mxu1 }
0x1310   :  { %v3121_v49 = vpop.f32.mrf.mxu1 }
0x1311   :  { %v3133_v15 = vadd.f32 %v3121_v49, %v2988_v23 }
0x1326   :  { %v6004_v16 = vpop.f32.mrf.mxu1 }
0x1327   :  { %v3196_v5 = vadd.f32 %v6990_v2, %v6004_v16 }
0x1328   :  { %v3187_v17 = vpop.f32.mrf.mxu1 }
0x1329   :  { %v3188_v51 = vadd.f32 %v6990_v2, %v3187_v17  ;;  %v3203_v54 = vmax.f32 %v3196_v5, 0.0  ;;  %v6350_v17 = vld [vmem:[%s7658_s0 + $0x120] sm:$0xff]  }
0x132a   :  { %v6005_v6 = vpop.f32.mrf.mxu1 }
0x132b   :  { %v3201_v55 = vmax.f32 %v3188_v51, 0.0  ;;  %v3205_v53 = vpack.c.bf16 %v3203_v54, %v3203_v54  ;;  %v6413_v54 = vld [vmem:[%s7660_s2] ss:$0 sm:$0xff] }
0x132c   :  { %v3190_v52 = vpop.f32.mrf.mxu1 }
0x132d   :  { %v3191_v18 = vadd.f32 %v6990_v2, %v3190_v52 }
0x132f   :  { %v3202_v56 = vmax.f32 %v3191_v18, 0.0 }
0x1331   :  { %v3204_v57 = vpack.c.bf16 %v3202_v56, %v3201_v55 }
0x1333   :  { %6010 = vmatprep.mubr.msk.bf16.mxu0 %vm259_vm2, %v3204_v57 }
0x1334   :  { %6011 = vmatmul.mubr.msk.bf16.vlgmr.msra.gmra.mxu0 %vm259_vm2, %v3205_v53 }
0x1335   :  { %6015 = vmatpush3.bf16.msra.mxu0 %v6485_v3  ;;  %6028 = vmatprep.mubr.msk.bf16.mxu0 %vm103_vm1, %v6342_v58 }
0x1336   :  { %6016 = vmatprep.subr.bf16.mxu0 %v7248_v13 }
0x1339   :  { %6017 = vmatpush3.bf16.msra.mxu0 %v7248_v13 }
0x133a   :  { %6018 = vmatprep.subr.bf16.mxu0 %v7255_v14 }
0x133d   :  { %6019 = vmatpush3.bf16.msra.mxu0 %v7255_v14 }
0x133e   :  { %6020 = vmatprep.subr.bf16.mxu0 %v7262_v19 }
0x1341   :  { %6021 = vmatpush3.bf16.msra.mxu0 %v7262_v19 }
0x1342   :  { %6022 = vmatprep.subr.bf16.mxu0 %v7303_v37 }
0x1345   :  { %6023 = vmatpush3.bf16.msra.mxu0 %v7303_v37 }
0x1346   :  { %6024 = vmatprep.subr.bf16.mxu0 %v7310_v38 }
0x1349   :  { %6025 = vmatpush3.bf16.msra.mxu0 %v7310_v38 }
0x134a   :  { %6026 = vmatprep.subr.bf16.mxu0 %v7317_v42 }
0x134d   :  { %6027 = vmatpush3.bf16.msra.mxu0 %v7317_v42 }
0x134e   :  { %6058 = vmatprep.subr.bf16.mxu0 %v6348_v29 }
0x1350   :  { %6029 = vmatmul.mubr.msk.bf16.vlgmr.msra.gmra.mxu0 %vm103_vm1, %v6343_v59 }
0x1351   :  { %6059 = vmatpush3.bf16.msra.mxu0 %v6348_v29 }
0x1352   :  { %6060 = vmatprep.subr.bf16.mxu0 %v6349_v30 }
0x1355   :  { %6061 = vmatpush3.bf16.msra.mxu0 %v6349_v30 }
0x1356   :  { %6244 = vmatprep.subr.msk.bf16.mxu0 %vm110_vm0, %v7231_v0 }
0x13f4   :  { %v6012_v62 = vpop.f32.mrf.mxu0 }
0x13f5   :  { %v3279_v63 = vadd.f32 %v6012_v62, %v3134_v1 }
0x13f6   :  { %v3263_v4 = vpop.f32.mrf.mxu0 }
0x13f7   :  { %v3277_v10 = vadd.f32 %v3263_v4, %v3132_v47  ;;  %v6354_v4 = vld [vmem:[%s7661_s5 + $0x38] sm:$0xff]  }
0x13f8   :  { %v6013_v11 = vpop.f32.mrf.mxu0 }
0x13f9   :  { %v6355_v11 = vld [vmem:[%s7661_s5 + $0x18] sm:$0xff]  }
0x13fa   :  { %v3266_v12 = vpop.f32.mrf.mxu0 }
0x13fb   :  { %v3278_v20 = vadd.f32 %v3266_v12, %v3133_v15  ;;  %v6356_v12 = vld [vmem:[%s7661_s5 + $0x30] sm:$0xff]  }
0x1410   :  { %v6030_v7 = vpop.f32.mrf.mxu0 }
0x1411   :  { %v3341_v40 = vadd.f32 %v6990_v2, %v6030_v7  ;;  %v6358_v7 = vld [vmem:[%s7661_s5 + $0x28] sm:$0xff]  }
0x1412   :  { %v3332_v39 = vpop.f32.mrf.mxu0 }
0x1413   :  { %v3333_v41 = vadd.f32 %v6990_v2, %v3332_v39  ;;  %v3348_v22 = vmax.f32 %v3341_v40, 0.0  ;;  %v6359_v39 = vld [vmem:[%s7661_s5 + $0x8] sm:$0xff]   ;;  %v6360_v40 = vld [vmem:[%s7661_s5 + $0x20] sm:$0xff]  }
0x1414   :  { %v6031_v8 = vpop.f32.mrf.mxu0 }
0x1415   :  { %v3346_v23 = vmax.f32 %v3333_v41, 0.0  ;;  %v3350_v27 = vpack.c.bf16 %v3348_v22, %v3348_v22  ;;  %v6361_v8 = vld [vmem:[%s7661_s5] sm:$0xff]  }
0x1416   :  { %v3335_v21 = vpop.f32.mrf.mxu0 }
0x1417   :  { %v3336_v9 = vadd.f32 %v6990_v2, %v3335_v21  ;;  %v4943_v21 = vld [vmem:[%s7662_s4] ss:$0 sm:$0xff] }
0x1419   :  { %v3347_v24 = vmax.f32 %v3336_v9, 0.0 }
0x141b   :  { %v3349_v25 = vpack.c.bf16 %v3347_v24, %v3346_v23 }
0x141d   :  { %6036 = vmatprep.mubr.msk.bf16.mxu1 %vm259_vm2, %v3349_v25 }
0x141e   :  { %6037 = vmatmul.mubr.msk.bf16.vlgmr.msra.gmra.mxu1 %vm259_vm2, %v3350_v27 }
0x141f   :  { %6041 = vmatpush3.bf16.msra.mxu1 %v6485_v3  ;;  %6054 = vmatprep.mubr.msk.bf16.mxu1 %vm103_vm1, %v6346_v26 }
0x1420   :  { %6042 = vmatprep.subr.bf16.mxu1 %v7248_v13 }
0x1423   :  { %6043 = vmatpush3.bf16.msra.mxu1 %v7248_v13 }
0x1424   :  { %6044 = vmatprep.subr.bf16.mxu1 %v7255_v14 }
0x1427   :  { %6045 = vmatpush3.bf16.msra.mxu1 %v7255_v14 }
0x1428   :  { %6046 = vmatprep.subr.bf16.mxu1 %v7262_v19 }
0x142b   :  { %6047 = vmatpush3.bf16.msra.mxu1 %v7262_v19 }
0x142c   :  { %6048 = vmatprep.subr.bf16.mxu1 %v7303_v37 }
0x142f   :  { %6049 = vmatpush3.bf16.msra.mxu1 %v7303_v37 }
0x1430   :  { %6050 = vmatprep.subr.bf16.mxu1 %v7310_v38 }
0x1433   :  { %6051 = vmatpush3.bf16.msra.mxu1 %v7310_v38 }
0x1434   :  { %6052 = vmatprep.subr.bf16.mxu1 %v7317_v42 }
0x1437   :  { %6053 = vmatpush3.bf16.msra.mxu1 %v7317_v42 }
0x143a   :  { %6055 = vmatmul.mubr.msk.bf16.vlgmr.msra.gmra.mxu1 %vm103_vm1, %v6347_v28 }
0x14de   :  { %v6038_v31 = vpop.f32.mrf.mxu1 }
0x14df   :  { %v3424_v32 = vadd.f32 %v6038_v31, %v3279_v63 }
0x14e0   :  { %v3408_v33 = vpop.f32.mrf.mxu1 }
0x14e1   :  { %v3422_v34 = vadd.f32 %v3408_v33, %v3277_v10  ;;  %v6414_v10 = vmov 0.0   ;;  %v6362_v33 = vld [vmem:[%s7661_s5 + $0x58] sm:$0xff]  }
0x14e2   :  { %v6039_v35 = vpop.f32.mrf.mxu1 }
0x14e4   :  { %v3411_v36 = vpop.f32.mrf.mxu1 }
0x14e5   :  { %v3423_v43 = vadd.f32 %v3411_v36, %v3278_v20  ;;  %v6357_v20 = vld [vmem:[%s7661_s5 + $0x10] sm:$0xff]   ;;  %v6363_v36 = vld [vmem:[%s7661_s5 + $0x78] sm:$0xff]  }
0x14fa   :  { %v6056_v44 = vpop.f32.mrf.mxu1 }
0x14fb   :  { %v3486_v46 = vadd.f32 %v6990_v2, %v6056_v44 }
0x14fc   :  { %v3477_v45 = vpop.f32.mrf.mxu1 }
0x14fd   :  { %v3478_v50 = vadd.f32 %v6990_v2, %v3477_v45  ;;  %v3493_v49 = vmax.f32 %v3486_v46, 0.0  ;;  %v6364_v45 = vld [vmem:[%s7661_s5 + $0x50] sm:$0xff]  }
0x14fe   :  { %v6057_v1 = vpop.f32.mrf.mxu1  ;;  %v6365_v46 = vld [vmem:[%s7661_s5 + $0x70] sm:$0xff]  }
0x14ff   :  { %v3491_v15 = vmax.f32 %v3478_v50, 0.0  ;;  %v3495_v5 = vpack.c.bf16 %v3493_v49, %v3493_v49  ;;  %v6366_v1 = vld [vmem:[%s7661_s5 + $0x48] sm:$0xff]  }
0x1500   :  { %v3480_v47 = vpop.f32.mrf.mxu1  ;;  %v6367_v50 = vld [vmem:[%s7661_s5 + $0x68] sm:$0xff]  }
0x1501   :  { %v3481_v48 = vadd.f32 %v6990_v2, %v3480_v47  ;;  %v6352_v2 = vld [vmem:[%s7659_s3 + $0x188] sm:$0xff]   ;;  %v6368_v47 = vld [vmem:[%s7661_s5 + $0x40] sm:$0xff]  }
0x1502   :  { %6084 = vmatprep.subr.bf16.mxu1 %v6352_v2 }
0x1503   :  { %v3492_v0 = vmax.f32 %v3481_v48, 0.0  ;;  %6085 = vmatpush3.bf16.msra.mxu1 %v6352_v2  ;;  %v6369_v48 = vld [vmem:[%s7661_s5 + $0x60] sm:$0xff]   ;;  %v6373_v2 = vld [vmem:[%s7661_s5 + $0xb0] sm:$0xff]  }
0x1505   :  { %v3494_v16 = vpack.c.bf16 %v3492_v0, %v3491_v15  ;;  %v6370_v0 = vld [vmem:[%s7661_s5 + $0x98] sm:$0xff]  }
0x1507   :  { %6062 = vmatprep.mubr.msk.bf16.mxu0 %vm259_vm2, %v3494_v16  ;;  %v6371_v16 = vld [vmem:[%s7661_s5 + $0xb8] sm:$0xff]  }
0x1508   :  { %6063 = vmatmul.mubr.msk.bf16.vlgmr.msra.gmra.mxu0 %vm259_vm2, %v3495_v5 }
0x1509   :  { %6067 = vmatpush3.bf16.msra.mxu0 %v6485_v3  ;;  %6080 = vmatprep.mubr.msk.bf16.mxu0 %vm103_vm1, %v6350_v17  ;;  %v6351_v3 = vld [vmem:[%s7658_s0 + $0x128] ss:$0 sps:$4 sm:$0x11]  }
0x150a   :  { %6068 = vmatprep.subr.bf16.mxu0 %v7248_v13 }
0x150d   :  { %6069 = vmatpush3.bf16.msra.mxu0 %v7248_v13  ;;  %v6353_v13 = vld [vmem:[%s7659_s3 + $0x180] sm:$0xff]  }
0x150e   :  { %6070 = vmatprep.subr.bf16.mxu0 %v7255_v14  ;;  %6086 = vmatprep.subr.bf16.mxu1 %v6353_v13 }
0x150f   :  { %6087 = vmatpush3.bf16.msra.mxu1 %v6353_v13  ;;  %v6374_v13 = vld [vmem:[%s7661_s5 + $0x88] sm:$0xff]  }
0x1510   :  { %6104 = vmatprep.subr.bf16.mxu1 %v6414_v10 }
0x1511   :  { %6071 = vmatpush3.bf16.msra.mxu0 %v7255_v14 }
0x1512   :  { %6072 = vmatprep.subr.bf16.mxu0 %v7262_v19 }
0x1515   :  { %6073 = vmatpush3.bf16.msra.mxu0 %v7262_v19 }
0x1516   :  { %6074 = vmatprep.subr.bf16.mxu0 %v7303_v37 }
0x1519   :  { %6075 = vmatpush3.bf16.msra.mxu0 %v7303_v37 }
0x151a   :  { %6076 = vmatprep.subr.bf16.mxu0 %v7310_v38 }
0x151d   :  { %6077 = vmatpush3.bf16.msra.mxu0 %v7310_v38 }
0x151e   :  { %6078 = vmatprep.subr.bf16.mxu0 %v7317_v42 }
0x1521   :  { %6079 = vmatpush3.bf16.msra.mxu0 %v7317_v42 }
0x1522   :  { %6092 = vmatprep.subr.bf16.mxu0 %v6414_v10 }
0x1524   :  { %6081 = vmatmul.mubr.msk.bf16.vlgmr.msra.gmra.mxu0 %vm103_vm1, %v6351_v3  ;;  %v6372_v3 = vld [vmem:[%s7661_s5 + $0x90] sm:$0xff]  }
0x1525   :  { %6093 = vmatpush3.bf16.msra.mxu0 %v6354_v4  ;;  %6100 = vmatprep.mubr.msk.bf16.mxu0 %vm6415_vm3, %v6414_v10  ;;  %v6387_v4 = vld [vmem:[%s7661_s5 + $0x110] sm:$0xff]  }
0x1526   :  { %6094 = vmatprep.subr.bf16.mxu0 %v6414_v10 }
0x1529   :  { %6095 = vmatpush3.bf16.msra.mxu0 %v6356_v12  ;;  %v6389_v12 = vld [vmem:[%s7661_s5 + $0x100] sm:$0xff]  }
0x152a   :  { %6096 = vmatprep.subr.bf16.mxu0 %v6414_v10 }
0x152d   :  { %6097 = vmatpush3.bf16.msra.mxu0 %v6358_v7 }
0x152e   :  { %6098 = vmatprep.subr.bf16.mxu0 %v6414_v10 }
0x1531   :  { %6099 = vmatpush3.bf16.msra.mxu0 %v6360_v40  ;;  %v6391_v40 = vld [vmem:[%s7663_s7 + $0x30] sm:$0xff]  }
0x1532   :  { %6116 = vmatprep.subr.bf16.mxu0 %v6414_v10 }
0x15c8   :  { %v6064_v14 = vpop.f32.mrf.mxu0 }
0x15c9   :  { %v3569_v19 = vadd.f32 %v6064_v14, %v3424_v32  ;;  %v6375_v14 = vld [vmem:[%s7661_s5 + $0xa8] sm:$0xff]  }
0x15ca   :  { %v3553_v37 = vpop.f32.mrf.mxu0 }
0x15cb   :  { %v3567_v38 = vadd.f32 %v3553_v37, %v3422_v34  ;;  %v6377_v37 = vld [vmem:[%s7661_s5 + $0xa0] sm:$0xff]  }
0x15cc   :  { %v6065_v6 = vpop.f32.mrf.mxu0 }
0x15ce   :  { %v3556_v42 = vpop.f32.mrf.mxu0 }
0x15cf   :  { %v3568_v51 = vadd.f32 %v3556_v42, %v3423_v43  ;;  %v6378_v42 = vld [vmem:[%s7661_s5 + $0xd8] sm:$0xff]  }
0x15e4   :  { %v6082_v52 = vpop.f32.mrf.mxu0 }
0x15e5   :  { %v3631_v55 = vadd.f32 %v6413_v54, %v6082_v52 }
0x15e6   :  { %v3622_v18 = vpop.f32.mrf.mxu0 }
0x15e7   :  { %v3623_v57 = vadd.f32 %v6413_v54, %v3622_v18  ;;  %v3638_v59 = vmax.f32 %v3631_v55, 0.0  ;;  %v6381_v55 = vld [vmem:[%s7661_s5 + $0xf0] sm:$0xff]  }
0x15e8   :  { %v6083_v56 = vpop.f32.mrf.mxu0 }
0x15e9   :  { %v3636_v60 = vmax.f32 %v3623_v57, 0.0  ;;  %v3640_v63 = vpack.c.bf16 %v3638_v59, %v3638_v59  ;;  %v6382_v56 = vld [vmem:[%s7661_s5 + $0xc8] sm:$0xff]  }
0x15ea   :  { %v3625_v58 = vpop.f32.mrf.mxu0  ;;  %v6383_v57 = vld [vmem:[%s7661_s5 + $0xe8] sm:$0xff]  }
0x15eb   :  { %v3626_v53 = vadd.f32 %v6413_v54, %v3625_v58  ;;  %v6380_v54 = vld [vmem:[%s7661_s5 + $0xd0] sm:$0xff]   ;;  %v6384_v58 = vld [vmem:[%s7661_s5 + $0xc0] sm:$0xff]  }
0x15ed   :  { %v3637_v61 = vmax.f32 %v3626_v53, 0.0  ;;  %v6385_v53 = vld [vmem:[%s7661_s5 + $0xe0] sm:$0xff]  }
0x15ef   :  { %v3639_v62 = vpack.c.bf16 %v3637_v61, %v3636_v60  ;;  %v6386_v61 = vld [vmem:[%s7661_s5 + $0x118] sm:$0xff]  }
0x15f1   :  { %6088 = vmatprep.mubr.msk.bf16.mxu1 %vm259_vm2, %v3639_v62 }
0x15f2   :  { %6089 = vmatmul.mubr.msk.bf16.vlgmr.msra.gmra.mxu1 %vm259_vm2, %v3640_v63 }
0x15f3   :  { %6105 = vmatpush3.bf16.msra.mxu1 %v6355_v11  ;;  %6112 = vmatprep.mubr.msk.bf16.mxu1 %vm6415_vm3, %v6414_v10  ;;  %v6388_v11 = vld [vmem:[%s7661_s5 + $0x108] sm:$0xff]  }
0x15f4   :  { %6106 = vmatprep.subr.bf16.mxu1 %v6414_v10 }
0x15f7   :  { %6107 = vmatpush3.bf16.msra.mxu1 %v6357_v20 }
0x15f8   :  { %6108 = vmatprep.subr.bf16.mxu1 %v6414_v10 }
0x15fb   :  { %6109 = vmatpush3.bf16.msra.mxu1 %v6359_v39  ;;  %v6390_v39 = vld [vmem:[%s7663_s7 + $0x38] sm:$0xff]  }
0x15fc   :  { %6110 = vmatprep.subr.bf16.mxu1 %v6414_v10 }
0x15ff   :  { %6111 = vmatpush3.bf16.msra.mxu1 %v6361_v8  ;;  %v6392_v8 = vld [vmem:[%s7663_s7 + $0x28] sm:$0xff]  }
0x1600   :  { %6128 = vmatprep.subr.bf16.mxu1 %v6414_v10 }
0x16b2   :  { %v6090_v41 = vpop.f32.mrf.mxu1 }
0x16b3   :  { %v3714_v9 = vadd.f32 %v6090_v41, %v3569_v19  ;;  %v6376_v19 = vld [vmem:[%s7661_s5 + $0x80] sm:$0xff]  }
0x16b4   :  { %v3698_v22 = vpop.f32.mrf.mxu1  ;;  %v6393_v41 = vld [vmem:[%s7663_s7 + $0x20] sm:$0xff]  }
0x16b5   :  { %v3724_v23 = vadd.f32 %v4943_v21, %v3714_v9  ;;  %v3712_v24 = vadd.f32 %v3698_v22, %v3567_v38  ;;  %v6395_v9 = vld [vmem:[%s7663_s7 + $0x10] sm:$0xff]   ;;  %v6396_v22 = vld [vmem:[%s7663_s7 + $0x8] sm:$0xff]  }
0x16b6   :  { %v6091_v25 = vpop.f32.mrf.mxu1 }
0x16b7   :  { %v3727_v26 = vmax.f32 %v3724_v23, 0.0  ;;  %v3722_v27 = vadd.f32 %v4943_v21, %v3712_v24  ;;  %v6397_v23 = vld [vmem:[%s7663_s7] sm:$0xff]  }
0x16b8   :  { %v3701_v28 = vpop.f32.mrf.mxu1 }
0x16b9   :  { %3732 = vst.msk [vmem:[#allocation2 + $0x10] sm:$0x3] %vm3731_vm4, %v3727_v26  ;;  %v3725_v29 = vmax.f32 %v3722_v27, 0.0  ;;  %v3713_v30 = vadd.f32 %v3701_v28, %v3568_v51  ;;  %v6379_v51 = vld [vmem:[%s7661_s5 + $0xf8] sm:$0xff]  }
0x16bb   :  { %3729 = vst.msk [vmem:[#allocation2] sm:$0xff] %vm3728_vm5, %v3725_v29  ;;  %v3723_v31 = vadd.f32 %v4943_v21, %v3713_v30  ;;  %v6394_v21 = vld [vmem:[%s7663_s7 + $0x18] sm:$0xff]  }
0x16bd   :  { %v3726_v32 = vmax.f32 %v3723_v31, 0.0 }
0x16bf   :  { %3730 = vst.msk [vmem:[#allocation2 + $0x8] sm:$0xff] %vm3728_vm5, %v3726_v32 }
0x16c0   :  { %v4362_v20 = vld [vmem:[#allocation2 + $0x10] sm:$0x3] }
0x16c1   :  { %v4363_v7 = vpack.c.bf16 %v4362_v20, %v4362_v20 }
0x16c2   :  { %v3743_v34 = vld [vmem:[#allocation2 + $0x2] sm:$0x3]  ;;  %v3733_v35 = vld [vmem:[#allocation2] sm:$0x3]  ;;  %v3888_v49 = vld [vmem:[#allocation2 + $0x4] sm:$0x3] }
0x16c3   :  { %v3744_v43 = vpack.c.bf16 %v3743_v34, %v3743_v34  ;;  %v3734_v44 = vpack.c.bf16 %v3733_v35, %v3733_v35  ;;  %v3967_v15 = vld [vmem:[#allocation2 + $0x6] sm:$0x3]  ;;  %v3889_v17 = vpack.c.bf16 %v3888_v49, %v3888_v49 }
0x16c4   :  { %v3968_v5 = vpack.c.bf16 %v3967_v15, %v3967_v15 }
0x16c5   :  { %6101 = vmatmul.mubr.msk.bf16.vlgmr.msra.gmra.mxu0 %vm3728_vm5, %v3744_v43  ;;  %6113 = vmatmul.mubr.msk.bf16.vlgmr.msra.gmra.mxu1 %vm3728_vm5, %v3734_v44 }
0x16c6   :  { %6117 = vmatpush3.bf16.msra.mxu0 %v6362_v33  ;;  %6129 = vmatpush3.bf16.msra.mxu1 %v6363_v36  ;;  %v4046_v38 = vld [vmem:[#allocation2 + $0x8] sm:$0x3]  ;;  %v4125_v6 = vld [vmem:[#allocation2 + $0xa] sm:$0x3]  ;;  %v4204_v59 = vld [vmem:[#allocation2 + $0xc] sm:$0x3] }
0x16c7   :  { %6118 = vmatprep.subr.bf16.mxu0 %v6414_v10  ;;  %6130 = vmatprep.subr.bf16.mxu1 %v6414_v10  ;;  %v4047_v52 = vpack.c.bf16 %v4046_v38, %v4046_v38  ;;  %v4126_v18 = vpack.c.bf16 %v4125_v6, %v4125_v6  ;;  %v4283_v60 = vld [vmem:[#allocation2 + $0xe] sm:$0x3]  ;;  %v4205_v62 = vpack.c.bf16 %v4204_v59, %v4204_v59 }
0x16c8   :  { %6124 = vmatprep.mubr.msk.bf16.mxu0 %vm6415_vm3, %v6414_v10  ;;  %6136 = vmatprep.mubr.msk.bf16.mxu1 %vm6415_vm3, %v6414_v10  ;;  %v4284_v63 = vpack.c.bf16 %v4283_v60, %v4283_v60 }
0x16ca   :  { %6119 = vmatpush3.bf16.msra.mxu0 %v6364_v45  ;;  %6131 = vmatpush3.bf16.msra.mxu1 %v6365_v46 }
0x16cb   :  { %6120 = vmatprep.subr.bf16.mxu0 %v6414_v10  ;;  %6132 = vmatprep.subr.bf16.mxu1 %v6414_v10 }
0x16ce   :  { %6121 = vmatpush3.bf16.msra.mxu0 %v6366_v1  ;;  %6133 = vmatpush3.bf16.msra.mxu1 %v6367_v50 }
0x16cf   :  { %6122 = vmatprep.subr.bf16.mxu0 %v6414_v10  ;;  %6134 = vmatprep.subr.bf16.mxu1 %v6414_v10 }
0x16d2   :  { %6123 = vmatpush3.bf16.msra.mxu0 %v6368_v47  ;;  %6135 = vmatpush3.bf16.msra.mxu1 %v6369_v48 }
0x16d3   :  { %6140 = vmatprep.subr.bf16.mxu0 %v6414_v10  ;;  %6152 = vmatprep.subr.bf16.mxu1 %v6414_v10 }
0x16d5   :  { %6125 = vmatmul.mubr.msk.bf16.vlgmr.msra.gmra.mxu0 %vm3728_vm5, %v3889_v17  ;;  %6137 = vmatmul.mubr.msk.bf16.vlgmr.msra.gmra.mxu1 %vm3728_vm5, %v3968_v5 }
0x16d6   :  { %6141 = vmatpush3.bf16.msra.mxu0 %v6370_v0  ;;  %6153 = vmatpush3.bf16.msra.mxu1 %v6371_v16 }
0x16d7   :  { %6142 = vmatprep.subr.bf16.mxu0 %v6414_v10  ;;  %6154 = vmatprep.subr.bf16.mxu1 %v6414_v10 }
0x16d8   :  { %6148 = vmatprep.mubr.msk.bf16.mxu0 %vm6415_vm3, %v6414_v10  ;;  %6160 = vmatprep.mubr.msk.bf16.mxu1 %vm6415_vm3, %v6414_v10 }
0x16da   :  { %6143 = vmatpush3.bf16.msra.mxu0 %v6372_v3  ;;  %6155 = vmatpush3.bf16.msra.mxu1 %v6373_v2 }
0x16db   :  { %6144 = vmatprep.subr.bf16.mxu0 %v6414_v10  ;;  %6156 = vmatprep.subr.bf16.mxu1 %v6414_v10 }
0x16de   :  { %6145 = vmatpush3.bf16.msra.mxu0 %v6374_v13  ;;  %6157 = vmatpush3.bf16.msra.mxu1 %v6375_v14 }
0x16df   :  { %6146 = vmatprep.subr.bf16.mxu0 %v6414_v10  ;;  %6158 = vmatprep.subr.bf16.mxu1 %v6414_v10 }
0x16e2   :  { %6147 = vmatpush3.bf16.msra.mxu0 %v6376_v19  ;;  %6159 = vmatpush3.bf16.msra.mxu1 %v6377_v37 }
0x16e3   :  { %6164 = vmatprep.subr.bf16.mxu0 %v6414_v10  ;;  %6176 = vmatprep.subr.bf16.mxu1 %v6414_v10 }
0x16e5   :  { %6149 = vmatmul.mubr.msk.bf16.vlgmr.msra.gmra.mxu0 %vm3728_vm5, %v4047_v52  ;;  %6161 = vmatmul.mubr.msk.bf16.vlgmr.msra.gmra.mxu1 %vm3728_vm5, %v4126_v18 }
0x16e6   :  { %6165 = vmatpush3.bf16.msra.mxu0 %v6378_v42  ;;  %6177 = vmatpush3.bf16.msra.mxu1 %v6379_v51 }
0x16e7   :  { %6166 = vmatprep.subr.bf16.mxu0 %v6414_v10  ;;  %6178 = vmatprep.subr.bf16.mxu1 %v6414_v10 }
0x16e8   :  { %6172 = vmatprep.mubr.msk.bf16.mxu0 %vm6415_vm3, %v6414_v10  ;;  %6184 = vmatprep.mubr.msk.bf16.mxu1 %vm6415_vm3, %v6414_v10 }
0x16ea   :  { %6167 = vmatpush3.bf16.msra.mxu0 %v6380_v54  ;;  %6179 = vmatpush3.bf16.msra.mxu1 %v6381_v55  ;;  %v5053_v54 = vld [vmem:[%s7664_s6] ss:$0 sm:$0xff] }
0x16eb   :  { %6168 = vmatprep.subr.bf16.mxu0 %v6414_v10  ;;  %6180 = vmatprep.subr.bf16.mxu1 %v6414_v10 }
0x16ee   :  { %6169 = vmatpush3.bf16.msra.mxu0 %v6382_v56  ;;  %6181 = vmatpush3.bf16.msra.mxu1 %v6383_v57 }
0x16ef   :  { %6170 = vmatprep.subr.bf16.mxu0 %v6414_v10  ;;  %6182 = vmatprep.subr.bf16.mxu1 %v6414_v10 }
0x16f2   :  { %6171 = vmatpush3.bf16.msra.mxu0 %v6384_v58  ;;  %6183 = vmatpush3.bf16.msra.mxu1 %v6385_v53 }
0x16f3   :  { %6188 = vmatprep.subr.bf16.mxu0 %v6414_v10  ;;  %6200 = vmatprep.subr.bf16.mxu1 %v6414_v10 }
0x16f5   :  { %6173 = vmatmul.mubr.msk.bf16.vlgmr.msra.gmra.mxu0 %vm3728_vm5, %v4205_v62  ;;  %6185 = vmatmul.mubr.msk.bf16.vlgmr.msra.gmra.mxu1 %vm3728_vm5, %v4284_v63 }
0x16f6   :  { %6189 = vmatpush3.bf16.msra.mxu0 %v6386_v61  ;;  %6196 = vmatprep.mubr.msk.bf16.mxu0 %vm6415_vm3, %v6414_v10  ;;  %v5054_v61 = vld [vmem:[%s7665_s8] ss:$0 sm:$0xff] }
0x16f7   :  { %6190 = vmatprep.subr.bf16.mxu0 %v6414_v10  ;;  %6216 = vmatprep.mubr.msk.bf16.mxu1 %vm6415_vm3, %v6414_v10 }
0x16f8   :  { %6201 = vmatpush3.bf16.msra.mxu1 %v6390_v39 }
0x16f9   :  { %6202 = vmatprep.subr.bf16.mxu1 %v6414_v10 }
0x16fa   :  { %6191 = vmatpush3.bf16.msra.mxu0 %v6387_v4 }
0x16fb   :  { %6192 = vmatprep.subr.bf16.mxu0 %v6414_v10 }
0x16fc   :  { %6203 = vmatpush3.bf16.msra.mxu1 %v6391_v40 }
0x16fd   :  { %6204 = vmatprep.subr.bf16.mxu1 %v6414_v10 }
0x16fe   :  { %6193 = vmatpush3.bf16.msra.mxu0 %v6388_v11 }
0x16ff   :  { %6194 = vmatprep.subr.bf16.mxu0 %v6414_v10 }
0x1700   :  { %6205 = vmatpush3.bf16.msra.mxu1 %v6392_v8 }
0x1701   :  { %6206 = vmatprep.subr.bf16.mxu1 %v6414_v10 }
0x1702   :  { %6195 = vmatpush3.bf16.msra.mxu0 %v6389_v12 }
0x1704   :  { %6207 = vmatpush3.bf16.msra.mxu1 %v6393_v41 }
0x1705   :  { %6197 = vmatmul.mubr.msk.bf16.vlgmr.msra.gmra.mxu0 %vm3728_vm5, %v4363_v7  ;;  %6208 = vmatprep.subr.bf16.mxu1 %v6414_v10 }
0x1708   :  { %6209 = vmatpush3.bf16.msra.mxu1 %v6394_v21 }
0x1709   :  { %6210 = vmatprep.subr.bf16.mxu1 %v6414_v10 }
0x170c   :  { %6211 = vmatpush3.bf16.msra.mxu1 %v6395_v9 }
0x170d   :  { %6212 = vmatprep.subr.bf16.mxu1 %v6414_v10 }
0x1710   :  { %6213 = vmatpush3.bf16.msra.mxu1 %v6396_v22 }
0x1711   :  { %6214 = vmatprep.subr.bf16.mxu1 %v6414_v10 }
0x1714   :  { %6215 = vmatpush3.bf16.msra.mxu1 %v6397_v23 }
0x1785   :  { %v3815_v24 = vpop.f32.mrf.mxu0  ;;  %v3882_v25 = vpop.f32.mrf.mxu1 }
0x1786   :  { %v3883_v0 = vadd.f32 %v3882_v25, %v3815_v24 }
0x1787   :  { %v6102_v26 = vpop.f32.mrf.mxu0  ;;  %v6114_v27 = vpop.f32.mrf.mxu1 }
0x1789   :  { %v3818_v28 = vpop.f32.mrf.mxu0  ;;  %v3885_v29 = vpop.f32.mrf.mxu1 }
0x178b   :  { %v6103_v30 = vpop.f32.mrf.mxu0  ;;  %v6115_v31 = vpop.f32.mrf.mxu1 }
0x1795   :  { %v3960_v32 = vpop.f32.mrf.mxu0  ;;  %v4039_v33 = vpop.f32.mrf.mxu1 }
0x1796   :  { %v3966_v16 = vadd.f32 %v3960_v32, %v3883_v0 }
0x1797   :  { %v6126_v34 = vpop.f32.mrf.mxu0  ;;  %v6138_v35 = vpop.f32.mrf.mxu1 }
0x1798   :  { %v4045_v13 = vadd.f32 %v4039_v33, %v3966_v16 }
0x1799   :  { %v3963_v36 = vpop.f32.mrf.mxu0  ;;  %v4042_v43 = vpop.f32.mrf.mxu1 }
0x179b   :  { %v6127_v10 = vpop.f32.mrf.mxu0  ;;  %v6139_v44 = vpop.f32.mrf.mxu1 }
0x17a5   :  { %v4118_v45 = vpop.f32.mrf.mxu0  ;;  %v4197_v46 = vpop.f32.mrf.mxu1 }
0x17a6   :  { %v4124_v37 = vadd.f32 %v4118_v45, %v4045_v13 }
0x17a7   :  { %v6150_v1 = vpop.f32.mrf.mxu0  ;;  %v6162_v50 = vpop.f32.mrf.mxu1 }
0x17a8   :  { %v4203_v42 = vadd.f32 %v4197_v46, %v4124_v37 }
0x17a9   :  { %v4121_v47 = vpop.f32.mrf.mxu0  ;;  %v4200_v48 = vpop.f32.mrf.mxu1 }
0x17ab   :  { %v6151_v49 = vpop.f32.mrf.mxu0  ;;  %v6163_v15 = vpop.f32.mrf.mxu1 }
0x17b5   :  { %v4276_v17 = vpop.f32.mrf.mxu0  ;;  %v4355_v5 = vpop.f32.mrf.mxu1 }
0x17b6   :  { %v4282_v51 = vadd.f32 %v4276_v17, %v4203_v42 }
0x17b7   :  { %v6174_v3 = vpop.f32.mrf.mxu0  ;;  %v6186_v2 = vpop.f32.mrf.mxu1 }
0x17b8   :  { %v4361_v52 = vadd.f32 %v4355_v5, %v4282_v51 }
0x17b9   :  { %v4279_v14 = vpop.f32.mrf.mxu0  ;;  %v4358_v19 = vpop.f32.mrf.mxu1 }
0x17bb   :  { %v6175_v38 = vpop.f32.mrf.mxu0  ;;  %v6187_v6 = vpop.f32.mrf.mxu1 }
0x17c5   :  { %v4434_v18 = vpop.f32.mrf.mxu0 }
0x17c6   :  { %v4440_v55 = vadd.f32 %v4434_v18, %v4361_v52 }
0x17c7   :  { %v6198_v56 = vpop.f32.mrf.mxu0 }
0x17c8   :  { %v4448_v57 = vadd.f32 %v5053_v54, %v4440_v55 }
0x17c9   :  { %v4437_v58 = vpop.f32.mrf.mxu0 }
0x17ca   :  { %v4449_v53 = vmax.f32 %v4448_v57, 0.0 }
0x17cb   :  { %v6199_v59 = vpop.f32.mrf.mxu0 }
0x17cc   :  { %v4450_v60 = vpack.c.bf16 %v4449_v53, %v4449_v53 }
0x17ce   :  { %6217 = vmatmul.mubr.bf16.vlgmr.msra.gmra.mxu1 %v4450_v60 }
0x188e   :  { %v4556_v62 = vpop.f32.mrf.mxu1 }
0x188f   :  { %v4557_v63 = vadd.f32 %v5054_v61, %v4556_v62 }
0x1890   :  { %v6218_v4 = vpop.f32.mrf.mxu1 }
0x1891   :  { %4562 = vst [vmem:[%s7666_s9] sm:$0x3] %v4557_v63 }
0x1892   :  { %v4559_v11 = vpop.f32.mrf.mxu1 }
0x1894   :  { %v6219_v12 = vpop.f32.mrf.mxu1 }

</bundles_post_ra>
